<compile_context>
chip_gen: v7x
topology: tpu7x:2x2x1
jax: 0.10.0
libtpu: 0.0.40
codegen_flags: <defaults>
</compile_context>

<pallas_src>
import functools

import jax
import jax.numpy as jnp
import numpy as np
from jax import lax
from jax.experimental import pallas as pl
from jax.experimental.pallas import tpu as pltpu


_STRIDES = (2, 1, 2, 1, 2)      # conv strides of the ConvEncoder


# --------------------------------------------------------------------------
# Host-side constant construction (done once, outside the forward pass)
# --------------------------------------------------------------------------

def _conv_layer_constants(weight_oihw, bias, hin, win, stride, bb, compute_dtype):
    """Fold a 3x3 / pad-1 / stride-s conv into matmul constants.

    Returns (A, P, b_tiled, (ho, wo, cout)) with
      A: (3, win*cin, wo*cout)   kx taps, width-stride and width-padding folded
                                 together with the conv weights.
      P: (3, bb*ho, bb*hin)      0/1 row selection, block-diagonal over the bb
                                 stacked images; ky tap / height-stride /
                                 height-padding folded in.
      b_tiled: (1, wo*cout)      bias tiled along the output width.
    For the bb-stacked channels-last input X (bb*hin, win*cin):
      conv_out = sum_ky (P[ky] @ X) @ A[ky] + b_tiled      # (bb*ho, wo*cout)
    """
    w = np.asarray(weight_oihw, np.float32)
    b = np.asarray(bias, np.float32)
    cout, cin, kh, kw = w.shape
    ho = (hin + 2 - kh) // stride + 1
    wo = (win + 2 - kw) // stride + 1
    wk = np.transpose(w, (2, 3, 1, 0))              # (ky, kx, cin, cout)

    a = np.zeros((kh, win * cin, wo * cout), np.float32)
    for ky in range(kh):
        for kx in range(kw):
            for xo in range(wo):
                wi = stride * xo + kx - 1           # input column (pad = 1)
                if 0 <= wi < win:
                    a[ky, wi * cin:(wi + 1) * cin,
                      xo * cout:(xo + 1) * cout] += wk[ky, kx]

    p = np.zeros((kh, bb * ho, bb * hin), np.float32)
    for ky in range(kh):
        for bi in range(bb):
            for yo in range(ho):
                hi = stride * yo + ky - 1           # input row (pad = 1)
                if 0 <= hi < hin:
                    p[ky, bi * ho + yo, bi * hin + hi] = 1.0

    b_tiled = np.tile(b, wo).reshape(1, wo * cout)
    return (jnp.asarray(a, compute_dtype),
            jnp.asarray(p, compute_dtype),
            jnp.asarray(b_tiled, jnp.float32),
            (ho, wo, cout))


def prepare_encoder_constants(conv_params, lin_params, *, image_hw=(28, 28),
                              num_input_channels=1, batch_tile=8,
                              compute_dtype=jnp.bfloat16):
    """Precompute all kernel-resident constants (once, not per forward)."""
    bb = int(batch_tile)
    assert bb % 8 == 0, "batch_tile must be a multiple of 8 (sublane tiling)"
    h, w = image_hw
    cin = num_input_channels

    layers = []
    for (wgt, bconv), s in zip(conv_params, _STRIDES):
        a, p, bt, (ho, wo, cout) = _conv_layer_constants(
            wgt, bconv, h, w, s, bb, compute_dtype)
        layers.append((a, p, bt))
        h, w, cin = ho, wo, cout

    lw, lb = lin_params
    z_dim = int(lw.shape[0])
    assert int(lw.shape[1]) == h * w * cin, "Linear in_features mismatch"
    z_pad = ((max(z_dim, 1) + 127) // 128) * 128    # lane-dense output store

    # nn.Flatten is NCHW: lw column index = co*(h*w) + yo*w + xo.  Our final
    # activation is channels-last (bb*h, w*cout); fold the permutation and the
    # transpose into one constant of shape (h, w*cout, z_pad), zero-padded.
    lw_r = np.asarray(lw, np.float32).reshape(z_dim, cin, h, w)
    lwt = np.transpose(lw_r, (2, 3, 1, 0)).reshape(h, w * cin, z_dim)
    lwt_p = np.zeros((h, w * cin, z_pad), np.float32)
    lwt_p[..., :z_dim] = lwt
    lb_p = np.zeros((1, z_pad), np.float32)
    lb_p[0, :z_dim] = np.asarray(lb, np.float32)

    # S[yo, b, b*h + yo] = 1 : picks row yo of every stacked image (M = bb).
    sel = np.zeros((h, bb, bb * h), np.float32)
    for yo in range(h):
        for bi in range(bb):
            sel[yo, bi, bi * h + yo] = 1.0

    return {"layers": layers,
            "lin_sel": jnp.asarray(sel, compute_dtype),
            "lwt": jnp.asarray(lwt_p, compute_dtype),
            "lb": jnp.asarray(lb_p, jnp.float32),
            "bb": bb, "z_dim": z_dim, "z_pad": z_pad,
            "num_input_channels": num_input_channels,
            "image_hw": tuple(image_hw)}


# --------------------------------------------------------------------------
# Fused Pallas kernel: one grid step == bb images, everything stays in VMEM
# --------------------------------------------------------------------------

def _fused_encoder_kernel(x_ref, *args, strides):
    """args = (A1,P1,b1, ..., A5,P5,b5, S, LWt, lb, o_ref)."""
    nl = len(strides)
    o_ref = args[-1]
    sel_ref = args[3 * nl]
    lwt_ref = args[3 * nl + 1]
    lb_ref = args[3 * nl + 2]
    cdt = lwt_ref.dtype

    # Fused input normalization: x / 15 * 2 - 1 ; one cast per layer (VPU).
    hc = (x_ref[...].astype(jnp.float32) * (2.0 / 15.0) - 1.0).astype(cdt)

    for l, s in enumerate(strides):
        a_ref, p_ref, b_ref = args[3 * l], args[3 * l + 1], args[3 * l + 2]
        acc = None
        for ky in range(3):
            if s == 1 and ky == 1:
                xk = hc          # P is the identity for the center tap
            else:
                # 0/1 row selection (exact in bf16), applied BEFORE A so the
                # expensive matmul runs at M = bb*ho.
                xk = jnp.dot(p_ref[ky], hc,
                             preferred_element_type=jnp.float32).astype(cdt)
            d = jnp.dot(xk, a_ref[ky], preferred_element_type=jnp.float32)
            acc = d if acc is None else acc + d
        hc = jnp.maximum(acc + b_ref[...], 0.0).astype(cdt)   # (bb*ho, wo*cout)

    # Final linear; NCHW flatten order already folded into lwt.  M = bb.
    hl = lwt_ref.shape[0]
    z = None
    for yo in range(hl):
        rows = jnp.dot(sel_ref[yo], hc,
                       preferred_element_type=jnp.float32).astype(cdt)  # (bb, w*c)
        d = jnp.dot(rows, lwt_ref[yo], preferred_element_type=jnp.float32)
        z = d if z is None else z + d
    o_ref[...] = z + lb_ref[...]                              # (bb, z_pad)


def conv_encoder_forward(x_nchw, consts):
    """Fused ConvEncoder forward. x_nchw: [B, C, H, W] -> [B, z_dim]."""
    B, C, H, W = x_nchw.shape
    assert (H, W) == consts["image_hw"]
    assert C == consts["num_input_channels"]
    bb = consts["bb"]
    z_pad = consts["z_pad"]
    z_dim = consts["z_dim"]

    Bp = ((B + bb - 1) // bb) * bb
    x = x_nchw.astype(jnp.float32)
    if Bp != B:
        x = jnp.pad(x, ((0, Bp - B), (0, 0), (0, 0), (0, 0)))
    # Stacked channels-last rows: image b occupies rows [b*H, (b+1)*H).
    x2d = jnp.transpose(x, (0, 2, 3, 1)).reshape(Bp * H, W * C)

    const_arrays = []
    for (a, p, bt) in consts["layers"]:
        const_arrays += [a, p, bt]
    const_arrays += [consts["lin_sel"], consts["lwt"], consts["lb"]]

    def resident(arr):   # constant block index -> stays in VMEM across the grid
        nd = arr.ndim
        return pl.BlockSpec(arr.shape, lambda i, _nd=nd: (0,) * _nd)

    in_specs = [pl.BlockSpec((bb * H, W * C), lambda i: (i, 0))]
    in_specs += [resident(a) for a in const_arrays]
    out_specs = pl.BlockSpec((bb, z_pad), lambda i: (i, 0))

    # Advisory cost estimate for XLA's scheduler.
    flops = 0
    for (a, p, bt), s in zip(consts["layers"], _STRIDES):
        kh, kin, nout = a.shape
        rout, rin = p.shape[1], p.shape[2]
        taps = 3 if s == 2 else 2                 # identity tap is skipped
        flops += taps * 2 * rout * rin * kin + 3 * 2 * rout * kin * nout
    hl, wc, zp = consts["lwt"].shape
    rlast = consts["lin_sel"].shape[2]
    flops += hl * (2 * bb * rlast * wc + 2 * bb * wc * zp)
    nsteps = Bp // bb
    bytes_accessed = int(x2d.size * 4 + Bp * z_pad * 4 +
                         sum(int(np.prod(c.shape)) * c.dtype.itemsize
                             for c in const_arrays))

    out = pl.pallas_call(
        functools.partial(_fused_encoder_kernel, strides=_STRIDES),
        out_shape=jax.ShapeDtypeStruct((Bp, z_pad), jnp.float32),
        grid=(nsteps,),
        in_specs=in_specs,
        out_specs=out_specs,
        compiler_params=pltpu.CompilerParams(
            dimension_semantics=("parallel",),
            vmem_limit_bytes=32 * 1024 * 1024),
        cost_estimate=pl.CostEstimate(flops=nsteps * flops, transcendentals=0,
                                      bytes_accessed=bytes_accessed),
    )(x2d, *const_arrays)
    return out[:B, :z_dim]


# --------------------------------------------------------------------------
# Parameter init (PyTorch-default-style) and pure-JAX reference
# --------------------------------------------------------------------------

def init_params(key, num_input_channels=1, c_hid=32, z_dim=20):
    conv_shapes = [
        (c_hid, num_input_channels, 3, 3),       # stride 2
        (c_hid, c_hid, 3, 3),                    # stride 1
        (2 * c_hid, c_hid, 3, 3),                # stride 2
        (2 * c_hid, 2 * c_hid, 3, 3),            # stride 1
        (2 * c_hid, 2 * c_hid, 3, 3),            # stride 2
    ]
    conv_params = []
    for shp in conv_shapes:
        key, k1, k2 = jax.random.split(key, 3)
        fan_in = shp[1] * shp[2] * shp[3]
        bound = 1.0 / np.sqrt(fan_in)
        wgt = jax.random.uniform(k1, shp, jnp.float32, -bound, bound)
        b = jax.random.uniform(k2, (shp[0],), jnp.float32, -bound, bound)
        conv_params.append((wgt, b))
    key, k1, k2 = jax.random.split(key, 3)
    lin_in = 2 * 16 * c_hid
    bound = 1.0 / np.sqrt(lin_in)
    lw = jax.random.uniform(k1, (z_dim, lin_in), jnp.float32, -bound, bound)
    lb = jax.random.uniform(k2, (z_dim,), jnp.float32, -bound, bound)
    return conv_params, (lw, lb)


def reference_forward(x, conv_params, lin_params):
    """Pure-JAX reference matching the PyTorch forward."""
    h = x.astype(jnp.float32) / 15.0 * 2.0 - 1.0
    for (w, b), s in zip(conv_params, _STRIDES):
        h = lax.conv_general_dilated(
            h, w, window_strides=(s, s), padding=((1, 1), (1, 1)),
            dimension_numbers=("NCHW", "OIHW", "NCHW"))
        h = jnp.maximum(h + b.reshape(1, -1, 1, 1), 0.0)
    flat = h.reshape(h.shape[0], -1)
    lw, lb = lin_params
    return flat @ lw.T + lb


if __name__ == "__main__":
    # Architecture requires 28x28 so the flattened size equals 2*16*c_hid.
    # B=16, bb=8 -> grid length 2 (even, so both v7x TensorCores are used).
    B, C, H, W = 16, 1, 28, 28
    c_hid, z_dim, bb = 8, 10, 8

    key = jax.random.PRNGKey(0)
    key, kx, kp = jax.random.split(key, 3)
    # 4-bit-style pixel values in [0, 15], as implied by the x/15 normalization.
    x = jax.random.randint(kx, (B, C, H, W), 0, 16).astype(jnp.float32)

    conv_params, lin_params = init_params(kp, num_input_channels=C,
                                          c_hid=c_hid, z_dim=z_dim)
    z_ref = jax.block_until_ready(reference_forward(x, conv_params, lin_params))

    # Strict check of the fused kernel with f32 MXU operands throughout.
    consts_f32 = prepare_encoder_constants(
        conv_params, lin_params, image_hw=(H, W), num_input_channels=C,
        batch_tile=bb, compute_dtype=jnp.float32)
    z32 = jax.block_until_ready(conv_encoder_forward(x, consts_f32))
    assert z32.shape == (B, z_dim)
    np.testing.assert_allclose(np.asarray(z32), np.asarray(z_ref),
                               rtol=1e-3, atol=2e-4)

    # Production path: bf16 MXU operands, f32 accumulation (looser tolerance).
    consts_bf16 = prepare_encoder_constants(
        conv_params, lin_params, image_hw=(H, W), num_input_channels=C,
        batch_tile=bb, compute_dtype=jnp.bfloat16)
    zbf = jax.block_until_ready(conv_encoder_forward(x, consts_bf16))
    assert zbf.shape == (B, z_dim)
    np.testing.assert_allclose(np.asarray(zbf), np.asarray(z_ref),
                               rtol=5e-2, atol=2e-2)

    print("KERNEL_OK")
</pallas_src>

<mosaic_0001>
module attributes {stable_mosaic.version = 11 : i64} {
  func.func @_fused_encoder_kernel(%arg0: i32, %arg1: memref<224x28xf32, #tpu.memory_space<vmem>>, %arg2: memref<3x28x112xf32, #tpu.memory_space<vmem>>, %arg3: memref<3x112x224xf32, #tpu.memory_space<vmem>>, %arg4: memref<1x112xf32, #tpu.memory_space<vmem>>, %arg5: memref<3x112x112xf32, #tpu.memory_space<vmem>>, %arg6: memref<3x112x112xf32, #tpu.memory_space<vmem>>, %arg7: memref<1x112xf32, #tpu.memory_space<vmem>>, %arg8: memref<3x112x112xf32, #tpu.memory_space<vmem>>, %arg9: memref<3x56x112xf32, #tpu.memory_space<vmem>>, %arg10: memref<1x112xf32, #tpu.memory_space<vmem>>, %arg11: memref<3x112x112xf32, #tpu.memory_space<vmem>>, %arg12: memref<3x56x56xf32, #tpu.memory_space<vmem>>, %arg13: memref<1x112xf32, #tpu.memory_space<vmem>>, %arg14: memref<3x112x64xf32, #tpu.memory_space<vmem>>, %arg15: memref<3x32x56xf32, #tpu.memory_space<vmem>>, %arg16: memref<1x64xf32, #tpu.memory_space<vmem>>, %arg17: memref<4x8x32xf32, #tpu.memory_space<vmem>>, %arg18: memref<4x64x128xf32, #tpu.memory_space<vmem>>, %arg19: memref<1x128xf32, #tpu.memory_space<vmem>>, %arg20: memref<8x128xf32, #tpu.memory_space<vmem>>) attributes {dimension_semantics = [#tpu.dimension_semantics<parallel>], iteration_bounds = array<i64: 2>, scalar_prefetch = 0 : i64, scratch_operands = 0 : i64, tpu.core_type = #tpu.core_type<tc>, window_params = [{transform_indices = @transform_0, window_bounds = array<i64: 224, 28>}, {pipeline_mode = #tpu.pipeline_mode<synchronous>, transform_indices = @transform_1, window_bounds = array<i64: 3, 28, 112>}, {pipeline_mode = #tpu.pipeline_mode<synchronous>, transform_indices = @transform_2, window_bounds = array<i64: 3, 112, 224>}, {pipeline_mode = #tpu.pipeline_mode<synchronous>, transform_indices = @transform_3, window_bounds = array<i64: 1, 112>}, {pipeline_mode = #tpu.pipeline_mode<synchronous>, transform_indices = @transform_4, window_bounds = array<i64: 3, 112, 112>}, {pipeline_mode = #tpu.pipeline_mode<synchronous>, transform_indices = @transform_5, window_bounds = array<i64: 3, 112, 112>}, {pipeline_mode = #tpu.pipeline_mode<synchronous>, transform_indices = @transform_6, window_bounds = array<i64: 1, 112>}, {pipeline_mode = #tpu.pipeline_mode<synchronous>, transform_indices = @transform_7, window_bounds = array<i64: 3, 112, 112>}, {pipeline_mode = #tpu.pipeline_mode<synchronous>, transform_indices = @transform_8, window_bounds = array<i64: 3, 56, 112>}, {pipeline_mode = #tpu.pipeline_mode<synchronous>, transform_indices = @transform_9, window_bounds = array<i64: 1, 112>}, {pipeline_mode = #tpu.pipeline_mode<synchronous>, transform_indices = @transform_10, window_bounds = array<i64: 3, 112, 112>}, {pipeline_mode = #tpu.pipeline_mode<synchronous>, transform_indices = @transform_11, window_bounds = array<i64: 3, 56, 56>}, {pipeline_mode = #tpu.pipeline_mode<synchronous>, transform_indices = @transform_12, window_bounds = array<i64: 1, 112>}, {pipeline_mode = #tpu.pipeline_mode<synchronous>, transform_indices = @transform_13, window_bounds = array<i64: 3, 112, 64>}, {pipeline_mode = #tpu.pipeline_mode<synchronous>, transform_indices = @transform_14, window_bounds = array<i64: 3, 32, 56>}, {pipeline_mode = #tpu.pipeline_mode<synchronous>, transform_indices = @transform_15, window_bounds = array<i64: 1, 64>}, {pipeline_mode = #tpu.pipeline_mode<synchronous>, transform_indices = @transform_16, window_bounds = array<i64: 4, 8, 32>}, {pipeline_mode = #tpu.pipeline_mode<synchronous>, transform_indices = @transform_17, window_bounds = array<i64: 4, 64, 128>}, {pipeline_mode = #tpu.pipeline_mode<synchronous>, transform_indices = @transform_18, window_bounds = array<i64: 1, 128>}, {transform_indices = @transform_19, window_bounds = array<i64: 8, 128>}]} {
    %c0 = arith.constant 0 : index
    %c0_0 = arith.constant 0 : index
    %0 = vector.load %arg1[%c0, %c0_0] : memref<224x28xf32, #tpu.memory_space<vmem>>, vector<224x28xf32>
    %cst = arith.constant 0.13333334 : f32
    %1 = vector.broadcast %cst : f32 to vector<224x28xf32>
    %2 = arith.mulf %0, %1 : vector<224x28xf32>
    %cst_1 = arith.constant 1.000000e+00 : f32
    %3 = vector.broadcast %cst_1 : f32 to vector<224x28xf32>
    %4 = arith.subf %2, %3 : vector<224x28xf32>
    %c0_2 = arith.constant 0 : index
    %c0_3 = arith.constant 0 : index
    %c0_4 = arith.constant 0 : index
    %5 = vector.load %arg3[%c0_2, %c0_3, %c0_4] : memref<3x112x224xf32, #tpu.memory_space<vmem>>, vector<1x112x224xf32>
    %6 = vector.shape_cast %5 : vector<1x112x224xf32> to vector<112x224xf32>
    %cst_5 = arith.constant dense<0.000000e+00> : vector<112x28xf32>
    %7 = tpu.matmul %6, %4, %cst_5 {dimension_numbers = #tpu.dot_dimension_numbers<[1], [0], [0], [1], [0, 0, 1, 1], [], []>} : vector<112x224xf32>, vector<224x28xf32>, vector<112x28xf32> -> vector<112x28xf32>
    %c0_6 = arith.constant 0 : index
    %c0_7 = arith.constant 0 : index
    %c0_8 = arith.constant 0 : index
    %8 = vector.load %arg2[%c0_6, %c0_7, %c0_8] : memref<3x28x112xf32, #tpu.memory_space<vmem>>, vector<1x28x112xf32>
    %9 = vector.shape_cast %8 : vector<1x28x112xf32> to vector<28x112xf32>
    %cst_9 = arith.constant dense<0.000000e+00> : vector<112x112xf32>
    %10 = tpu.matmul %7, %9, %cst_9 {dimension_numbers = #tpu.dot_dimension_numbers<[1], [0], [0], [1], [0, 0, 1, 1], [], []>} : vector<112x28xf32>, vector<28x112xf32>, vector<112x112xf32> -> vector<112x112xf32>
    %c1 = arith.constant 1 : index
    %c0_10 = arith.constant 0 : index
    %c0_11 = arith.constant 0 : index
    %11 = vector.load %arg3[%c1, %c0_10, %c0_11] : memref<3x112x224xf32, #tpu.memory_space<vmem>>, vector<1x112x224xf32>
    %12 = vector.shape_cast %11 : vector<1x112x224xf32> to vector<112x224xf32>
    %cst_12 = arith.constant dense<0.000000e+00> : vector<112x28xf32>
    %13 = tpu.matmul %12, %4, %cst_12 {dimension_numbers = #tpu.dot_dimension_numbers<[1], [0], [0], [1], [0, 0, 1, 1], [], []>} : vector<112x224xf32>, vector<224x28xf32>, vector<112x28xf32> -> vector<112x28xf32>
    %c1_13 = arith.constant 1 : index
    %c0_14 = arith.constant 0 : index
    %c0_15 = arith.constant 0 : index
    %14 = vector.load %arg2[%c1_13, %c0_14, %c0_15] : memref<3x28x112xf32, #tpu.memory_space<vmem>>, vector<1x28x112xf32>
    %15 = vector.shape_cast %14 : vector<1x28x112xf32> to vector<28x112xf32>
    %cst_16 = arith.constant dense<0.000000e+00> : vector<112x112xf32>
    %16 = tpu.matmul %13, %15, %cst_16 {dimension_numbers = #tpu.dot_dimension_numbers<[1], [0], [0], [1], [0, 0, 1, 1], [], []>} : vector<112x28xf32>, vector<28x112xf32>, vector<112x112xf32> -> vector<112x112xf32>
    %17 = arith.addf %10, %16 : vector<112x112xf32>
    %c2 = arith.constant 2 : index
    %c0_17 = arith.constant 0 : index
    %c0_18 = arith.constant 0 : index
    %18 = vector.load %arg3[%c2, %c0_17, %c0_18] : memref<3x112x224xf32, #tpu.memory_space<vmem>>, vector<1x112x224xf32>
    %19 = vector.shape_cast %18 : vector<1x112x224xf32> to vector<112x224xf32>
    %cst_19 = arith.constant dense<0.000000e+00> : vector<112x28xf32>
    %20 = tpu.matmul %19, %4, %cst_19 {dimension_numbers = #tpu.dot_dimension_numbers<[1], [0], [0], [1], [0, 0, 1, 1], [], []>} : vector<112x224xf32>, vector<224x28xf32>, vector<112x28xf32> -> vector<112x28xf32>
    %c2_20 = arith.constant 2 : index
    %c0_21 = arith.constant 0 : index
    %c0_22 = arith.constant 0 : index
    %21 = vector.load %arg2[%c2_20, %c0_21, %c0_22] : memref<3x28x112xf32, #tpu.memory_space<vmem>>, vector<1x28x112xf32>
    %22 = vector.shape_cast %21 : vector<1x28x112xf32> to vector<28x112xf32>
    %cst_23 = arith.constant dense<0.000000e+00> : vector<112x112xf32>
    %23 = tpu.matmul %20, %22, %cst_23 {dimension_numbers = #tpu.dot_dimension_numbers<[1], [0], [0], [1], [0, 0, 1, 1], [], []>} : vector<112x28xf32>, vector<28x112xf32>, vector<112x112xf32> -> vector<112x112xf32>
    %24 = arith.addf %17, %23 : vector<112x112xf32>
    %c0_24 = arith.constant 0 : index
    %c0_25 = arith.constant 0 : index
    %25 = vector.load %arg4[%c0_24, %c0_25] : memref<1x112xf32, #tpu.memory_space<vmem>>, vector<1x112xf32>
    %26 = vector.broadcast %25 : vector<1x112xf32> to vector<112x112xf32>
    %27 = arith.addf %24, %26 : vector<112x112xf32>
    %cst_26 = arith.constant 0.000000e+00 : f32
    %28 = vector.broadcast %cst_26 : f32 to vector<112x112xf32>
    %29 = arith.maximumf %27, %28 : vector<112x112xf32>
    %c0_27 = arith.constant 0 : index
    %c0_28 = arith.constant 0 : index
    %c0_29 = arith.constant 0 : index
    %30 = vector.load %arg6[%c0_27, %c0_28, %c0_29] : memref<3x112x112xf32, #tpu.memory_space<vmem>>, vector<1x112x112xf32>
    %31 = vector.shape_cast %30 : vector<1x112x112xf32> to vector<112x112xf32>
    %cst_30 = arith.constant dense<0.000000e+00> : vector<112x112xf32>
    %32 = tpu.matmul %31, %29, %cst_30 {dimension_numbers = #tpu.dot_dimension_numbers<[1], [0], [0], [1], [0, 0, 1, 1], [], []>} : vector<112x112xf32>, vector<112x112xf32>, vector<112x112xf32> -> vector<112x112xf32>
    %c0_31 = arith.constant 0 : index
    %c0_32 = arith.constant 0 : index
    %c0_33 = arith.constant 0 : index
    %33 = vector.load %arg5[%c0_31, %c0_32, %c0_33] : memref<3x112x112xf32, #tpu.memory_space<vmem>>, vector<1x112x112xf32>
    %34 = vector.shape_cast %33 : vector<1x112x112xf32> to vector<112x112xf32>
    %cst_34 = arith.constant dense<0.000000e+00> : vector<112x112xf32>
    %35 = tpu.matmul %32, %34, %cst_34 {dimension_numbers = #tpu.dot_dimension_numbers<[1], [0], [0], [1], [0, 0, 1, 1], [], []>} : vector<112x112xf32>, vector<112x112xf32>, vector<112x112xf32> -> vector<112x112xf32>
    %c1_35 = arith.constant 1 : index
    %c0_36 = arith.constant 0 : index
    %c0_37 = arith.constant 0 : index
    %36 = vector.load %arg5[%c1_35, %c0_36, %c0_37] : memref<3x112x112xf32, #tpu.memory_space<vmem>>, vector<1x112x112xf32>
    %37 = vector.shape_cast %36 : vector<1x112x112xf32> to vector<112x112xf32>
    %cst_38 = arith.constant dense<0.000000e+00> : vector<112x112xf32>
    %38 = tpu.matmul %29, %37, %cst_38 {dimension_numbers = #tpu.dot_dimension_numbers<[1], [0], [0], [1], [0, 0, 1, 1], [], []>} : vector<112x112xf32>, vector<112x112xf32>, vector<112x112xf32> -> vector<112x112xf32>
    %39 = arith.addf %35, %38 : vector<112x112xf32>
    %c2_39 = arith.constant 2 : index
    %c0_40 = arith.constant 0 : index
    %c0_41 = arith.constant 0 : index
    %40 = vector.load %arg6[%c2_39, %c0_40, %c0_41] : memref<3x112x112xf32, #tpu.memory_space<vmem>>, vector<1x112x112xf32>
    %41 = vector.shape_cast %40 : vector<1x112x112xf32> to vector<112x112xf32>
    %cst_42 = arith.constant dense<0.000000e+00> : vector<112x112xf32>
    %42 = tpu.matmul %41, %29, %cst_42 {dimension_numbers = #tpu.dot_dimension_numbers<[1], [0], [0], [1], [0, 0, 1, 1], [], []>} : vector<112x112xf32>, vector<112x112xf32>, vector<112x112xf32> -> vector<112x112xf32>
    %c2_43 = arith.constant 2 : index
    %c0_44 = arith.constant 0 : index
    %c0_45 = arith.constant 0 : index
    %43 = vector.load %arg5[%c2_43, %c0_44, %c0_45] : memref<3x112x112xf32, #tpu.memory_space<vmem>>, vector<1x112x112xf32>
    %44 = vector.shape_cast %43 : vector<1x112x112xf32> to vector<112x112xf32>
    %cst_46 = arith.constant dense<0.000000e+00> : vector<112x112xf32>
    %45 = tpu.matmul %42, %44, %cst_46 {dimension_numbers = #tpu.dot_dimension_numbers<[1], [0], [0], [1], [0, 0, 1, 1], [], []>} : vector<112x112xf32>, vector<112x112xf32>, vector<112x112xf32> -> vector<112x112xf32>
    %46 = arith.addf %39, %45 : vector<112x112xf32>
    %c0_47 = arith.constant 0 : index
    %c0_48 = arith.constant 0 : index
    %47 = vector.load %arg7[%c0_47, %c0_48] : memref<1x112xf32, #tpu.memory_space<vmem>>, vector<1x112xf32>
    %48 = vector.broadcast %47 : vector<1x112xf32> to vector<112x112xf32>
    %49 = arith.addf %46, %48 : vector<112x112xf32>
    %cst_49 = arith.constant 0.000000e+00 : f32
    %50 = vector.broadcast %cst_49 : f32 to vector<112x112xf32>
    %51 = arith.maximumf %49, %50 : vector<112x112xf32>
    %c0_50 = arith.constant 0 : index
    %c0_51 = arith.constant 0 : index
    %c0_52 = arith.constant 0 : index
    %52 = vector.load %arg9[%c0_50, %c0_51, %c0_52] : memref<3x56x112xf32, #tpu.memory_space<vmem>>, vector<1x56x112xf32>
    %53 = vector.shape_cast %52 : vector<1x56x112xf32> to vector<56x112xf32>
    %cst_53 = arith.constant dense<0.000000e+00> : vector<56x112xf32>
    %54 = tpu.matmul %53, %51, %cst_53 {dimension_numbers = #tpu.dot_dimension_numbers<[1], [0], [0], [1], [0, 0, 1, 1], [], []>} : vector<56x112xf32>, vector<112x112xf32>, vector<56x112xf32> -> vector<56x112xf32>
    %c0_54 = arith.constant 0 : index
    %c0_55 = arith.constant 0 : index
    %c0_56 = arith.constant 0 : index
    %55 = vector.load %arg8[%c0_54, %c0_55, %c0_56] : memref<3x112x112xf32, #tpu.memory_space<vmem>>, vector<1x112x112xf32>
    %56 = vector.shape_cast %55 : vector<1x112x112xf32> to vector<112x112xf32>
    %cst_57 = arith.constant dense<0.000000e+00> : vector<56x112xf32>
    %57 = tpu.matmul %54, %56, %cst_57 {dimension_numbers = #tpu.dot_dimension_numbers<[1], [0], [0], [1], [0, 0, 1, 1], [], []>} : vector<56x112xf32>, vector<112x112xf32>, vector<56x112xf32> -> vector<56x112xf32>
    %c1_58 = arith.constant 1 : index
    %c0_59 = arith.constant 0 : index
    %c0_60 = arith.constant 0 : index
    %58 = vector.load %arg9[%c1_58, %c0_59, %c0_60] : memref<3x56x112xf32, #tpu.memory_space<vmem>>, vector<1x56x112xf32>
    %59 = vector.shape_cast %58 : vector<1x56x112xf32> to vector<56x112xf32>
    %cst_61 = arith.constant dense<0.000000e+00> : vector<56x112xf32>
    %60 = tpu.matmul %59, %51, %cst_61 {dimension_numbers = #tpu.dot_dimension_numbers<[1], [0], [0], [1], [0, 0, 1, 1], [], []>} : vector<56x112xf32>, vector<112x112xf32>, vector<56x112xf32> -> vector<56x112xf32>
    %c1_62 = arith.constant 1 : index
    %c0_63 = arith.constant 0 : index
    %c0_64 = arith.constant 0 : index
    %61 = vector.load %arg8[%c1_62, %c0_63, %c0_64] : memref<3x112x112xf32, #tpu.memory_space<vmem>>, vector<1x112x112xf32>
    %62 = vector.shape_cast %61 : vector<1x112x112xf32> to vector<112x112xf32>
    %cst_65 = arith.constant dense<0.000000e+00> : vector<56x112xf32>
    %63 = tpu.matmul %60, %62, %cst_65 {dimension_numbers = #tpu.dot_dimension_numbers<[1], [0], [0], [1], [0, 0, 1, 1], [], []>} : vector<56x112xf32>, vector<112x112xf32>, vector<56x112xf32> -> vector<56x112xf32>
    %64 = arith.addf %57, %63 : vector<56x112xf32>
    %c2_66 = arith.constant 2 : index
    %c0_67 = arith.constant 0 : index
    %c0_68 = arith.constant 0 : index
    %65 = vector.load %arg9[%c2_66, %c0_67, %c0_68] : memref<3x56x112xf32, #tpu.memory_space<vmem>>, vector<1x56x112xf32>
    %66 = vector.shape_cast %65 : vector<1x56x112xf32> to vector<56x112xf32>
    %cst_69 = arith.constant dense<0.000000e+00> : vector<56x112xf32>
    %67 = tpu.matmul %66, %51, %cst_69 {dimension_numbers = #tpu.dot_dimension_numbers<[1], [0], [0], [1], [0, 0, 1, 1], [], []>} : vector<56x112xf32>, vector<112x112xf32>, vector<56x112xf32> -> vector<56x112xf32>
    %c2_70 = arith.constant 2 : index
    %c0_71 = arith.constant 0 : index
    %c0_72 = arith.constant 0 : index
    %68 = vector.load %arg8[%c2_70, %c0_71, %c0_72] : memref<3x112x112xf32, #tpu.memory_space<vmem>>, vector<1x112x112xf32>
    %69 = vector.shape_cast %68 : vector<1x112x112xf32> to vector<112x112xf32>
    %cst_73 = arith.constant dense<0.000000e+00> : vector<56x112xf32>
    %70 = tpu.matmul %67, %69, %cst_73 {dimension_numbers = #tpu.dot_dimension_numbers<[1], [0], [0], [1], [0, 0, 1, 1], [], []>} : vector<56x112xf32>, vector<112x112xf32>, vector<56x112xf32> -> vector<56x112xf32>
    %71 = arith.addf %64, %70 : vector<56x112xf32>
    %c0_74 = arith.constant 0 : index
    %c0_75 = arith.constant 0 : index
    %72 = vector.load %arg10[%c0_74, %c0_75] : memref<1x112xf32, #tpu.memory_space<vmem>>, vector<1x112xf32>
    %73 = vector.broadcast %72 : vector<1x112xf32> to vector<56x112xf32>
    %74 = arith.addf %71, %73 : vector<56x112xf32>
    %cst_76 = arith.constant 0.000000e+00 : f32
    %75 = vector.broadcast %cst_76 : f32 to vector<56x112xf32>
    %76 = arith.maximumf %74, %75 : vector<56x112xf32>
    %c0_77 = arith.constant 0 : index
    %c0_78 = arith.constant 0 : index
    %c0_79 = arith.constant 0 : index
    %77 = vector.load %arg12[%c0_77, %c0_78, %c0_79] : memref<3x56x56xf32, #tpu.memory_space<vmem>>, vector<1x56x56xf32>
    %78 = vector.shape_cast %77 : vector<1x56x56xf32> to vector<56x56xf32>
    %cst_80 = arith.constant dense<0.000000e+00> : vector<56x112xf32>
    %79 = tpu.matmul %78, %76, %cst_80 {dimension_numbers = #tpu.dot_dimension_numbers<[1], [0], [0], [1], [0, 0, 1, 1], [], []>} : vector<56x56xf32>, vector<56x112xf32>, vector<56x112xf32> -> vector<56x112xf32>
    %c0_81 = arith.constant 0 : index
    %c0_82 = arith.constant 0 : index
    %c0_83 = arith.constant 0 : index
    %80 = vector.load %arg11[%c0_81, %c0_82, %c0_83] : memref<3x112x112xf32, #tpu.memory_space<vmem>>, vector<1x112x112xf32>
    %81 = vector.shape_cast %80 : vector<1x112x112xf32> to vector<112x112xf32>
    %cst_84 = arith.constant dense<0.000000e+00> : vector<56x112xf32>
    %82 = tpu.matmul %79, %81, %cst_84 {dimension_numbers = #tpu.dot_dimension_numbers<[1], [0], [0], [1], [0, 0, 1, 1], [], []>} : vector<56x112xf32>, vector<112x112xf32>, vector<56x112xf32> -> vector<56x112xf32>
    %c1_85 = arith.constant 1 : index
    %c0_86 = arith.constant 0 : index
    %c0_87 = arith.constant 0 : index
    %83 = vector.load %arg11[%c1_85, %c0_86, %c0_87] : memref<3x112x112xf32, #tpu.memory_space<vmem>>, vector<1x112x112xf32>
    %84 = vector.shape_cast %83 : vector<1x112x112xf32> to vector<112x112xf32>
    %cst_88 = arith.constant dense<0.000000e+00> : vector<56x112xf32>
    %85 = tpu.matmul %76, %84, %cst_88 {dimension_numbers = #tpu.dot_dimension_numbers<[1], [0], [0], [1], [0, 0, 1, 1], [], []>} : vector<56x112xf32>, vector<112x112xf32>, vector<56x112xf32> -> vector<56x112xf32>
    %86 = arith.addf %82, %85 : vector<56x112xf32>
    %c2_89 = arith.constant 2 : index
    %c0_90 = arith.constant 0 : index
    %c0_91 = arith.constant 0 : index
    %87 = vector.load %arg12[%c2_89, %c0_90, %c0_91] : memref<3x56x56xf32, #tpu.memory_space<vmem>>, vector<1x56x56xf32>
    %88 = vector.shape_cast %87 : vector<1x56x56xf32> to vector<56x56xf32>
    %cst_92 = arith.constant dense<0.000000e+00> : vector<56x112xf32>
    %89 = tpu.matmul %88, %76, %cst_92 {dimension_numbers = #tpu.dot_dimension_numbers<[1], [0], [0], [1], [0, 0, 1, 1], [], []>} : vector<56x56xf32>, vector<56x112xf32>, vector<56x112xf32> -> vector<56x112xf32>
    %c2_93 = arith.constant 2 : index
    %c0_94 = arith.constant 0 : index
    %c0_95 = arith.constant 0 : index
    %90 = vector.load %arg11[%c2_93, %c0_94, %c0_95] : memref<3x112x112xf32, #tpu.memory_space<vmem>>, vector<1x112x112xf32>
    %91 = vector.shape_cast %90 : vector<1x112x112xf32> to vector<112x112xf32>
    %cst_96 = arith.constant dense<0.000000e+00> : vector<56x112xf32>
    %92 = tpu.matmul %89, %91, %cst_96 {dimension_numbers = #tpu.dot_dimension_numbers<[1], [0], [0], [1], [0, 0, 1, 1], [], []>} : vector<56x112xf32>, vector<112x112xf32>, vector<56x112xf32> -> vector<56x112xf32>
    %93 = arith.addf %86, %92 : vector<56x112xf32>
    %c0_97 = arith.constant 0 : index
    %c0_98 = arith.constant 0 : index
    %94 = vector.load %arg13[%c0_97, %c0_98] : memref<1x112xf32, #tpu.memory_space<vmem>>, vector<1x112xf32>
    %95 = vector.broadcast %94 : vector<1x112xf32> to vector<56x112xf32>
    %96 = arith.addf %93, %95 : vector<56x112xf32>
    %cst_99 = arith.constant 0.000000e+00 : f32
    %97 = vector.broadcast %cst_99 : f32 to vector<56x112xf32>
    %98 = arith.maximumf %96, %97 : vector<56x112xf32>
    %c0_100 = arith.constant 0 : index
    %c0_101 = arith.constant 0 : index
    %c0_102 = arith.constant 0 : index
    %99 = vector.load %arg15[%c0_100, %c0_101, %c0_102] : memref<3x32x56xf32, #tpu.memory_space<vmem>>, vector<1x32x56xf32>
    %100 = vector.shape_cast %99 : vector<1x32x56xf32> to vector<32x56xf32>
    %cst_103 = arith.constant dense<0.000000e+00> : vector<32x112xf32>
    %101 = tpu.matmul %100, %98, %cst_103 {dimension_numbers = #tpu.dot_dimension_numbers<[1], [0], [0], [1], [0, 0, 1, 1], [], []>} : vector<32x56xf32>, vector<56x112xf32>, vector<32x112xf32> -> vector<32x112xf32>
    %c0_104 = arith.constant 0 : index
    %c0_105 = arith.constant 0 : index
    %c0_106 = arith.constant 0 : index
    %102 = vector.load %arg14[%c0_104, %c0_105, %c0_106] : memref<3x112x64xf32, #tpu.memory_space<vmem>>, vector<1x112x64xf32>
    %103 = vector.shape_cast %102 : vector<1x112x64xf32> to vector<112x64xf32>
    %cst_107 = arith.constant dense<0.000000e+00> : vector<32x64xf32>
    %104 = tpu.matmul %101, %103, %cst_107 {dimension_numbers = #tpu.dot_dimension_numbers<[1], [0], [0], [1], [0, 0, 1, 1], [], []>} : vector<32x112xf32>, vector<112x64xf32>, vector<32x64xf32> -> vector<32x64xf32>
    %c1_108 = arith.constant 1 : index
    %c0_109 = arith.constant 0 : index
    %c0_110 = arith.constant 0 : index
    %105 = vector.load %arg15[%c1_108, %c0_109, %c0_110] : memref<3x32x56xf32, #tpu.memory_space<vmem>>, vector<1x32x56xf32>
    %106 = vector.shape_cast %105 : vector<1x32x56xf32> to vector<32x56xf32>
    %cst_111 = arith.constant dense<0.000000e+00> : vector<32x112xf32>
    %107 = tpu.matmul %106, %98, %cst_111 {dimension_numbers = #tpu.dot_dimension_numbers<[1], [0], [0], [1], [0, 0, 1, 1], [], []>} : vector<32x56xf32>, vector<56x112xf32>, vector<32x112xf32> -> vector<32x112xf32>
    %c1_112 = arith.constant 1 : index
    %c0_113 = arith.constant 0 : index
    %c0_114 = arith.constant 0 : index
    %108 = vector.load %arg14[%c1_112, %c0_113, %c0_114] : memref<3x112x64xf32, #tpu.memory_space<vmem>>, vector<1x112x64xf32>
    %109 = vector.shape_cast %108 : vector<1x112x64xf32> to vector<112x64xf32>
    %cst_115 = arith.constant dense<0.000000e+00> : vector<32x64xf32>
    %110 = tpu.matmul %107, %109, %cst_115 {dimension_numbers = #tpu.dot_dimension_numbers<[1], [0], [0], [1], [0, 0, 1, 1], [], []>} : vector<32x112xf32>, vector<112x64xf32>, vector<32x64xf32> -> vector<32x64xf32>
    %111 = arith.addf %104, %110 : vector<32x64xf32>
    %c2_116 = arith.constant 2 : index
    %c0_117 = arith.constant 0 : index
    %c0_118 = arith.constant 0 : index
    %112 = vector.load %arg15[%c2_116, %c0_117, %c0_118] : memref<3x32x56xf32, #tpu.memory_space<vmem>>, vector<1x32x56xf32>
    %113 = vector.shape_cast %112 : vector<1x32x56xf32> to vector<32x56xf32>
    %cst_119 = arith.constant dense<0.000000e+00> : vector<32x112xf32>
    %114 = tpu.matmul %113, %98, %cst_119 {dimension_numbers = #tpu.dot_dimension_numbers<[1], [0], [0], [1], [0, 0, 1, 1], [], []>} : vector<32x56xf32>, vector<56x112xf32>, vector<32x112xf32> -> vector<32x112xf32>
    %c2_120 = arith.constant 2 : index
    %c0_121 = arith.constant 0 : index
    %c0_122 = arith.constant 0 : index
    %115 = vector.load %arg14[%c2_120, %c0_121, %c0_122] : memref<3x112x64xf32, #tpu.memory_space<vmem>>, vector<1x112x64xf32>
    %116 = vector.shape_cast %115 : vector<1x112x64xf32> to vector<112x64xf32>
    %cst_123 = arith.constant dense<0.000000e+00> : vector<32x64xf32>
    %117 = tpu.matmul %114, %116, %cst_123 {dimension_numbers = #tpu.dot_dimension_numbers<[1], [0], [0], [1], [0, 0, 1, 1], [], []>} : vector<32x112xf32>, vector<112x64xf32>, vector<32x64xf32> -> vector<32x64xf32>
    %118 = arith.addf %111, %117 : vector<32x64xf32>
    %c0_124 = arith.constant 0 : index
    %c0_125 = arith.constant 0 : index
    %119 = vector.load %arg16[%c0_124, %c0_125] : memref<1x64xf32, #tpu.memory_space<vmem>>, vector<1x64xf32>
    %120 = vector.broadcast %119 : vector<1x64xf32> to vector<32x64xf32>
    %121 = arith.addf %118, %120 : vector<32x64xf32>
    %cst_126 = arith.constant 0.000000e+00 : f32
    %122 = vector.broadcast %cst_126 : f32 to vector<32x64xf32>
    %123 = arith.maximumf %121, %122 : vector<32x64xf32>
    %c0_127 = arith.constant 0 : index
    %c0_128 = arith.constant 0 : index
    %c0_129 = arith.constant 0 : index
    %124 = vector.load %arg17[%c0_127, %c0_128, %c0_129] : memref<4x8x32xf32, #tpu.memory_space<vmem>>, vector<1x8x32xf32>
    %125 = vector.shape_cast %124 : vector<1x8x32xf32> to vector<8x32xf32>
    %cst_130 = arith.constant dense<0.000000e+00> : vector<8x64xf32>
    %126 = tpu.matmul %125, %123, %cst_130 {dimension_numbers = #tpu.dot_dimension_numbers<[1], [0], [0], [1], [0, 0, 1, 1], [], []>} : vector<8x32xf32>, vector<32x64xf32>, vector<8x64xf32> -> vector<8x64xf32>
    %c0_131 = arith.constant 0 : index
    %c0_132 = arith.constant 0 : index
    %c0_133 = arith.constant 0 : index
    %127 = vector.load %arg18[%c0_131, %c0_132, %c0_133] : memref<4x64x128xf32, #tpu.memory_space<vmem>>, vector<1x64x128xf32>
    %128 = vector.shape_cast %127 : vector<1x64x128xf32> to vector<64x128xf32>
    %cst_134 = arith.constant dense<0.000000e+00> : vector<8x128xf32>
    %129 = tpu.matmul %126, %128, %cst_134 {dimension_numbers = #tpu.dot_dimension_numbers<[1], [0], [0], [1], [0, 0, 1, 1], [], []>} : vector<8x64xf32>, vector<64x128xf32>, vector<8x128xf32> -> vector<8x128xf32>
    %c1_135 = arith.constant 1 : index
    %c0_136 = arith.constant 0 : index
    %c0_137 = arith.constant 0 : index
    %130 = vector.load %arg17[%c1_135, %c0_136, %c0_137] : memref<4x8x32xf32, #tpu.memory_space<vmem>>, vector<1x8x32xf32>
    %131 = vector.shape_cast %130 : vector<1x8x32xf32> to vector<8x32xf32>
    %cst_138 = arith.constant dense<0.000000e+00> : vector<8x64xf32>
    %132 = tpu.matmul %131, %123, %cst_138 {dimension_numbers = #tpu.dot_dimension_numbers<[1], [0], [0], [1], [0, 0, 1, 1], [], []>} : vector<8x32xf32>, vector<32x64xf32>, vector<8x64xf32> -> vector<8x64xf32>
    %c1_139 = arith.constant 1 : index
    %c0_140 = arith.constant 0 : index
    %c0_141 = arith.constant 0 : index
    %133 = vector.load %arg18[%c1_139, %c0_140, %c0_141] : memref<4x64x128xf32, #tpu.memory_space<vmem>>, vector<1x64x128xf32>
    %134 = vector.shape_cast %133 : vector<1x64x128xf32> to vector<64x128xf32>
    %cst_142 = arith.constant dense<0.000000e+00> : vector<8x128xf32>
    %135 = tpu.matmul %132, %134, %cst_142 {dimension_numbers = #tpu.dot_dimension_numbers<[1], [0], [0], [1], [0, 0, 1, 1], [], []>} : vector<8x64xf32>, vector<64x128xf32>, vector<8x128xf32> -> vector<8x128xf32>
    %136 = arith.addf %129, %135 : vector<8x128xf32>
    %c2_143 = arith.constant 2 : index
    %c0_144 = arith.constant 0 : index
    %c0_145 = arith.constant 0 : index
    %137 = vector.load %arg17[%c2_143, %c0_144, %c0_145] : memref<4x8x32xf32, #tpu.memory_space<vmem>>, vector<1x8x32xf32>
    %138 = vector.shape_cast %137 : vector<1x8x32xf32> to vector<8x32xf32>
    %cst_146 = arith.constant dense<0.000000e+00> : vector<8x64xf32>
    %139 = tpu.matmul %138, %123, %cst_146 {dimension_numbers = #tpu.dot_dimension_numbers<[1], [0], [0], [1], [0, 0, 1, 1], [], []>} : vector<8x32xf32>, vector<32x64xf32>, vector<8x64xf32> -> vector<8x64xf32>
    %c2_147 = arith.constant 2 : index
    %c0_148 = arith.constant 0 : index
    %c0_149 = arith.constant 0 : index
    %140 = vector.load %arg18[%c2_147, %c0_148, %c0_149] : memref<4x64x128xf32, #tpu.memory_space<vmem>>, vector<1x64x128xf32>
    %141 = vector.shape_cast %140 : vector<1x64x128xf32> to vector<64x128xf32>
    %cst_150 = arith.constant dense<0.000000e+00> : vector<8x128xf32>
    %142 = tpu.matmul %139, %141, %cst_150 {dimension_numbers = #tpu.dot_dimension_numbers<[1], [0], [0], [1], [0, 0, 1, 1], [], []>} : vector<8x64xf32>, vector<64x128xf32>, vector<8x128xf32> -> vector<8x128xf32>
    %143 = arith.addf %136, %142 : vector<8x128xf32>
    %c3 = arith.constant 3 : index
    %c0_151 = arith.constant 0 : index
    %c0_152 = arith.constant 0 : index
    %144 = vector.load %arg17[%c3, %c0_151, %c0_152] : memref<4x8x32xf32, #tpu.memory_space<vmem>>, vector<1x8x32xf32>
    %145 = vector.shape_cast %144 : vector<1x8x32xf32> to vector<8x32xf32>
    %cst_153 = arith.constant dense<0.000000e+00> : vector<8x64xf32>
    %146 = tpu.matmul %145, %123, %cst_153 {dimension_numbers = #tpu.dot_dimension_numbers<[1], [0], [0], [1], [0, 0, 1, 1], [], []>} : vector<8x32xf32>, vector<32x64xf32>, vector<8x64xf32> -> vector<8x64xf32>
    %c3_154 = arith.constant 3 : index
    %c0_155 = arith.constant 0 : index
    %c0_156 = arith.constant 0 : index
    %147 = vector.load %arg18[%c3_154, %c0_155, %c0_156] : memref<4x64x128xf32, #tpu.memory_space<vmem>>, vector<1x64x128xf32>
    %148 = vector.shape_cast %147 : vector<1x64x128xf32> to vector<64x128xf32>
    %cst_157 = arith.constant dense<0.000000e+00> : vector<8x128xf32>
    %149 = tpu.matmul %146, %148, %cst_157 {dimension_numbers = #tpu.dot_dimension_numbers<[1], [0], [0], [1], [0, 0, 1, 1], [], []>} : vector<8x64xf32>, vector<64x128xf32>, vector<8x128xf32> -> vector<8x128xf32>
    %150 = arith.addf %143, %149 : vector<8x128xf32>
    %c0_158 = arith.constant 0 : index
    %c0_159 = arith.constant 0 : index
    %151 = vector.load %arg19[%c0_158, %c0_159] : memref<1x128xf32, #tpu.memory_space<vmem>>, vector<1x128xf32>
    %152 = vector.broadcast %151 : vector<1x128xf32> to vector<8x128xf32>
    %153 = arith.addf %150, %152 : vector<8x128xf32>
    %c0_160 = arith.constant 0 : index
    %c0_161 = arith.constant 0 : index
    %154 = vector.load %arg20[%c0_160, %c0_161] : memref<8x128xf32, #tpu.memory_space<vmem>>, vector<8x128xf32>
    tpu.vector_store %arg20[%c0_160, %c0_161], %153 {strides = array<i32>} : memref<8x128xf32, #tpu.memory_space<vmem>>, vector<8x128xf32>,
    return
  }
  func.func @transform_0(%arg0: i32) -> (i32, i32) {
    %c0_i32 = arith.constant 0 : i32
    %c0_i32_0 = arith.constant 0 : i32
    return %arg0, %c0_i32 : i32, i32
  }
  func.func @transform_1(%arg0: i32) -> (i32, i32, i32) {
    %c0_i32 = arith.constant 0 : i32
    %c0_i32_0 = arith.constant 0 : i32
    %c0_i32_1 = arith.constant 0 : i32
    %c0_i32_2 = arith.constant 0 : i32
    return %c0_i32, %c0_i32_0, %c0_i32_1 : i32, i32, i32
  }
  func.func @transform_2(%arg0: i32) -> (i32, i32, i32) {
    %c0_i32 = arith.constant 0 : i32
    %c0_i32_0 = arith.constant 0 : i32
    %c0_i32_1 = arith.constant 0 : i32
    %c0_i32_2 = arith.constant 0 : i32
    return %c0_i32, %c0_i32_0, %c0_i32_1 : i32, i32, i32
  }
  func.func @transform_3(%arg0: i32) -> (i32, i32) {
    %c0_i32 = arith.constant 0 : i32
    %c0_i32_0 = arith.constant 0 : i32
    %c0_i32_1 = arith.constant 0 : i32
    return %c0_i32, %c0_i32_0 : i32, i32
  }
  func.func @transform_4(%arg0: i32) -> (i32, i32, i32) {
    %c0_i32 = arith.constant 0 : i32
    %c0_i32_0 = arith.constant 0 : i32
    %c0_i32_1 = arith.constant 0 : i32
    %c0_i32_2 = arith.constant 0 : i32
    return %c0_i32, %c0_i32_0, %c0_i32_1 : i32, i32, i32
  }
  func.func @transform_5(%arg0: i32) -> (i32, i32, i32) {
    %c0_i32 = arith.constant 0 : i32
    %c0_i32_0 = arith.constant 0 : i32
    %c0_i32_1 = arith.constant 0 : i32
    %c0_i32_2 = arith.constant 0 : i32
    return %c0_i32, %c0_i32_0, %c0_i32_1 : i32, i32, i32
  }
  func.func @transform_6(%arg0: i32) -> (i32, i32) {
    %c0_i32 = arith.constant 0 : i32
    %c0_i32_0 = arith.constant 0 : i32
    %c0_i32_1 = arith.constant 0 : i32
    return %c0_i32, %c0_i32_0 : i32, i32
  }
  func.func @transform_7(%arg0: i32) -> (i32, i32, i32) {
    %c0_i32 = arith.constant 0 : i32
    %c0_i32_0 = arith.constant 0 : i32
    %c0_i32_1 = arith.constant 0 : i32
    %c0_i32_2 = arith.constant 0 : i32
    return %c0_i32, %c0_i32_0, %c0_i32_1 : i32, i32, i32
  }
  func.func @transform_8(%arg0: i32) -> (i32, i32, i32) {
    %c0_i32 = arith.constant 0 : i32
    %c0_i32_0 = arith.constant 0 : i32
    %c0_i32_1 = arith.constant 0 : i32
    %c0_i32_2 = arith.constant 0 : i32
    return %c0_i32, %c0_i32_0, %c0_i32_1 : i32, i32, i32
  }
  func.func @transform_9(%arg0: i32) -> (i32, i32) {
    %c0_i32 = arith.constant 0 : i32
    %c0_i32_0 = arith.constant 0 : i32
    %c0_i32_1 = arith.constant 0 : i32
    return %c0_i32, %c0_i32_0 : i32, i32
  }
  func.func @transform_10(%arg0: i32) -> (i32, i32, i32) {
    %c0_i32 = arith.constant 0 : i32
    %c0_i32_0 = arith.constant 0 : i32
    %c0_i32_1 = arith.constant 0 : i32
    %c0_i32_2 = arith.constant 0 : i32
    return %c0_i32, %c0_i32_0, %c0_i32_1 : i32, i32, i32
  }
  func.func @transform_11(%arg0: i32) -> (i32, i32, i32) {
    %c0_i32 = arith.constant 0 : i32
    %c0_i32_0 = arith.constant 0 : i32
    %c0_i32_1 = arith.constant 0 : i32
    %c0_i32_2 = arith.constant 0 : i32
    return %c0_i32, %c0_i32_0, %c0_i32_1 : i32, i32, i32
  }
  func.func @transform_12(%arg0: i32) -> (i32, i32) {
    %c0_i32 = arith.constant 0 : i32
    %c0_i32_0 = arith.constant 0 : i32
    %c0_i32_1 = arith.constant 0 : i32
    return %c0_i32, %c0_i32_0 : i32, i32
  }
  func.func @transform_13(%arg0: i32) -> (i32, i32, i32) {
    %c0_i32 = arith.constant 0 : i32
    %c0_i32_0 = arith.constant 0 : i32
    %c0_i32_1 = arith.constant 0 : i32
    %c0_i32_2 = arith.constant 0 : i32
    return %c0_i32, %c0_i32_0, %c0_i32_1 : i32, i32, i32
  }
  func.func @transform_14(%arg0: i32) -> (i32, i32, i32) {
    %c0_i32 = arith.constant 0 : i32
    %c0_i32_0 = arith.constant 0 : i32
    %c0_i32_1 = arith.constant 0 : i32
    %c0_i32_2 = arith.constant 0 : i32
    return %c0_i32, %c0_i32_0, %c0_i32_1 : i32, i32, i32
  }
  func.func @transform_15(%arg0: i32) -> (i32, i32) {
    %c0_i32 = arith.constant 0 : i32
    %c0_i32_0 = arith.constant 0 : i32
    %c0_i32_1 = arith.constant 0 : i32
    return %c0_i32, %c0_i32_0 : i32, i32
  }
  func.func @transform_16(%arg0: i32) -> (i32, i32, i32) {
    %c0_i32 = arith.constant 0 : i32
    %c0_i32_0 = arith.constant 0 : i32
    %c0_i32_1 = arith.constant 0 : i32
    %c0_i32_2 = arith.constant 0 : i32
    return %c0_i32, %c0_i32_0, %c0_i32_1 : i32, i32, i32
  }
  func.func @transform_17(%arg0: i32) -> (i32, i32, i32) {
    %c0_i32 = arith.constant 0 : i32
    %c0_i32_0 = arith.constant 0 : i32
    %c0_i32_1 = arith.constant 0 : i32
    %c0_i32_2 = arith.constant 0 : i32
    return %c0_i32, %c0_i32_0, %c0_i32_1 : i32, i32, i32
  }
  func.func @transform_18(%arg0: i32) -> (i32, i32) {
    %c0_i32 = arith.constant 0 : i32
    %c0_i32_0 = arith.constant 0 : i32
    %c0_i32_1 = arith.constant 0 : i32
    return %c0_i32, %c0_i32_0 : i32, i32
  }
  func.func @transform_19(%arg0: i32) -> (i32, i32) {
    %c0_i32 = arith.constant 0 : i32
    %c0_i32_0 = arith.constant 0 : i32
    return %arg0, %c0_i32 : i32, i32
  }
}

</mosaic_0001>

<bundles_post_ra>
// kernel: tpu_custom_call.1
= control target key start
LH: loop header
LB: loop body
LE: loop exit
PB: predicated region body
PF: predicated region fallthrough
CT: control target
= control target key end

     0   :  { %s11075_s0 = inlined_call_operand.vmem [shape: f32[448,28], index: 0, kind: input, shape index: {}]   ;;  %s11076_s1 = inlined_call_operand.vmem [shape: f32[3,28,112], index: 1, kind: input, shape index: {}]   ;;  %s11077_s2 = inlined_call_operand.vmem [shape: f32[3,112,224], index: 2, kind: input, shape index: {}]   ;;  %s11078_s3 = inlined_call_operand.vmem [shape: f32[1,112], index: 3, kind: input, shape index: {}]   ;;  %s11079_s4 = inlined_call_operand.vmem [shape: f32[3,112,112], index: 4, kind: input, shape index: {}]   ;;  %s11080_s5 = inlined_call_operand.hbm [shape: f32[3,112,112], index: 5, kind: input, shape index: {}]   ;;  %s11081_s6 = inlined_call_operand.vmem [shape: f32[1,112], index: 6, kind: input, shape index: {}]   ;;  %s11082_s7 = inlined_call_operand.hbm [shape: f32[3,112,112], index: 7, kind: input, shape index: {}]   ;;  %s11083_s8 = inlined_call_operand.hbm [shape: f32[3,56,112], index: 8, kind: input, shape index: {}]   ;;  %s11084_s9 = inlined_call_operand.vmem [shape: f32[1,112], index: 9, kind: input, shape index: {}]   ;;  %s11085_s10 = inlined_call_operand.hbm [shape: f32[3,112,112], index: 10, kind: input, shape index: {}]   ;;  %s11086_s11 = inlined_call_operand.hbm [shape: f32[3,56,56], index: 11, kind: input, shape index: {}]   ;;  %s11087_s12 = inlined_call_operand.vmem [shape: f32[1,112], index: 12, kind: input, shape index: {}]   ;;  %s11088_s13 = inlined_call_operand.vmem [shape: f32[3,112,64], index: 13, kind: input, shape index: {}]   ;;  %s11089_s14 = inlined_call_operand.hbm [shape: f32[3,32,56], index: 14, kind: input, shape index: {}]   ;;  %s11090_s15 = inlined_call_operand.vmem [shape: f32[1,64], index: 15, kind: input, shape index: {}]   ;;  %s11091_s16 = inlined_call_operand.vmem [shape: f32[4,8,32], index: 16, kind: input, shape index: {}]   ;;  %s11092_s17 = inlined_call_operand.hbm [shape: f32[4,64,128], index: 17, kind: input, shape index: {}]   ;;  %s11093_s18 = inlined_call_operand.vmem [shape: f32[1,128], index: 18, kind: input, shape index: {}]   ;;  %s11094_s19 = inlined_call_operand.hbm [shape: f32[16,128], index: 19, kind: output, shape index: {}]  }
   0x1   :  { %11111 = sst [smem:[#allocation28_spill]] %s11075_s0 }
   0x2   :  { %11112 = sst [smem:[#allocation29_spill]] %s11076_s1 }
   0x3   :  { %11113 = sst [smem:[#allocation30_spill]] %s11077_s2 }
   0x4   :  { %11114 = sst [smem:[#allocation31_spill]] %s11078_s3 }
   0x5   :  { %11115 = sst [smem:[#allocation32_spill]] %s11082_s7 }
   0x6   :  { %11116 = sst [smem:[#allocation33_spill]] %s11091_s16 }
   0x7   :  { %11117 = sst [smem:[#allocation34_spill]] %s11093_s18 }
   0x8   :  { %11118 = sst [smem:[#allocation35_spill]] %s11094_s19 }
   0x9   :  { %24 = vsyncpa [#allocation3], 0 }
   0xa   :  { %25 = vsyncpa [#allocation6], 0 }
   0xb   :  { %26 = vsyncpa [#allocation9], 0 }
   0xc   :  { %27 = vsyncpa [#allocation12], 0 }
   0xd   :  { %28 = vsyncpa [#allocation4], 0 }
   0xe   :  { %30 = vsyncpa [#allocation4 + $0x1], 0  ;;  %s9365_s0 = smov 0   ;;  %s9367_s30 = smov 0  }
   0xf   :  { %s9369_s20 = smov 0   ;;  %s9371_s21 = smov 0  }
  0x10 LB: > { %11119 = sst [smem:[#allocation20_spill]] %s9237_s0  ;;  %s9386_s1 = sadd.s32 4294967295, %s9249_s21   ;;  %s9249_s21 = sphi %s9371_s21, %s11159_s21   ;;  %s9245_s20 = sphi %s9369_s20, %s11162_s20   ;;  %s9241_s30 = sphi %s9367_s30, %s11161_s30   ;;  %s9237_s0 = sphi %s9365_s0, %s11160_s0  }
  0x11   : > { %11120 = sst [smem:[#allocation21_spill]] %s9241_s30  ;;  %s5974_s22 = sadd.s32 4294967294, %s9249_s21  }
  0x12   : > { %11121 = sst [smem:[#allocation22_spill]] %s9245_s20  ;;  %s9390_s2 = sadd.s32 1, %s9249_s21  }
  0x13   : > { %11122 = sst [smem:[#allocation23_spill]] %s9249_s21  ;;  %s447_s23 = sadd.s32 1, %s9245_s20 }
  0x14   : > { %11123 = sst [smem:[#allocation24_spill]] %s9390_s2  ;;  %s444_s24 = ssub.s32 %s9249_s21, %s9390_s2 }
  0x15   : > { %p457_p0 = scmp.ne.s32.totalorder %s9245_s20, %s9241_s30  ;;  %p445_p1 = scmp.eq.s32.totalorder %s444_s24, 0 }
  0x16   : > { %p458_p2 = scmp.eq.s32.totalorder %s9386_s1, 1  ;;  %p463_p3 = scmp.ne.s32.totalorder %s9241_s30, %s9237_s0 }
  0x17   : > { %p464_p4 = scmp.eq.s32.totalorder %s5974_s22, 1  ;;  %p5975_p7 = scmp.ge.s32.totalorder %s9249_s21, 1 }
  0x18   : > { %s9401_s25 = scalar_select %p445_p1, %s9245_s20, %s447_s23  }
  0x19   : > { %p9403_p5 = por %p458_p2, %p457_p0  ;;  %p9407_p6 = por %p464_p4, %p463_p3 }
  0x1a   : > { %11124 = sst [smem:[#allocation25_spill]] %s9401_s25  ;;  %p471_p8 = scmp.lt.s32.totalorder %s9249_s21, 3 }
  0x1b   : > { %s11125_s3 = scalar_select %p9403_p5, 1, 0 }
  0x1c   : > { %s11127_s26 = scalar_select %p9407_p6, 1, 0 }
  0x1d   : > { %11126 = sst [smem:[#allocation26_spill]] %s11125_s3  ;;  %p11104_p9 = scmp.eq.s32.totalorder %s9386_s1, 0 }
  0x1e   : > { %11128 = sst [smem:[#allocation27_spill]] %s11127_s26  ;;  %p9414_p10 = pnand %p5975_p7, %p471_p8 }
  0x1f   : > { %s9251_s28 = smov [#allocation5]   ;;  %s9252_s23 = smov [#allocation8]  }
  0x20   : > { %s11129_s27 = scalar_select %p9414_p10, 1, 0 }
  0x21   : > { %p8889_p11 = pneg %p9414_p10  ;;  %s511_s29 = sshll.u32 %s9251_s28, 4  ;;  %s9420_s29 = int_to_ptr.vmem [resolvable:$true] %s511_s29 }
  0x22   : > { %s540_s24 = sshll.u32 %s9252_s23, 4  ;;  %s9253_s25 = smov [#allocation11]   ;;  %s9428_s24 = int_to_ptr.vmem [resolvable:$true] %s540_s24 }
  0x23   : > { %p9424_p12 = pnand %p11104_p9, %p8889_p11  ;;  %s9430_s20 = sshll.u32 %s9253_s25, 4  ;;  %s573_s20 = int_to_ptr.vmem [resolvable:$true] %s9430_s20 }
  0x24   : > { %s11131_s7 = sld [smem:[#allocation32_spill]] }
  0x25   : > { %p9440_p0 = pneg %p9424_p12 }
  0x2a   : > { %s8975_s0 = scalar_lea.hbm %s11131_s7, 5376 }
  0x2b   : > { %p8976_p13 = scmp.ne.s32.totalorder %s11131_s7, %s8975_s0  ;;  %p8982_p3 = scmp.lt.u32.totalorder %s8975_s0, %s11131_s7 }
  0x2d   : > { %p8978_p1 = pnand %p9440_p0, %p8976_p13 }
  0x2f   : > { %p8979_p2 = pneg %p8978_p1 }
  0x31   : > { %p8984_p4 = pnand %p8982_p3, %p8979_p2 }
  0x33   : > { %8987 = shalt.err (!%p8984_p4)
}
  0x34   : > { %s8988_s21 = scalar_lea.vmem %s9420_s29, 5376  ;;  %p8996_p9 = scmp.lt.s32.totalorder %s9420_s29, %s9420_s29 }
  0x35   : > { %p8989_p7 = scmp.ne.s32.totalorder %s9420_s29, %s8988_s21  ;;  %p8997_p6 = scmp.lt.s32.totalorder %s8988_s21, %s8988_s21 }
  0x37   : > { %p8991_p8 = pnand %p8989_p7, %p9440_p0  ;;  %p8998_p13 = por %p8997_p6, %p8996_p9 }
  0x39   : > { %p8992_p11 = pneg %p8991_p8 }
  0x3b   : > { %p8999_p1 = pnand %p8998_p13, %p8992_p11 }
  0x3d   : > { %9002 = shalt.err (!%p8999_p1)
}
  0x3e   : > { %s9254_s2 = smov 128   ;;  %s9255_s0 = smov 8  }
  0x3f   : > { %8895 = dma.hbm_to_vmem [thread:$0]  (!%p9424_p12), %s11131_s7, 5376, %s9420_s29, [#allocation6], %s9254_s2, %s9254_s2, %s9255_s0  }
  0x40   : > { %s9003_s21 = scalar_lea.hbm %s11085_s10, 5376 }
  0x41   : > { %p9004_p6 = scmp.ne.s32.totalorder %s11085_s10, %s9003_s21  ;;  %p9010_p3 = scmp.lt.u32.totalorder %s9003_s21, %s11085_s10 }
  0x43   : > { %p9006_p9 = pnand %p9004_p6, %p9440_p0 }
  0x45   : > { %p9007_p2 = pneg %p9006_p9 }
  0x47   : > { %p9012_p4 = pnand %p9010_p3, %p9007_p2 }
  0x49   : > { %9015 = shalt.err (!%p9012_p4)
}
  0x4a   : > { %s9016_s29 = scalar_lea.vmem %s9428_s24, 5376  ;;  %p9024_p13 = scmp.lt.s32.totalorder %s9428_s24, %s9428_s24 }
  0x4b   : > { %p9017_p7 = scmp.ne.s32.totalorder %s9428_s24, %s9016_s29  ;;  %p9025_p1 = scmp.lt.s32.totalorder %s9016_s29, %s9016_s29 }
  0x4d   : > { %p9019_p8 = pnand %p9017_p7, %p9440_p0  ;;  %p9026_p6 = por %p9025_p1, %p9024_p13 }
  0x4f   : > { %p9020_p11 = pneg %p9019_p8 }
  0x51   : > { %p9027_p9 = pnand %p9026_p6, %p9020_p11 }
  0x53   : > { %9030 = shalt.err (!%p9027_p9)
}
  0x54   : > { %8901 = dma.hbm_to_vmem [thread:$0]  (!%p9424_p12), %s11085_s10, 5376, %s9428_s24, [#allocation9], %s9254_s2, %s9254_s2, %s9255_s0  }
  0x55   : > { %s9031_s26 = scalar_lea.hbm %s11089_s14, 1536 }
  0x56   : > { %p9032_p2 = scmp.ne.s32.totalorder %s11089_s14, %s9031_s26  ;;  %p9038_p7 = scmp.lt.u32.totalorder %s9031_s26, %s11089_s14 }
  0x58   : > { %p9034_p3 = pnand %p9032_p2, %p9440_p0 }
  0x5a   : > { %p9035_p4 = pneg %p9034_p3 }
  0x5c   : > { %p9040_p8 = pnand %p9038_p7, %p9035_p4 }
  0x5e   : > { %9043 = shalt.err (!%p9040_p8)
}
  0x5f   : > { %s9044_s29 = scalar_lea.vmem %s573_s20, 1536  ;;  %p9052_p6 = scmp.lt.s32.totalorder %s573_s20, %s573_s20 }
  0x60   : > { %p9045_p11 = scmp.ne.s32.totalorder %s573_s20, %s9044_s29  ;;  %p9053_p9 = scmp.lt.s32.totalorder %s9044_s29, %s9044_s29 }
  0x62   : > { %p9047_p13 = pnand %p9045_p11, %p9440_p0  ;;  %p9054_p5 = por %p9053_p9, %p9052_p6 }
  0x64   : > { %p9048_p1 = pneg %p9047_p13 }
  0x66   : > { %p9055_p10 = pnand %p9054_p5, %p9048_p1 }
  0x68   : > { %9058 = shalt.err (!%p9055_p10)
}
  0x69   : > { %8907 = dma.hbm_to_vmem [thread:$0]  (!%p9424_p12), %s11089_s14, 1536, %s573_s20, [#allocation12], %s9254_s2, %s9254_s2, %s9255_s0  }
  0x6a   : > { %s9256_s18 = smov [#allocation2]   ;;  %s9257_s3 = smov [#allocation7]  }
  0x6b   : > { %s495_s30 = sshll.u32 %s9256_s18, 4  ;;  %s524_s26 = sshll.u32 %s9257_s3, 4  ;;  %s496_s30 = int_to_ptr.vmem [resolvable:$true] %s495_s30  ;;  %s525_s26 = int_to_ptr.vmem [resolvable:$true] %s524_s26 }
  0x6c   : > { %s9059_s25 = scalar_lea.hbm %s11080_s5, 5376 }
  0x6d   : > { %p9060_p5 = scmp.ne.s32.totalorder %s11080_s5, %s9059_s25  ;;  %p9066_p3 = scmp.lt.u32.totalorder %s9059_s25, %s11080_s5 }
  0x6f   : > { %p9062_p10 = pnand %p9060_p5, %p9440_p0 }
  0x71   : > { %p9063_p2 = pneg %p9062_p10 }
  0x73   : > { %p9068_p4 = pnand %p9066_p3, %p9063_p2 }
  0x75   : > { %9071 = shalt.err (!%p9068_p4)
}
  0x76   : > { %s9072_s20 = scalar_lea.vmem %s496_s30, 5376  ;;  %p9080_p13 = scmp.lt.s32.totalorder %s496_s30, %s496_s30 }
  0x77   : > { %p9073_p7 = scmp.ne.s32.totalorder %s496_s30, %s9072_s20  ;;  %p9081_p1 = scmp.lt.s32.totalorder %s9072_s20, %s9072_s20 }
  0x79   : > { %p9075_p8 = pnand %p9073_p7, %p9440_p0  ;;  %p9082_p6 = por %p9081_p1, %p9080_p13 }
  0x7b   : > { %p9076_p11 = pneg %p9075_p8 }
  0x7d   : > { %p9083_p9 = pnand %p9082_p6, %p9076_p11 }
  0x7f   : > { %9086 = shalt.err (!%p9083_p9)
}
  0x80   : > { %8892 = dma.hbm_to_vmem [thread:$0]  (!%p9424_p12), %s11080_s5, 5376, %s496_s30, [#allocation3], %s9254_s2, %s9254_s2, %s9255_s0  }
  0x81   : > { %s9087_s28 = scalar_lea.hbm %s11083_s8, 2688 }
  0x82   : > { %p9088_p5 = scmp.ne.s32.totalorder %s11083_s8, %s9087_s28  ;;  %p9094_p3 = scmp.lt.u32.totalorder %s9087_s28, %s11083_s8 }
  0x84   : > { %p9090_p10 = pnand %p9088_p5, %p9440_p0 }
  0x86   : > { %p9091_p2 = pneg %p9090_p10 }
  0x88   : > { %p9096_p4 = pnand %p9094_p3, %p9091_p2 }
  0x8a   : > { %9099 = shalt.err (!%p9096_p4)
}
  0x8b   : > { %s9100_s24 = scalar_lea.vmem %s525_s26, 2688  ;;  %p9108_p13 = scmp.lt.s32.totalorder %s525_s26, %s525_s26 }
  0x8c   : > { %p9101_p7 = scmp.ne.s32.totalorder %s525_s26, %s9100_s24  ;;  %p9109_p1 = scmp.lt.s32.totalorder %s9100_s24, %s9100_s24 }
  0x8e   : > { %p9103_p8 = pnand %p9101_p7, %p9440_p0  ;;  %p9110_p6 = por %p9109_p1, %p9108_p13 }
  0x90   : > { %p9104_p11 = pneg %p9103_p8 }
  0x92   : > { %p9111_p9 = pnand %p9110_p6, %p9104_p11 }
  0x94   : > { %9114 = shalt.err (!%p9111_p9)
}
  0x95   : > { %8898 = dma.hbm_to_vmem [thread:$0]  (!%p9424_p12), %s11083_s8, 2688, %s525_s26, [#allocation6], %s9254_s2, %s9254_s2, %s9255_s0  }
  0x96   : > { %s9258_s7 = smov [#allocation10]   ;;  %s9259_s18 = smov [#allocation13]  }
  0x97   : > { %s553_s16 = sshll.u32 %s9258_s7, 4  ;;  %s591_s3 = sshll.u32 %s9259_s18, 4  ;;  %s554_s16 = int_to_ptr.vmem [resolvable:$true] %s553_s16  ;;  %s592_s3 = int_to_ptr.vmem [resolvable:$true] %s591_s3 }
  0x98   : > { %s9115_s25 = scalar_lea.hbm %s11086_s11, 2688 }
  0x99   : > { %p9116_p5 = scmp.ne.s32.totalorder %s11086_s11, %s9115_s25  ;;  %p9122_p3 = scmp.lt.u32.totalorder %s9115_s25, %s11086_s11 }
  0x9b   : > { %p9118_p10 = pnand %p9116_p5, %p9440_p0 }
  0x9d   : > { %p9119_p2 = pneg %p9118_p10 }
  0x9f   : > { %p9124_p4 = pnand %p9122_p3, %p9119_p2 }
  0xa1   : > { %9127 = shalt.err (!%p9124_p4)
}
  0xa2   : > { %s9128_s26 = scalar_lea.vmem %s554_s16, 2688  ;;  %p9136_p13 = scmp.lt.s32.totalorder %s554_s16, %s554_s16 }
  0xa3   : > { %p9129_p7 = scmp.ne.s32.totalorder %s554_s16, %s9128_s26  ;;  %p9137_p1 = scmp.lt.s32.totalorder %s9128_s26, %s9128_s26 }
  0xa5   : > { %p9131_p8 = pnand %p9129_p7, %p9440_p0  ;;  %p9138_p6 = por %p9137_p1, %p9136_p13 }
  0xa7   : > { %p9132_p11 = pneg %p9131_p8 }
  0xa9   : > { %p9139_p9 = pnand %p9138_p6, %p9132_p11 }
  0xab   : > { %9142 = shalt.err (!%p9139_p9)
}
  0xac   : > { %8904 = dma.hbm_to_vmem [thread:$0]  (!%p9424_p12), %s11086_s11, 2688, %s554_s16, [#allocation9], %s9254_s2, %s9254_s2, %s9255_s0  }
  0xad   : > { %s9143_s23 = scalar_lea.hbm %s11092_s17, 4096 }
  0xae   : > { %p9144_p5 = scmp.ne.s32.totalorder %s11092_s17, %s9143_s23  ;;  %p9150_p3 = scmp.lt.u32.totalorder %s9143_s23, %s11092_s17 }
  0xb0   : > { %p9146_p10 = pnand %p9144_p5, %p9440_p0 }
  0xb2   : > { %p9147_p2 = pneg %p9146_p10 }
  0xb4   : > { %p9152_p4 = pnand %p9150_p3, %p9147_p2 }
  0xb6   : > { %9155 = shalt.err (!%p9152_p4)
}
  0xb7   : > { %s9156_s30 = scalar_lea.vmem %s592_s3, 4096  ;;  %p9164_p13 = scmp.lt.s32.totalorder %s592_s3, %s592_s3 }
  0xb8   : > { %p9157_p7 = scmp.ne.s32.totalorder %s592_s3, %s9156_s30  ;;  %p9165_p1 = scmp.lt.s32.totalorder %s9156_s30, %s9156_s30 }
  0xba   : > { %p9159_p8 = pnand %p9157_p7, %p9440_p0  ;;  %p9166_p6 = por %p9165_p1, %p9164_p13 }
  0xbc   : > { %p9160_p11 = pneg %p9159_p8 }
  0xbe   : > { %p9167_p9 = pnand %p9166_p6, %p9160_p11 }
  0xc0   : > { %9170 = shalt.err (!%p9167_p9)
}
  0xc1   : > { %8910 = dma.hbm_to_vmem [thread:$0]  (!%p9424_p12), %s11092_s17, 4096, %s592_s3, [#allocation12], %s9254_s2, %s9254_s2, %s9255_s0  }
  0xc2   : > { %p11133_p5 = scmp.ne.s32.totalorder %s11129_s27, 0 }
  0xc3   : > { %p11134_p0 = scmp.eq.s32.totalorder (!%p11133_p5), %s9386_s1, 0 }
  0xc4   : > { %619 = sbr.rel (%p11133_p5) target bundleno = 3729 (0xe91), region = 96 }
  0xcb   : > { %9216 = dma.done.wait (%p11134_p0), [#allocation3], 5376   ;;  %p11135_p10 = pmov %p11134_p0 }
  0xcc   : > { %p11136_p2 = pmov %p11134_p0 }
  0xcd   : > { %9218 = vsyncadd (%p11135_p10), [#allocation3], 4294961920 }
  0xce   : > { %9220 = dma.done.wait (%p11136_p2), [#allocation6], 8064   ;;  %p11137_p3 = pmov %p11134_p0 }
  0xcf   : > { %p11138_p4 = pmov %p11134_p0 }
  0xd0   : > { %9222 = vsyncadd (%p11137_p3), [#allocation6], 4294959232 }
  0xd1   : > { %9224 = dma.done.wait (%p11138_p4), [#allocation9], 8064   ;;  %p11139_p12 = pmov %p11134_p0 }
  0xd2   : > { %p11140_p7 = pmov %p11134_p0 }
  0xd3   : > { %9226 = vsyncadd (%p11139_p12), [#allocation9], 4294959232 }
  0xd4   : > { %9228 = dma.done.wait (%p11140_p7), [#allocation12], 5632   ;;  %p11141_p8 = pmov %p11134_p0 }
  0xd5   : > { %s699_s19 = smul.u32 28, %s9386_s1  ;;  %v9260_v0 = vmov 0.0|0.0   ;;  %vm817_vm0 = vcmask 785408   ;;  %s11142_s0 = sld [smem:[#allocation28_spill]]  ;;  %vm1253_vm1 = vcmask 1043456   ;;  %vm9261_vm2 = vmmov 1  }
  0xd6   : > { %9230 = vsyncadd (%p11141_p8), [#allocation12], 4294961664  ;;  %8142 = vmatprep.subr.bf16.mxu1 %v9260_v0  ;;  %8100 = vmatprep.subr.bf16.mxu0 %v9260_v0  ;;  %s11143_s18 = sld [smem:[#allocation30_spill]]  ;;  %s11144_s29 = sld [smem:[#allocation29_spill]]  ;;  %vm1210_vm4 = vcmask 228352   ;;  %vm2026_vm5 = vcmask 916480  }
  0xd7   : > { %p700_p11 = scmp.lt.s32.totalorder %s699_s19, 55  ;;  %vm10027_vm3 = vmpackc.low %vm1253_vm1, %vm9261_vm2  ;;  %s11147_s28 = sld [smem:[#allocation31_spill]]  ;;  %vm9262_vm6 = vmmov 0   ;;  %vm3848_vm7 = vcmask 457728   ;;  %vm5194_vm8 = vcmask 261120   ;;  %vm5360_vm9 = vcmask 523264  }
  0xd8   : > { %s11148_s21 = sld [smem:[#allocation33_spill]]  ;;  %s11150_s2 = sld [smem:[#allocation21_spill]] }
  0xd9   : > { %s11164_s19 = smov (!%p700_p11, %s699_s19), 55  ;;  %s11152_s23 = sld [smem:[#allocation34_spill]] }
  0xda   : > { %s5993_s27 = sshll.u32 %s11164_s19, 3  ;;  %s6418_s25 = sshll.u32 %s9386_s1, 7 }
  0xdb   : > { %s9620_s3 = scalar_lea.vmem %s11142_s0, %s5993_s27  ;;  %s11153_s19 = sld [smem:[#allocation35_spill]] }
  0xdc   : > { %v6037_v1 = vld [vmem:[%s11143_s18 + $0xe8] sm:$0xff]  ;;  %v705_v2 = vld [vmem:[%s9620_s3] sm:$0xff]  ;;  %v707_v4 = vld [vmem:[%s9620_s3 + $0x10] sm:$0xff]  ;;  %s9264_s1 = smov [#allocation14]  }
  0xdd   : > { %v706_v3 = vld [vmem:[%s9620_s3 + $0x8] sm:$0xff]  ;;  %6064 = vmatprep.mubr.msk.f32.mxu1 %vm817_vm0, %v6037_v1  ;;  %v733_v5 = vmul.f32 0.13333334, %v705_v2  ;;  %v708_v7 = vld [vmem:[%s9620_s3 + $0x18] sm:$0xff]  ;;  %v709_v8 = vld [vmem:[%s9620_s3 + $0x20] sm:$0xff] }
  0xde   : > { %v734_v6 = vmul.f32 0.13333334, %v706_v3  ;;  %v735_v9 = vmul.f32 0.13333334, %v707_v4  ;;  %v736_v10 = vmul.f32 0.13333334, %v708_v7  ;;  %s11149_s24 = smov %s11148_s21 }
  0xdf   : > { %v710_v11 = vld [vmem:[%s9620_s3 + $0x28] sm:$0xff]  ;;  %v711_v12 = vld [vmem:[%s9620_s3 + $0x30] sm:$0xff]  ;;  %v5994_v13 = vadd.f32 -1.0, %v733_v5  ;;  %v737_v15 = vmul.f32 0.13333334, %v709_v8  ;;  %v712_v19 = vld [vmem:[%s9620_s3 + $0x38] sm:$0xff] }
  0xe0   : > { %v5995_v14 = vadd.f32 -1.0, %v734_v6  ;;  %v738_v16 = vmul.f32 0.13333334, %v710_v11  ;;  %v5996_v17 = vadd.f32 -1.0, %v735_v9  ;;  %v5997_v18 = vadd.f32 -1.0, %v736_v10  ;;  %v713_v26 = vld [vmem:[%s9620_s3 + $0x40] sm:$0xff] }
  0xe1   : > { %v739_v21 = vmul.f32 0.13333334, %v711_v12  ;;  %v5998_v23 = vadd.f32 -1.0, %v737_v15  ;;  %v740_v25 = vmul.f32 0.13333334, %v712_v19  ;;  %v714_v27 = vld [vmem:[%s9620_s3 + $0x48] sm:$0xff]  ;;  %s11033_s27 = scalar_lea.hbm %s11153_s19, %s6418_s25 }
  0xe2   : > { %v9634_v20 = vpack.c.bf16 %v5995_v14, %v5994_v13  ;;  %v9637_v22 = vpack.c.bf16 %v5997_v18, %v5996_v17  ;;  %v5999_v24 = vadd.f32 -1.0, %v738_v16  ;;  %v741_v31 = vmul.f32 0.13333334, %v713_v26  ;;  %v715_v33 = vld [vmem:[%s9620_s3 + $0x50] sm:$0xff]  ;;  %v716_v34 = vld [vmem:[%s9620_s3 + $0x58] sm:$0xff]  ;;  %v717_v40 = vld [vmem:[%s9620_s3 + $0x60] sm:$0xff] }
  0xe3   : > { %v6000_v28 = vadd.f32 -1.0, %v739_v21  ;;  %v6001_v30 = vadd.f32 -1.0, %v740_v25  ;;  %v742_v32 = vmul.f32 0.13333334, %v714_v27  ;;  %v743_v35 = vmul.f32 0.13333334, %v715_v33 }
  0xe4   : > { %8144 = vmatpush1.bf16.msra.mxu1 %v9634_v20  ;;  %8102 = vmatpush1.bf16.msra.mxu0 %v9634_v20  ;;  %v9645_v29 = vpack.c.bf16 %v5999_v24, %v5998_v23  ;;  %v6002_v37 = vadd.f32 -1.0, %v741_v31  ;;  %v744_v39 = vmul.f32 0.13333334, %v716_v34  ;;  %v718_v41 = vld [vmem:[%s9620_s3 + $0x68] sm:$0xff]  ;;  %v745_v42 = vmul.f32 0.13333334, %v717_v40 }
  0xe5   : > { %8145 = vmatprep.subr.bf16.mxu1 %v9260_v0  ;;  %8103 = vmatprep.subr.bf16.mxu0 %v9260_v0  ;;  %v9653_v36 = vpack.c.bf16 %v6001_v30, %v6000_v28  ;;  %v6003_v38 = vadd.f32 -1.0, %v742_v32  ;;  %v6004_v44 = vadd.f32 -1.0, %v743_v35  ;;  %v746_v46 = vmul.f32 0.13333334, %v718_v41  ;;  %v719_v47 = vld [vmem:[%s9620_s3 + $0x70] sm:$0xff]  ;;  %v720_v48 = vld [vmem:[%s9620_s3 + $0x78] sm:$0xff] }
  0xe6   : > { %v6005_v45 = vadd.f32 -1.0, %v744_v39  ;;  %v6006_v49 = vadd.f32 -1.0, %v745_v42  ;;  %v790_v50 = vld [vmem:[%s11143_s18 + $0x8] sm:$0xff]  ;;  %v747_v53 = vmul.f32 0.13333334, %v719_v47  ;;  %v721_v55 = vld [vmem:[%s9620_s3 + $0x80] sm:$0xff] }
  0xe7   : > { %v9661_v43 = vpack.c.bf16 %v6003_v38, %v6002_v37  ;;  %v6007_v52 = vadd.f32 -1.0, %v746_v46  ;;  %v748_v54 = vmul.f32 0.13333334, %v720_v48  ;;  %v722_v56 = vld [vmem:[%s9620_s3 + $0x88] sm:$0xff]  ;;  %6022 = vmatprep.mubr.msk.f32.mxu0 %vm817_vm0, %v790_v50  ;;  %v749_v57 = vmul.f32 0.13333334, %v721_v55 }
  0xe8   : > { %8147 = vmatpush1.bf16.msra.mxu1 %v9637_v22  ;;  %8105 = vmatpush1.bf16.msra.mxu0 %v9637_v22  ;;  %v9672_v51 = vpack.c.bf16 %v6005_v45, %v6004_v44  ;;  %v6008_v59 = vadd.f32 -1.0, %v747_v53  ;;  %v750_v61 = vmul.f32 0.13333334, %v722_v56  ;;  %v723_v62 = vld [vmem:[%s9620_s3 + $0x90] sm:$0xff]  ;;  %v724_v63 = vld [vmem:[%s9620_s3 + $0x98] sm:$0xff]  ;;  %v725_v6 = vld [vmem:[%s9620_s3 + $0xa0] sm:$0xff] }
  0xe9   : > { %8148 = vmatprep.subr.bf16.mxu1 %v9260_v0  ;;  %8106 = vmatprep.subr.bf16.mxu0 %v9260_v0  ;;  %v9681_v58 = vpack.c.bf16 %v6007_v52, %v6006_v49  ;;  %v6009_v60 = vadd.f32 -1.0, %v748_v54  ;;  %v751_v1 = vmul.f32 0.13333334, %v723_v62  ;;  %v6010_v3 = vadd.f32 -1.0, %v749_v57  ;;  %v726_v7 = vld [vmem:[%s9620_s3 + $0xa8] sm:$0xff]  ;;  %v727_v13 = vld [vmem:[%s9620_s3 + $0xb0] sm:$0xff] }
  0xea   : > { %v6011_v4 = vadd.f32 -1.0, %v750_v61  ;;  %v752_v5 = vmul.f32 0.13333334, %v724_v63  ;;  %v753_v11 = vmul.f32 0.13333334, %v725_v6  ;;  %v728_v14 = vld [vmem:[%s9620_s3 + $0xb8] sm:$0xff] }
  0xeb   : > { %v9689_v2 = vpack.c.bf16 %v6009_v60, %v6008_v59  ;;  %v6012_v8 = vadd.f32 -1.0, %v751_v1  ;;  %v754_v12 = vmul.f32 0.13333334, %v726_v7  ;;  %v755_v15 = vmul.f32 0.13333334, %v727_v13  ;;  %v729_v21 = vld [vmem:[%s9620_s3 + $0xc0] sm:$0xff] }
  0xec   : > { %8150 = vmatpush1.bf16.msra.mxu1 %v9645_v29  ;;  %8108 = vmatpush1.bf16.msra.mxu0 %v9645_v29  ;;  %v9697_v9 = vpack.c.bf16 %v6011_v4, %v6010_v3  ;;  %v6013_v10 = vadd.f32 -1.0, %v752_v5  ;;  %v6014_v17 = vadd.f32 -1.0, %v753_v11  ;;  %v756_v19 = vmul.f32 0.13333334, %v728_v14  ;;  %v730_v23 = vld [vmem:[%s9620_s3 + $0xc8] sm:$0xff]  ;;  %v731_v30 = vld [vmem:[%s9620_s3 + $0xd0] sm:$0xff] }
  0xed   : > { %8151 = vmatprep.subr.bf16.mxu1 %v9260_v0  ;;  %8109 = vmatprep.subr.bf16.mxu0 %v9260_v0  ;;  %v6015_v18 = vadd.f32 -1.0, %v754_v12  ;;  %v757_v24 = vmul.f32 0.13333334, %v729_v21  ;;  %v6016_v26 = vadd.f32 -1.0, %v755_v15  ;;  %v758_v28 = vmul.f32 0.13333334, %v730_v23 }
  0xee   : > { %v9705_v16 = vpack.c.bf16 %v6013_v10, %v6012_v8  ;;  %v6017_v27 = vadd.f32 -1.0, %v756_v19  ;;  %v732_v31 = vld [vmem:[%s9620_s3 + $0xd8] sm:$0xff]  ;;  %v759_v35 = vmul.f32 0.13333334, %v731_v30  ;;  %v6078_v41 = vld [vmem:[%s11144_s29 + $0x20] sm:$0xff]  ;;  %v6079_v42 = vld [vmem:[%s11144_s29 + $0x28] sm:$0xff] }
  0xef   : > { %v9713_v25 = vpack.c.bf16 %v6015_v18, %v6014_v17  ;;  %v6018_v32 = vadd.f32 -1.0, %v757_v24  ;;  %v6019_v34 = vadd.f32 -1.0, %v758_v28  ;;  %v760_v37 = vmul.f32 0.13333334, %v732_v31  ;;  %v6036_v46 = vld [vmem:[%s11143_s18 + $0xe0] sm:$0xff]  ;;  %v6039_v48 = vld [vmem:[%s11143_s18 + $0xf8] sm:$0xff] }
  0xf0   : > { %8153 = vmatpush1.bf16.msra.mxu1 %v9653_v36  ;;  %8111 = vmatpush1.bf16.msra.mxu0 %v9653_v36  ;;  %v9721_v33 = vpack.c.bf16 %v6017_v27, %v6016_v26  ;;  %v6020_v39 = vadd.f32 -1.0, %v759_v35  ;;  %v8184_v45 = vpack.c.bf16 %v6079_v42, %v6078_v41  ;;  %v789_v47 = vld [vmem:[%s11143_s18] sm:$0xff]  ;;  %v792_v49 = vld [vmem:[%s11143_s18 + $0x18] sm:$0xff]  ;;  %v6038_v50 = vld [vmem:[%s11143_s18 + $0xf0] sm:$0xff]  ;;  %s696_s0 = sand.u32 1, %s11150_s2   ;;  %s11151_s3 = sld [smem:[#allocation26_spill]] }
  0xf1   : > { %8154 = vmatprep.subr.bf16.mxu1 %v9260_v0  ;;  %8112 = vmatprep.subr.bf16.mxu0 %v9260_v0  ;;  %v9727_v38 = vpack.c.bf16 %v6019_v34, %v6018_v32  ;;  %v6021_v40 = vadd.f32 -1.0, %v760_v37  ;;  %v791_v52 = vld [vmem:[%s11143_s18 + $0x10] sm:$0xff]  ;;  %v6041_v53 = vld [vmem:[%s11143_s18 + $0x108] sm:$0xff]  ;;  %v6040_v54 = vld [vmem:[%s11143_s18 + $0x100] sm:$0xff]  ;;  %s5992_s20 = sshll.u32 %s696_s0, 3  ;;  %s5833_s22 = scalar_lea.sflag [#allocation4], %s696_s0 }
  0xf2   : > { %v793_v55 = vld [vmem:[%s11143_s18 + $0x20] sm:$0xff]  ;;  %v6043_v56 = vld [vmem:[%s11143_s18 + $0x118] sm:$0xff]  ;;  %v6042_v57 = vld [vmem:[%s11143_s18 + $0x110] sm:$0xff] }
  0xf3   : > { %v9739_v44 = vpack.c.bf16 %v6021_v40, %v6020_v39  ;;  %v795_v59 = vld [vmem:[%s11143_s18 + $0x30] sm:$0xff]  ;;  %v6045_v60 = vld [vmem:[%s11143_s18 + $0x128] sm:$0xff]  ;;  %v6044_v61 = vld [vmem:[%s11143_s18 + $0x120] sm:$0xff] }
  0xf4   : > { %8156 = vmatpush1.bf16.msra.mxu1 %v9661_v43  ;;  %8114 = vmatpush1.bf16.msra.mxu0 %v9661_v43  ;;  %v797_v62 = vld [vmem:[%s11143_s18 + $0x40] sm:$0xff]  ;;  %v6047_v63 = vld [vmem:[%s11143_s18 + $0x138] sm:$0xff]  ;;  %v6046_v1 = vld [vmem:[%s11143_s18 + $0x130] sm:$0xff] }
  0xf5   : > { %8157 = vmatprep.subr.bf16.mxu1 %v9260_v0  ;;  %8115 = vmatprep.subr.bf16.mxu0 %v9260_v0  ;;  %v799_v3 = vld [vmem:[%s11143_s18 + $0x50] sm:$0xff]  ;;  %v6049_v4 = vld [vmem:[%s11143_s18 + $0x148] sm:$0xff]  ;;  %v6048_v5 = vld [vmem:[%s11143_s18 + $0x140] sm:$0xff] }
  0xf6   : > { %v801_v6 = vld [vmem:[%s11143_s18 + $0x60] sm:$0xff]  ;;  %v6051_v7 = vld [vmem:[%s11143_s18 + $0x158] sm:$0xff]  ;;  %v6050_v8 = vld [vmem:[%s11143_s18 + $0x150] sm:$0xff]  ;;  %p11154_p1 = scmp.ne.s32.totalorder %s11151_s3, 0 }
  0xf7   : > { %v803_v10 = vld [vmem:[%s11143_s18 + $0x70] sm:$0xff]  ;;  %v6053_v11 = vld [vmem:[%s11143_s18 + $0x168] sm:$0xff]  ;;  %v6052_v12 = vld [vmem:[%s11143_s18 + $0x160] sm:$0xff] }
  0xf8   : > { %8159 = vmatpush1.bf16.msra.mxu1 %v9672_v51  ;;  %8117 = vmatpush1.bf16.msra.mxu0 %v9672_v51  ;;  %v805_v13 = vld [vmem:[%s11143_s18 + $0x80] sm:$0xff]  ;;  %v6055_v14 = vld [vmem:[%s11143_s18 + $0x178] sm:$0xff]  ;;  %v6054_v15 = vld [vmem:[%s11143_s18 + $0x170] sm:$0xff] }
  0xf9   : > { %8160 = vmatprep.subr.bf16.mxu1 %v9260_v0  ;;  %8118 = vmatprep.subr.bf16.mxu0 %v9260_v0  ;;  %v807_v17 = vld [vmem:[%s11143_s18 + $0x90] sm:$0xff]  ;;  %v6057_v18 = vld [vmem:[%s11143_s18 + $0x188] sm:$0xff]  ;;  %v6056_v19 = vld [vmem:[%s11143_s18 + $0x180] sm:$0xff] }
  0xfa   : > { %v809_v21 = vld [vmem:[%s11143_s18 + $0xa0] sm:$0xff]  ;;  %v6059_v23 = vld [vmem:[%s11143_s18 + $0x198] sm:$0xff]  ;;  %v6058_v24 = vld [vmem:[%s11143_s18 + $0x190] sm:$0xff] }
  0xfb   : > { %v811_v26 = vld [vmem:[%s11143_s18 + $0xb0] sm:$0xff]  ;;  %v6061_v27 = vld [vmem:[%s11143_s18 + $0x1a8] sm:$0xff]  ;;  %v6060_v28 = vld [vmem:[%s11143_s18 + $0x1a0] sm:$0xff] }
  0xfc   : > { %8162 = vmatpush1.bf16.msra.mxu1 %v9681_v58  ;;  %8120 = vmatpush1.bf16.msra.mxu0 %v9681_v58  ;;  %v813_v30 = vld [vmem:[%s11143_s18 + $0xc0] sm:$0xff]  ;;  %v6063_v31 = vld [vmem:[%s11143_s18 + $0x1b8] sm:$0xff]  ;;  %v815_v34 = vld [vmem:[%s11143_s18 + $0xd0] sm:$0xff] }
  0xfd   : > { %8163 = vmatprep.subr.bf16.mxu1 %v9260_v0  ;;  %8121 = vmatprep.subr.bf16.mxu0 %v9260_v0  ;;  %v816_v32 = vld [vmem:[%s11143_s18 + $0xd8] sm:$0xff]  ;;  %v6113_v35 = vld [vmem:[%s11143_s18 + $0x1c8] sm:$0xff]  ;;  %v6112_v37 = vld [vmem:[%s11143_s18 + $0x1c0] sm:$0xff] }
  0xfe   : > { %v6114_v39 = vld [vmem:[%s11143_s18 + $0x1d0] sm:$0xff]  ;;  %v6117_v40 = vld [vmem:[%s11143_s18 + $0x1e8] sm:$0xff]  ;;  %v6116_v41 = vld [vmem:[%s11143_s18 + $0x1e0] sm:$0xff] }
  0xff   : > { %v6119_v42 = vld [vmem:[%s11143_s18 + $0x1f8] sm:$0xff] }
 0x100   : > { %8165 = vmatpush1.bf16.msra.mxu1 %v9689_v2  ;;  %8123 = vmatpush1.bf16.msra.mxu0 %v9689_v2 }
 0x101   : > { %8166 = vmatprep.subr.bf16.mxu1 %v9260_v0  ;;  %8124 = vmatprep.subr.bf16.mxu0 %v9260_v0 }
 0x104   : > { %8168 = vmatpush1.bf16.msra.mxu1 %v9697_v9  ;;  %8126 = vmatpush1.bf16.msra.mxu0 %v9697_v9 }
 0x105   : > { %8169 = vmatprep.subr.bf16.mxu1 %v9260_v0  ;;  %8127 = vmatprep.subr.bf16.mxu0 %v9260_v0 }
 0x108   : > { %8171 = vmatpush1.bf16.msra.mxu1 %v9705_v16  ;;  %8129 = vmatpush1.bf16.msra.mxu0 %v9705_v16 }
 0x109   : > { %8172 = vmatprep.subr.bf16.mxu1 %v9260_v0  ;;  %8130 = vmatprep.subr.bf16.mxu0 %v9260_v0 }
 0x10c   : > { %8174 = vmatpush1.bf16.msra.mxu1 %v9713_v25  ;;  %8132 = vmatpush1.bf16.msra.mxu0 %v9713_v25 }
 0x10d   : > { %8175 = vmatprep.subr.bf16.mxu1 %v9260_v0  ;;  %8133 = vmatprep.subr.bf16.mxu0 %v9260_v0 }
 0x110   : > { %8177 = vmatpush1.bf16.msra.mxu1 %v9721_v33  ;;  %8135 = vmatpush1.bf16.msra.mxu0 %v9721_v33 }
 0x111   : > { %8178 = vmatprep.subr.bf16.mxu1 %v9260_v0  ;;  %8136 = vmatprep.subr.bf16.mxu0 %v9260_v0 }
 0x114   : > { %8180 = vmatpush1.bf16.msra.mxu1 %v9727_v38  ;;  %8138 = vmatpush1.bf16.msra.mxu0 %v9727_v38 }
 0x115   : > { %8181 = vmatprep.subr.bf16.mxu1 %v9260_v0  ;;  %8139 = vmatprep.subr.bf16.mxu0 %v9260_v0 }
 0x118   : > { %8183 = vmatpush1.bf16.msra.mxu1 %v9739_v44  ;;  %8141 = vmatpush1.bf16.msra.mxu0 %v9739_v44 }
 0x119   : > { %8204 = vmatprep.subr.bf16.mxu1 %v9260_v0  ;;  %8185 = vmatprep.subr.bf16.mxu0 %v8184_v45 }
 0x11b   : > { %1135 = vmatmul.mubr.f32.vlgmr.msra.gmra.mrb[0].mxu1 %v6036_v46  ;;  %925 = vmatmul.mubr.f32.vlgmr.msra.gmra.mrb[0].mxu0 %v789_v47  ;;  %v6120_v46 = vld [vmem:[%s11143_s18 + $0x200] sm:$0xff]  ;;  %v6123_v47 = vld [vmem:[%s11143_s18 + $0x218] sm:$0xff] }
 0x11c   : > { %8206 = vmatpush1.bf16.msra.mxu1 %v9634_v20  ;;  %6065 = vmatprep.mubr.msk.f32.mxu1 %vm817_vm0, %v6039_v48  ;;  %v794_v20 = vld [vmem:[%s11143_s18 + $0x28] sm:$0xff]  ;;  %v6122_v48 = vld [vmem:[%s11143_s18 + $0x210] sm:$0xff] }
 0x11d   : > { %8207 = vmatprep.subr.bf16.mxu1 %v9260_v0  ;;  %6023 = vmatprep.mubr.msk.f32.mxu0 %vm817_vm0, %v792_v49  ;;  %v6125_v49 = vld [vmem:[%s11143_s18 + $0x228] sm:$0xff] }
 0x11e   : > { %8187 = vmatpush3.bf16.msra.mxu0 %v8184_v45  ;;  %v6121_v45 = vld [vmem:[%s11143_s18 + $0x208] sm:$0xff] }
 0x11f   : > { %1140 = vmatmul.mubr.f32.gmra.mrb[2].mxu1 %v6038_v50  ;;  %930 = vmatmul.mubr.f32.gmra.mrb[2].mxu0 %v791_v52  ;;  %v6124_v50 = vld [vmem:[%s11143_s18 + $0x220] sm:$0xff]  ;;  %v6127_v52 = vld [vmem:[%s11143_s18 + $0x238] sm:$0xff] }
 0x120   : > { %8209 = vmatpush1.bf16.msra.mxu1 %v9637_v22  ;;  %6066 = vmatprep.mubr.msk.f32.mxu1 %vm817_vm0, %v6041_v53  ;;  %v796_v22 = vld [vmem:[%s11143_s18 + $0x38] sm:$0xff]  ;;  %v6126_v53 = vld [vmem:[%s11143_s18 + $0x230] sm:$0xff] }
 0x121   : > { %8210 = vmatprep.subr.bf16.mxu1 %v9260_v0  ;;  %6024 = vmatprep.mubr.msk.f32.mxu0 %vm817_vm0, %v794_v20  ;;  %v6080_v20 = vld [vmem:[%s11144_s29 + $0x30] sm:$0xff] }
 0x123   : > { %1145 = vmatmul.mubr.f32.gmra.mrb[4].mxu1 %v6040_v54  ;;  %935 = vmatmul.mubr.f32.gmra.mrb[4].mxu0 %v793_v55  ;;  %v6081_v54 = vld [vmem:[%s11144_s29 + $0x38] sm:$0xf]  ;;  %v6129_v55 = vld [vmem:[%s11143_s18 + $0x248] sm:$0xff] }
 0x124   : > { %8212 = vmatpush1.bf16.msra.mxu1 %v9645_v29  ;;  %6067 = vmatprep.mubr.msk.f32.mxu1 %vm817_vm0, %v6043_v56  ;;  %v798_v29 = vld [vmem:[%s11143_s18 + $0x48] sm:$0xff]  ;;  %v8188_v56 = vpack.c.bf16 %v6081_v54, %v6080_v20 }
 0x125   : > { %8213 = vmatprep.subr.bf16.mxu1 %v9260_v0  ;;  %6025 = vmatprep.mubr.msk.f32.mxu0 %vm817_vm0, %v796_v22 }
 0x126   : > { %8190 = vmatprep.subr.msk.bf16.mxu0 %vm10027_vm3, %v8188_v56 }
 0x127   : > { %1150 = vmatmul.mubr.f32.gmra.mrb[6].mxu1 %v6042_v57  ;;  %940 = vmatmul.mubr.f32.gmra.mrb[6].mxu0 %v795_v59  ;;  %v6128_v57 = vld [vmem:[%s11143_s18 + $0x240] sm:$0xff]  ;;  %v6131_v59 = vld [vmem:[%s11143_s18 + $0x258] sm:$0xff] }
 0x128   : > { %8215 = vmatpush1.bf16.msra.mxu1 %v9653_v36  ;;  %6068 = vmatprep.mubr.msk.f32.mxu1 %vm817_vm0, %v6045_v60  ;;  %v800_v36 = vld [vmem:[%s11143_s18 + $0x58] sm:$0xff]  ;;  %v6130_v60 = vld [vmem:[%s11143_s18 + $0x250] sm:$0xff] }
 0x129   : > { %8216 = vmatprep.subr.bf16.mxu1 %v9260_v0  ;;  %6026 = vmatprep.mubr.msk.f32.mxu0 %vm817_vm0, %v798_v29  ;;  %v6133_v29 = vld [vmem:[%s11143_s18 + $0x268] sm:$0xff] }
 0x12a   : > { %8193 = vmatpush3.bf16.msk.msra.mxu0 %vm10027_vm3, %v8188_v56 }
 0x12b   : > { %1155 = vmatmul.mubr.f32.gmra.mrb[8].mxu1 %v6044_v61  ;;  %945 = vmatmul.mubr.f32.gmra.mrb[8].mxu0 %v797_v62  ;;  %v6132_v61 = vld [vmem:[%s11143_s18 + $0x260] sm:$0xff]  ;;  %v6135_v62 = vld [vmem:[%s11143_s18 + $0x278] sm:$0xff] }
 0x12c   : > { %8218 = vmatpush1.bf16.msra.mxu1 %v9661_v43  ;;  %6069 = vmatprep.mubr.msk.f32.mxu1 %vm817_vm0, %v6047_v63  ;;  %v802_v43 = vld [vmem:[%s11143_s18 + $0x68] sm:$0xff]  ;;  %v6134_v63 = vld [vmem:[%s11143_s18 + $0x270] sm:$0xff] }
 0x12d   : > { %8219 = vmatprep.subr.bf16.mxu1 %v9260_v0  ;;  %6027 = vmatprep.mubr.msk.f32.mxu0 %vm817_vm0, %v800_v36  ;;  %v6137_v36 = vld [vmem:[%s11143_s18 + $0x288] sm:$0xff] }
 0x12f   : > { %1160 = vmatmul.mubr.f32.gmra.mrb[10].mxu1 %v6046_v1  ;;  %950 = vmatmul.mubr.f32.gmra.mrb[10].mxu0 %v799_v3  ;;  %v6136_v1 = vld [vmem:[%s11143_s18 + $0x280] sm:$0xff]  ;;  %v6139_v3 = vld [vmem:[%s11143_s18 + $0x298] sm:$0xff] }
 0x130   : > { %8221 = vmatpush1.bf16.msra.mxu1 %v9672_v51  ;;  %6070 = vmatprep.mubr.msk.f32.mxu1 %vm817_vm0, %v6049_v4  ;;  %v804_v51 = vld [vmem:[%s11143_s18 + $0x78] sm:$0xff]  ;;  %v6138_v4 = vld [vmem:[%s11143_s18 + $0x290] sm:$0xff] }
 0x131   : > { %8222 = vmatprep.subr.bf16.mxu1 %v9260_v0  ;;  %6028 = vmatprep.mubr.msk.f32.mxu0 %vm817_vm0, %v802_v43  ;;  %v995_v43 = vld [vmem:[%s11144_s29] sm:$0xff] }
 0x133   : > { %1165 = vmatmul.mubr.f32.gmra.mrb[12].mxu1 %v6048_v5  ;;  %955 = vmatmul.mubr.f32.gmra.mrb[12].mxu0 %v801_v6  ;;  %v996_v5 = vld [vmem:[%s11144_s29 + $0x8] sm:$0xff] }
 0x134   : > { %8224 = vmatpush1.bf16.msra.mxu1 %v9681_v58  ;;  %6071 = vmatprep.mubr.msk.f32.mxu1 %vm817_vm0, %v6051_v7  ;;  %v806_v58 = vld [vmem:[%s11143_s18 + $0x88] sm:$0xff]  ;;  %v8194_v6 = vpack.c.bf16 %v996_v5, %v995_v43  ;;  %v6156_v5 = vld [vmem:[%s11144_s29 + $0x50] sm:$0xff] }
 0x135   : > { %8225 = vmatprep.subr.bf16.mxu1 %v9260_v0  ;;  %6029 = vmatprep.mubr.msk.f32.mxu0 %vm817_vm0, %v804_v51 }
 0x136   : > { %8195 = vmatprep.subr.bf16.mxu0 %v8194_v6 }
 0x137   : > { %1170 = vmatmul.mubr.f32.gmra.mrb[14].mxu1 %v6050_v8  ;;  %960 = vmatmul.mubr.f32.gmra.mrb[14].mxu0 %v803_v10  ;;  %v997_v8 = vld [vmem:[%s11144_s29 + $0x10] sm:$0xff]  ;;  %v998_v10 = vld [vmem:[%s11144_s29 + $0x18] sm:$0xf] }
 0x138   : > { %8227 = vmatpush1.bf16.msra.mxu1 %v9689_v2  ;;  %6072 = vmatprep.mubr.msk.f32.mxu1 %vm817_vm0, %v6053_v11  ;;  %v808_v2 = vld [vmem:[%s11143_s18 + $0x98] sm:$0xff] }
 0x139   : > { %8228 = vmatprep.subr.bf16.mxu1 %v9260_v0  ;;  %6030 = vmatprep.mubr.msk.f32.mxu0 %vm817_vm0, %v806_v58 }
 0x13b   : > { %1175 = vmatmul.mubr.f32.gmra.mrb[16].mxu1 %v6052_v12  ;;  %965 = vmatmul.mubr.f32.gmra.mrb[16].mxu0 %v805_v13  ;;  %v8198_v12 = vpack.c.bf16 %v998_v10, %v997_v8 }
 0x13c   : > { %8230 = vmatpush1.bf16.msra.mxu1 %v9697_v9  ;;  %6073 = vmatprep.mubr.msk.f32.mxu1 %vm817_vm0, %v6055_v14  ;;  %v810_v9 = vld [vmem:[%s11143_s18 + $0xa8] sm:$0xff] }
 0x13d   : > { %8231 = vmatprep.subr.bf16.mxu1 %v9260_v0  ;;  %6031 = vmatprep.mubr.msk.f32.mxu0 %vm817_vm0, %v808_v2  ;;  %v6154_v2 = vld [vmem:[%s11144_s29 + $0x40] sm:$0xff] }
 0x13f   : > { %1180 = vmatmul.mubr.f32.gmra.mrb[18].mxu1 %v6054_v15  ;;  %970 = vmatmul.mubr.f32.gmra.mrb[18].mxu0 %v807_v17  ;;  %v6155_v15 = vld [vmem:[%s11144_s29 + $0x48] sm:$0xff] }
 0x140   : > { %8233 = vmatpush1.bf16.msra.mxu1 %v9705_v16  ;;  %6074 = vmatprep.mubr.msk.f32.mxu1 %vm817_vm0, %v6057_v18  ;;  %v812_v16 = vld [vmem:[%s11143_s18 + $0xb8] sm:$0xff] }
 0x141   : > { %8234 = vmatprep.subr.bf16.mxu1 %v9260_v0  ;;  %6032 = vmatprep.mubr.msk.f32.mxu0 %vm817_vm0, %v810_v9  ;;  %v10100_v9 = vpack.c.bf16 %v6155_v15, %v6154_v2 }
 0x143   : > { %1185 = vmatmul.mubr.f32.gmra.mrb[20].mxu1 %v6056_v19  ;;  %975 = vmatmul.mubr.f32.gmra.mrb[20].mxu0 %v809_v21 }
 0x144   : > { %8236 = vmatpush1.bf16.msra.mxu1 %v9713_v25  ;;  %6075 = vmatprep.mubr.msk.f32.mxu1 %vm817_vm0, %v6059_v23  ;;  %v814_v25 = vld [vmem:[%s11143_s18 + $0xc8] sm:$0xff] }
 0x145   : > { %8237 = vmatprep.subr.bf16.mxu1 %v9260_v0  ;;  %6033 = vmatprep.mubr.msk.f32.mxu0 %vm817_vm0, %v812_v16 }
 0x147   : > { %1190 = vmatmul.mubr.f32.gmra.mrb[22].mxu1 %v6058_v24  ;;  %980 = vmatmul.mubr.f32.gmra.mrb[22].mxu0 %v811_v26 }
 0x148   : > { %8239 = vmatpush1.bf16.msra.mxu1 %v9721_v33  ;;  %6076 = vmatprep.mubr.msk.f32.mxu1 %vm817_vm0, %v6061_v27  ;;  %v6062_v33 = vld [vmem:[%s11143_s18 + $0x1b0] sm:$0xff] }
 0x149   : > { %8240 = vmatprep.subr.bf16.mxu1 %v9260_v0  ;;  %6034 = vmatprep.mubr.msk.f32.mxu0 %vm817_vm0, %v814_v25 }
 0x14b   : > { %1195 = vmatmul.mubr.f32.gmra.mrb[24].mxu1 %v6060_v28  ;;  %985 = vmatmul.mubr.f32.gmra.mrb[24].mxu0 %v813_v30 }
 0x14c   : > { %8242 = vmatpush1.bf16.msra.mxu1 %v9727_v38  ;;  %6077 = vmatprep.mubr.msk.f32.mxu1 %vm817_vm0, %v6063_v31  ;;  %v6115_v38 = vld [vmem:[%s11143_s18 + $0x1d8] sm:$0xff] }
 0x14d   : > { %8243 = vmatprep.subr.bf16.mxu1 %v9260_v0  ;;  %6035 = vmatprep.mubr.msk.f32.mxu0 %vm817_vm0, %v816_v32 }
 0x14f   : > { %1200 = vmatmul.mubr.f32.gmra.mrb[26].mxu1 %v6062_v33  ;;  %990 = vmatmul.mubr.f32.gmra.mrb[26].mxu0 %v815_v34 }
 0x150   : > { %8245 = vmatpush1.bf16.msra.mxu1 %v9739_v44  ;;  %6140 = vmatprep.mubr.msk.f32.mxu1 %vm817_vm0, %v6113_v35  ;;  %v6118_v44 = vld [vmem:[%s11143_s18 + $0x1f0] sm:$0xff] }
 0x153   : > { %1708 = vmatmul.mubr.f32.vlgmr.msra.gmra.mrb[28].mxu1 %v6112_v37 }
 0x154   : > { %6141 = vmatprep.mubr.msk.f32.mxu1 %vm817_vm0, %v6115_v38 }
 0x157   : > { %1713 = vmatmul.mubr.f32.gmra.mrb[30].mxu1 %v6114_v39 }
 0x158   : > { %6142 = vmatprep.mubr.msk.f32.mxu1 %vm817_vm0, %v6117_v40 }
 0x15b   : > { %1718 = vmatmul.mubr.f32.gmra.mrb[32].mxu1 %v6116_v41 }
 0x15c   : > { %6143 = vmatprep.mubr.msk.f32.mxu1 %vm817_vm0, %v6119_v42 }
 0x15f   : > { %1723 = vmatmul.mubr.f32.gmra.mrb[34].mxu1 %v6118_v44 }
 0x160   : > { %6144 = vmatprep.mubr.msk.f32.mxu1 %vm817_vm0, %v6121_v45 }
 0x163   : > { %1728 = vmatmul.mubr.f32.gmra.mrb[36].mxu1 %v6120_v46 }
 0x164   : > { %6145 = vmatprep.mubr.msk.f32.mxu1 %vm817_vm0, %v6123_v47 }
 0x167   : > { %1733 = vmatmul.mubr.f32.gmra.mrb[38].mxu1 %v6122_v48 }
 0x168   : > { %6146 = vmatprep.mubr.msk.f32.mxu1 %vm817_vm0, %v6125_v49 }
 0x16b   : > { %1738 = vmatmul.mubr.f32.gmra.mrb[40].mxu1 %v6124_v50 }
 0x16c   : > { %6147 = vmatprep.mubr.msk.f32.mxu1 %vm817_vm0, %v6127_v52 }
 0x16f   : > { %1743 = vmatmul.mubr.f32.gmra.mrb[42].mxu1 %v6126_v53 }
 0x170   : > { %6148 = vmatprep.mubr.msk.f32.mxu1 %vm817_vm0, %v6129_v55 }
 0x173   : > { %1748 = vmatmul.mubr.f32.gmra.mrb[44].mxu1 %v6128_v57 }
 0x174   : > { %6149 = vmatprep.mubr.msk.f32.mxu1 %vm817_vm0, %v6131_v59 }
 0x177   : > { %1753 = vmatmul.mubr.f32.gmra.mrb[46].mxu1 %v6130_v60 }
 0x178   : > { %6150 = vmatprep.mubr.msk.f32.mxu1 %vm817_vm0, %v6133_v29 }
 0x17b   : > { %1758 = vmatmul.mubr.f32.gmra.mrb[48].mxu1 %v6132_v61 }
 0x17c   : > { %6151 = vmatprep.mubr.msk.f32.mxu1 %vm817_vm0, %v6135_v62 }
 0x17f   : > { %1763 = vmatmul.mubr.f32.gmra.mrb[50].mxu1 %v6134_v63 }
 0x180   : > { %6152 = vmatprep.mubr.msk.f32.mxu1 %vm817_vm0, %v6137_v36 }
 0x183   : > { %1768 = vmatmul.mubr.f32.gmra.mrb[52].mxu1 %v6136_v1 }
 0x184   : > { %6153 = vmatprep.mubr.msk.f32.mxu1 %vm817_vm0, %v6139_v3 }
 0x187   : > { %1773 = vmatmul.mubr.f32.gmra.mrb[54].mxu1 %v6138_v4 }
 0x1ee   : > { %v1136_v7 = vpop.f32.mrb[0].mxu1  ;;  %v10080_v51 = vpop.f32.mrb[0].mxu0 }
 0x1ef   : > { %v1138_v11 = vpop.f32.mrb[1].mxu1  ;;  %6983 = vmatprep.mubr.msk.f32.mxu0 %vm1210_vm4, %v1136_v7  ;;  %v928_v58 = vpop.f32.mrb[1].mxu0 }
 0x1f0   : > { %v6188_v58 = vld [vmem:[%s11079_s4 + $0x70] sm:$0xff] }
 0x1f2   : > { %v1141_v13 = vpop.f32.mrb[2].mxu1  ;;  %v10089_v14 = vpop.f32.mrb[2].mxu0 }
 0x1f3   : > { %v1143_v17 = vpop.f32.mrb[3].mxu1  ;;  %6984 = vmatmul.mubr.msk.f32.vlgmr.msra.gmra.mrb[28].mxu0 %vm1210_vm4, %v1141_v13  ;;  %v933_v18 = vpop.f32.mrb[3].mxu0 }
 0x1f4   : > { %8197 = vmatpush3.bf16.msra.mxu0 %v8194_v6  ;;  %v6157_v6 = vld [vmem:[%s11144_s29 + $0x58] sm:$0xf] }
 0x1f5   : > { %8200 = vmatprep.subr.msk.bf16.mxu0 %vm10027_vm3, %v8198_v12  ;;  %v8250_v10 = vpack.c.bf16 %v6157_v6, %v6156_v5  ;;  %v2206_v5 = vld [vmem:[%s11079_s4 + $0x10] sm:$0xff]  ;;  %v2207_v6 = vld [vmem:[%s11079_s4 + $0x18] sm:$0xff] }
 0x1f6   : > { %v1146_v19 = vpop.f32.mrb[4].mxu1  ;;  %v10102_v21 = vpop.f32.mrb[4].mxu0 }
 0x1f7   : > { %v1148_v23 = vpop.f32.mrb[5].mxu1  ;;  %6986 = vmatprep.mubr.msk.f32.mxu0 %vm1210_vm4, %v1146_v19  ;;  %v938_v16 = vpop.f32.mrb[5].mxu0 }
 0x1f8   : > { %8203 = vmatpush3.bf16.msk.msra.mxu0 %vm10027_vm3, %v8198_v12  ;;  %v6189_v12 = vld [vmem:[%s11079_s4 + $0x78] sm:$0xff] }
 0x1f9   : > { %8247 = vmatprep.subr.bf16.mxu0 %v10100_v9 }
 0x1fa   : > { %v1151_v24 = vpop.f32.mrb[6].mxu1  ;;  %v10108_v26 = vpop.f32.mrb[6].mxu0 }
 0x1fb   : > { %v1153_v27 = vpop.f32.mrb[7].mxu1  ;;  %6987 = vmatmul.mubr.msk.f32.gmra.mrb[30].mxu0 %vm1210_vm4, %v1151_v24  ;;  %v943_v25 = vpop.f32.mrb[7].mxu0  ;;  %v6190_v24 = vld [vmem:[%s11079_s4 + $0x80] sm:$0xff] }
 0x1fe   : > { %v1156_v28 = vpop.f32.mrb[8].mxu1  ;;  %v10111_v30 = vpop.f32.mrb[8].mxu0 }
 0x1ff   : > { %v1158_v31 = vpop.f32.mrb[9].mxu1  ;;  %6989 = vmatprep.mubr.msk.f32.mxu0 %vm1210_vm4, %v1156_v28  ;;  %v948_v32 = vpop.f32.mrb[9].mxu0 }
 0x200   : > { %v6193_v31 = vld [vmem:[%s11079_s4 + $0x98] sm:$0xff] }
 0x202   : > { %v1161_v33 = vpop.f32.mrb[10].mxu1  ;;  %v10114_v34 = vpop.f32.mrb[10].mxu0 }
 0x203   : > { %v1163_v35 = vpop.f32.mrb[11].mxu1  ;;  %6990 = vmatmul.mubr.msk.f32.gmra.mrb[32].mxu0 %vm1210_vm4, %v1161_v33  ;;  %v953_v37 = vpop.f32.mrb[11].mxu0 }
 0x204   : > { %v6194_v35 = vld [vmem:[%s11079_s4 + $0xa0] sm:$0xff]  ;;  %v6195_v37 = vld [vmem:[%s11079_s4 + $0xa8] sm:$0xff] }
 0x206   : > { %v1166_v38 = vpop.f32.mrb[12].mxu1  ;;  %v956_v39 = vpop.f32.mrb[12].mxu0 }
 0x207   : > { %v1168_v40 = vpop.f32.mrb[13].mxu1  ;;  %6992 = vmatprep.mubr.msk.f32.mxu0 %vm1210_vm4, %v1166_v38  ;;  %v958_v41 = vpop.f32.mrb[13].mxu0 }
 0x208   : > { %v6196_v41 = vld [vmem:[%s11079_s4 + $0xb0] sm:$0xff] }
 0x20a   : > { %v1171_v42 = vpop.f32.mrb[14].mxu1  ;;  %v961_v44 = vpop.f32.mrb[14].mxu0 }
 0x20b   : > { %v1173_v45 = vpop.f32.mrb[15].mxu1  ;;  %6993 = vmatmul.mubr.msk.f32.gmra.mrb[34].mxu0 %vm1210_vm4, %v1171_v42  ;;  %v963_v46 = vpop.f32.mrb[15].mxu0  ;;  %v6197_v42 = vld [vmem:[%s11079_s4 + $0xb8] sm:$0xff] }
 0x20c   : > { %v8300_v45 = vpack.c.bf16 %v6197_v42, %v6196_v41 }
 0x20e   : > { %v1176_v47 = vpop.f32.mrb[16].mxu1  ;;  %v966_v48 = vpop.f32.mrb[16].mxu0 }
 0x20f   : > { %v1178_v49 = vpop.f32.mrb[17].mxu1  ;;  %6995 = vmatprep.mubr.msk.f32.mxu0 %vm1210_vm4, %v1176_v47  ;;  %v968_v50 = vpop.f32.mrb[17].mxu0  ;;  %v6198_v47 = vld [vmem:[%s11079_s4 + $0xc0] sm:$0xff] }
 0x212   : > { %v1181_v52 = vpop.f32.mrb[18].mxu1  ;;  %v971_v53 = vpop.f32.mrb[18].mxu0 }
 0x213   : > { %v1183_v20 = vpop.f32.mrb[19].mxu1  ;;  %6996 = vmatmul.mubr.msk.f32.gmra.mrb[36].mxu0 %vm1210_vm4, %v1181_v52  ;;  %v973_v54 = vpop.f32.mrb[19].mxu0 }
 0x216   : > { %v1186_v55 = vpop.f32.mrb[20].mxu1  ;;  %v976_v56 = vpop.f32.mrb[20].mxu0 }
 0x217   : > { %v1188_v57 = vpop.f32.mrb[21].mxu1  ;;  %6998 = vmatprep.mubr.msk.f32.mxu0 %vm1210_vm4, %v1186_v55  ;;  %v978_v59 = vpop.f32.mrb[21].mxu0 }
 0x218   : > { %v6200_v57 = vld [vmem:[%s11079_s4 + $0xd0] sm:$0xff]  ;;  %v6201_v59 = vld [vmem:[%s11079_s4 + $0xd8] sm:$0xff] }
 0x21a   : > { %v1191_v60 = vpop.f32.mrb[22].mxu1  ;;  %v981_v29 = vpop.f32.mrb[22].mxu0 }
 0x21b   : > { %v1193_v61 = vpop.f32.mrb[23].mxu1  ;;  %6999 = vmatmul.mubr.msk.f32.gmra.mrb[38].mxu0 %vm1210_vm4, %v1191_v60  ;;  %v983_v62 = vpop.f32.mrb[23].mxu0  ;;  %v8308_v60 = vpack.c.bf16 %v6201_v59, %v6200_v57  ;;  %v2217_v57 = vld [vmem:[%s11079_s4 + $0x68] sm:$0xff] }
 0x21c   : > { %v2204_v61 = vld [vmem:[%s11079_s4] sm:$0xff]  ;;  %v2205_v62 = vld [vmem:[%s11079_s4 + $0x8] sm:$0xff] }
 0x21e   : > { %v1196_v63 = vpop.f32.mrb[24].mxu1  ;;  %v986_v36 = vpop.f32.mrb[24].mxu0 }
 0x21f   : > { %v1198_v1 = vpop.f32.mrb[25].mxu1  ;;  %7001 = vmatprep.mubr.msk.f32.mxu0 %vm1210_vm4, %v1196_v63  ;;  %v988_v3 = vpop.f32.mrb[25].mxu0  ;;  %v8312_v63 = vpack.c.bf16 %v2205_v62, %v2204_v61 }
 0x222   : > { %v1201_v4 = vpop.f32.mrb[26].mxu1  ;;  %v991_v43 = vpop.f32.mrb[26].mxu0 }
 0x223   : > { %v1203_v7 = vpop.f32.mrb[27].mxu1  ;;  %7002 = vmatmul.mubr.msk.f32.gmra.mrb[40].mxu0 %vm1210_vm4, %v1201_v4  ;;  %v993_v8 = vpop.f32.mrb[27].mxu0 }
 0x224   : > { %7012 = vmatprep.mubr.msk.f32.mxu0 %vm1210_vm4, %v10080_v51  ;;  %v8284_v51 = vpack.c.bf16 %v6189_v12, %v6188_v58  ;;  %v8316_v12 = vpack.c.bf16 %v2207_v6, %v2206_v5  ;;  %v2013_v6 = vld [vmem:[#allocation2 + $0x8] sm:$0xff] }
 0x226   : > { %v1709_v11 = vpop.f32.mrb[28].mxu1 }
 0x227   : > { %7013 = vmatmul.mubr.msk.f32.vlgmr.msra.gmra.mrb[28].mxu0 %vm1210_vm4, %v10089_v14  ;;  %v1711_v13 = vpop.f32.mrb[29].mxu1 }
 0x228   : > { %7015 = vmatprep.mubr.msk.f32.mxu0 %vm1210_vm4, %v10102_v21  ;;  %8249 = vmatpush3.bf16.msra.mxu0 %v10100_v9 }
 0x229   : > { %8252 = vmatprep.subr.msk.bf16.mxu0 %vm10027_vm3, %v8250_v10 }
 0x22a   : > { %v1714_v2 = vpop.f32.mrb[30].mxu1 }
 0x22b   : > { %7016 = vmatmul.mubr.msk.f32.gmra.mrb[30].mxu0 %vm1210_vm4, %v10108_v26  ;;  %v1716_v15 = vpop.f32.mrb[31].mxu1  ;;  %v6191_v26 = vld [vmem:[%s11079_s4 + $0x88] sm:$0xff] }
 0x22c   : > { %7018 = vmatprep.mubr.msk.f32.mxu0 %vm1210_vm4, %v10111_v30  ;;  %8255 = vmatpush3.bf16.msk.msra.mxu0 %vm10027_vm3, %v8250_v10  ;;  %v8288_v25 = vpack.c.bf16 %v6191_v26, %v6190_v24  ;;  %v6192_v30 = vld [vmem:[%s11079_s4 + $0x90] sm:$0xff]  ;;  %v2209_v15 = vld [vmem:[%s11079_s4 + $0x28] sm:$0xff]  ;;  %v2211_v24 = vld [vmem:[%s11079_s4 + $0x38] sm:$0xff] }
 0x22d   : > { %8285 = vmatprep.subr.bf16.mxu0 %v8284_v51  ;;  %v8292_v33 = vpack.c.bf16 %v6193_v31, %v6192_v30 }
 0x22e   : > { %v1719_v14 = vpop.f32.mrb[32].mxu1 }
 0x22f   : > { %7019 = vmatmul.mubr.msk.f32.gmra.mrb[32].mxu0 %vm1210_vm4, %v10114_v34  ;;  %v1721_v17 = vpop.f32.mrb[33].mxu1 }
 0x230   : > { %7021 = vmatprep.mubr.msk.f32.mxu0 %vm1210_vm4, %v956_v39  ;;  %v8296_v39 = vpack.c.bf16 %v6195_v37, %v6194_v35  ;;  %v2213_v35 = vld [vmem:[%s11079_s4 + $0x48] sm:$0xff] }
 0x232   : > { %v1724_v18 = vpop.f32.mrb[34].mxu1 }
 0x233   : > { %7022 = vmatmul.mubr.msk.f32.gmra.mrb[34].mxu0 %vm1210_vm4, %v961_v44  ;;  %v1726_v9 = vpop.f32.mrb[35].mxu1 }
 0x234   : > { %7024 = vmatprep.mubr.msk.f32.mxu0 %vm1210_vm4, %v966_v48  ;;  %v6199_v48 = vld [vmem:[%s11079_s4 + $0xc8] sm:$0xff] }
 0x235   : > { %v8304_v50 = vpack.c.bf16 %v6199_v48, %v6198_v47  ;;  %v2215_v47 = vld [vmem:[%s11079_s4 + $0x58] sm:$0xff] }
 0x236   : > { %v1729_v19 = vpop.f32.mrb[36].mxu1 }
 0x237   : > { %7025 = vmatmul.mubr.msk.f32.gmra.mrb[36].mxu0 %vm1210_vm4, %v971_v53  ;;  %v1731_v21 = vpop.f32.mrb[37].mxu1 }
 0x238   : > { %7027 = vmatprep.mubr.msk.f32.mxu0 %vm1210_vm4, %v976_v56 }
 0x23a   : > { %v1734_v22 = vpop.f32.mrb[38].mxu1 }
 0x23b   : > { %7028 = vmatmul.mubr.msk.f32.gmra.mrb[38].mxu0 %vm1210_vm4, %v981_v29  ;;  %v1736_v23 = vpop.f32.mrb[39].mxu1  ;;  %v2012_v29 = vld [vmem:[#allocation2] sm:$0xff] }
 0x23c   : > { %7030 = vmatprep.mubr.msk.f32.mxu0 %vm1210_vm4, %v986_v36  ;;  %7090 = vmatprep.mubr.msk.f32.mxu1 %vm2026_vm5, %v2012_v29  ;;  %v10222_v36 = vld [vmem:[%s11147_s28] ss:$0 sm:$0xff] }
 0x23e   : > { %v1739_v16 = vpop.f32.mrb[40].mxu1 }
 0x23f   : > { %7031 = vmatmul.mubr.msk.f32.gmra.mrb[40].mxu0 %vm1210_vm4, %v991_v43  ;;  %v1741_v27 = vpop.f32.mrb[41].mxu1 }
 0x240   : > { %7041 = vmatprep.mubr.msk.f32.mxu0 %vm1210_vm4, %v1709_v11 }
 0x242   : > { %v1744_v28 = vpop.f32.mrb[42].mxu1 }
 0x243   : > { %7042 = vmatmul.mubr.msk.f32.vlgmr.msra.gmra.mrb[28].mxu0 %vm1210_vm4, %v1714_v2  ;;  %v1746_v32 = vpop.f32.mrb[43].mxu1  ;;  %v2208_v2 = vld [vmem:[%s11079_s4 + $0x20] sm:$0xff] }
 0x244   : > { %7044 = vmatprep.mubr.msk.f32.mxu0 %vm1210_vm4, %v1719_v14  ;;  %8287 = vmatpush3.bf16.msra.mxu0 %v8284_v51  ;;  %v8320_v21 = vpack.c.bf16 %v2209_v15, %v2208_v2  ;;  %v2023_v2 = vld [vmem:[#allocation2 + $0x58] sm:$0xff]  ;;  %v2024_v15 = vld [vmem:[#allocation2 + $0x60] sm:$0xff] }
 0x245   : > { %8289 = vmatprep.subr.bf16.mxu0 %v8288_v25 }
 0x246   : > { %v1749_v34 = vpop.f32.mrb[44].mxu1 }
 0x247   : > { %7045 = vmatmul.mubr.msk.f32.gmra.mrb[30].mxu0 %vm1210_vm4, %v1724_v18  ;;  %v1751_v38 = vpop.f32.mrb[45].mxu1 }
 0x248   : > { %7047 = vmatprep.mubr.msk.f32.mxu0 %vm1210_vm4, %v1729_v19  ;;  %8291 = vmatpush3.bf16.msra.mxu0 %v8288_v25 }
 0x249   : > { %8293 = vmatprep.subr.bf16.mxu0 %v8292_v33 }
 0x24a   : > { %v1754_v40 = vpop.f32.mrb[46].mxu1 }
 0x24b   : > { %7048 = vmatmul.mubr.msk.f32.gmra.mrb[32].mxu0 %vm1210_vm4, %v1734_v22  ;;  %v1756_v44 = vpop.f32.mrb[47].mxu1 }
 0x24c   : > { %7050 = vmatprep.mubr.msk.f32.mxu0 %vm1210_vm4, %v1739_v16  ;;  %8295 = vmatpush3.bf16.msra.mxu0 %v8292_v33  ;;  %v2210_v16 = vld [vmem:[%s11079_s4 + $0x30] sm:$0xff] }
 0x24d   : > { %8297 = vmatprep.subr.bf16.mxu0 %v8296_v39  ;;  %v8324_v31 = vpack.c.bf16 %v2211_v24, %v2210_v16  ;;  %v2595_v16 = vld [vmem:[#allocation2 + $0x118] sm:$0xff]  ;;  %v2596_v24 = vld [vmem:[#allocation2 + $0x120] sm:$0xff] }
 0x24e   : > { %v1759_v46 = vpop.f32.mrb[48].mxu1 }
 0x24f   : > { %7051 = vmatmul.mubr.msk.f32.gmra.mrb[34].mxu0 %vm1210_vm4, %v1744_v28  ;;  %v1761_v49 = vpop.f32.mrb[49].mxu1 }
 0x250   : > { %7053 = vmatprep.mubr.msk.f32.mxu0 %vm1210_vm4, %v1749_v34  ;;  %8299 = vmatpush3.bf16.msra.mxu0 %v8296_v39  ;;  %v2212_v34 = vld [vmem:[%s11079_s4 + $0x40] sm:$0xff] }
 0x251   : > { %8301 = vmatprep.subr.bf16.mxu0 %v8300_v45  ;;  %v8328_v42 = vpack.c.bf16 %v2213_v35, %v2212_v34  ;;  %v6246_v34 = vld [vmem:[%s11079_s4 + $0xf0] sm:$0xff]  ;;  %v6247_v35 = vld [vmem:[%s11079_s4 + $0xf8] sm:$0xff] }
 0x252   : > { %v1764_v52 = vpop.f32.mrb[50].mxu1 }
 0x253   : > { %7054 = vmatmul.mubr.msk.f32.gmra.mrb[36].mxu0 %vm1210_vm4, %v1754_v40  ;;  %v1766_v53 = vpop.f32.mrb[51].mxu1 }
 0x254   : > { %7056 = vmatprep.mubr.msk.f32.mxu0 %vm1210_vm4, %v1759_v46  ;;  %8303 = vmatpush3.bf16.msra.mxu0 %v8300_v45  ;;  %v2214_v46 = vld [vmem:[%s11079_s4 + $0x50] sm:$0xff] }
 0x255   : > { %8305 = vmatprep.subr.bf16.mxu0 %v8304_v50 }
 0x256   : > { %v1769_v20 = vpop.f32.mrb[52].mxu1 }
 0x257   : > { %7057 = vmatmul.mubr.msk.f32.gmra.mrb[38].mxu0 %vm1210_vm4, %v1764_v52  ;;  %v1771_v54 = vpop.f32.mrb[53].mxu1 }
 0x258   : > { %7059 = vmatprep.mubr.msk.f32.mxu0 %vm1210_vm4, %v1769_v20  ;;  %8307 = vmatpush3.bf16.msra.mxu0 %v8304_v50  ;;  %v8332_v20 = vpack.c.bf16 %v2215_v47, %v2214_v46  ;;  %v6250_v46 = vld [vmem:[%s11079_s4 + $0x110] sm:$0xff]  ;;  %v6251_v47 = vld [vmem:[%s11079_s4 + $0x118] sm:$0xff] }
 0x259   : > { %8309 = vmatprep.subr.bf16.mxu0 %v8308_v60 }
 0x25a   : > { %v1774_v55 = vpop.f32.mrb[54].mxu1 }
 0x25b   : > { %7060 = vmatmul.mubr.msk.f32.gmra.mrb[40].mxu0 %vm1210_vm4, %v1774_v55  ;;  %v1776_v56 = vpop.f32.mrb[55].mxu1 }
 0x25c   : > { %8311 = vmatpush3.bf16.msra.mxu0 %v8308_v60  ;;  %v2216_v56 = vld [vmem:[%s11079_s4 + $0x60] sm:$0xff] }
 0x25d   : > { %8313 = vmatprep.subr.bf16.mxu0 %v8312_v63 }
 0x316   : > { %v7043_v1 = vpop.f32.mrb[28].mxu0 }
 0x317   : > { %v1985_v3 = vadd.f32 %v7043_v1, %v10222_v36  ;;  %v1894_v4 = vpop.f32.mrb[29].mxu0 }
 0x318   : > { %v1984_v43 = vadd.f32 %v10222_v36, %v1894_v4 }
 0x319   : > { %v1999_v7 = vmax.f32 %v1985_v3, 0.0 }
 0x31a   : > { %v1998_v8 = vmax.f32 %v1984_v43, 0.0  ;;  %v7046_v10 = vpop.f32.mrb[30].mxu0 }
 0x31b   : > { %v1987_v11 = vadd.f32 %v7046_v10, %v10222_v36  ;;  %v1904_v58 = vpop.f32.mrb[31].mxu0  ;;  %v2017_v10 = vld [vmem:[#allocation2 + $0x28] sm:$0xff] }
 0x31c   : > { %v10233_v13 = vpack.c.bf16 %v1999_v7, %v1998_v8  ;;  %v1986_v51 = vadd.f32 %v10222_v36, %v1904_v58  ;;  %7139 = vmatprep.mubr.msk.f32.mxu0 %vm2026_vm5, %v1998_v8  ;;  %v2016_v8 = vld [vmem:[#allocation2 + $0x20] sm:$0xff]  ;;  %v2019_v58 = vld [vmem:[#allocation2 + $0x38] sm:$0xff] }
 0x31d   : > { %v2001_v14 = vmax.f32 %v1987_v11, 0.0  ;;  %7140 = vmatmul.mubr.msk.f32.vlgmr.msra.gmra.mrb[42].mxu0 %vm2026_vm5, %v1999_v7  ;;  %v2015_v7 = vld [vmem:[#allocation2 + $0x18] sm:$0xff]  ;;  %v2018_v11 = vld [vmem:[#allocation2 + $0x30] sm:$0xff] }
 0x31e   : > { %v2000_v17 = vmax.f32 %v1986_v51, 0.0  ;;  %v7049_v18 = vpop.f32.mrb[32].mxu0  ;;  %8257 = vmatprep.subr.bf16.mxu1 %v10233_v13  ;;  %8315 = vmatpush3.bf16.msra.mxu0 %v8312_v63  ;;  %v8336_v63 = vpack.c.bf16 %v2217_v57, %v2216_v56  ;;  %v2022_v51 = vld [vmem:[#allocation2 + $0x50] sm:$0xff]  ;;  %v6255_v57 = vld [vmem:[%s11079_s4 + $0x138] sm:$0xff] }
 0x31f   : > { %v1989_v9 = vadd.f32 %v7049_v18, %v10222_v36  ;;  %v1914_v19 = vpop.f32.mrb[33].mxu0  ;;  %8259 = vmatpush3.bf16.msra.mxu1 %v10233_v13  ;;  %8317 = vmatprep.subr.bf16.mxu0 %v8316_v12  ;;  %v2589_v18 = vld [vmem:[#allocation2 + $0xe8] sm:$0xff]  ;;  %v6254_v56 = vld [vmem:[%s11079_s4 + $0x130] sm:$0xff] }
 0x320   : > { %v10247_v22 = vpack.c.bf16 %v2001_v14, %v2000_v17  ;;  %v1988_v23 = vadd.f32 %v10222_v36, %v1914_v19  ;;  %7142 = vmatprep.mubr.msk.f32.mxu0 %vm2026_vm5, %v2000_v17  ;;  %v2588_v17 = vld [vmem:[#allocation2 + $0xe0] sm:$0xff]  ;;  %v2591_v19 = vld [vmem:[#allocation2 + $0xf8] sm:$0xff] }
 0x321   : > { %v2003_v26 = vmax.f32 %v1989_v9, 0.0  ;;  %7143 = vmatmul.mubr.msk.f32.gmra.mrb[44].mxu0 %vm2026_vm5, %v2001_v14  ;;  %v2025_v14 = vld [vmem:[#allocation2 + $0x68] sm:$0xff]  ;;  %v2590_v9 = vld [vmem:[#allocation2 + $0xf0] sm:$0xff] }
 0x322   : > { %v2002_v27 = vmax.f32 %v1988_v23, 0.0  ;;  %v7052_v25 = vpop.f32.mrb[34].mxu0  ;;  %8261 = vmatprep.subr.bf16.mxu1 %v10247_v22  ;;  %8319 = vmatpush3.bf16.msra.mxu0 %v8316_v12  ;;  %v2020_v12 = vld [vmem:[#allocation2 + $0x40] sm:$0xff]  ;;  %v2594_v23 = vld [vmem:[#allocation2 + $0x110] sm:$0xff] }
 0x323   : > { %v1991_v28 = vadd.f32 %v7052_v25, %v10222_v36  ;;  %v1924_v30 = vpop.f32.mrb[35].mxu0  ;;  %8263 = vmatpush3.bf16.msra.mxu1 %v10247_v22  ;;  %8321 = vmatprep.subr.bf16.mxu0 %v8320_v21  ;;  %v2599_v25 = vld [vmem:[#allocation2 + $0x138] sm:$0xff] }
 0x324   : > { %v10261_v32 = vpack.c.bf16 %v2003_v26, %v2002_v27  ;;  %v1990_v33 = vadd.f32 %v10222_v36, %v1924_v30  ;;  %7145 = vmatprep.mubr.msk.f32.mxu0 %vm2026_vm5, %v2002_v27  ;;  %v2598_v27 = vld [vmem:[#allocation2 + $0x130] sm:$0xff]  ;;  %v2601_v30 = vld [vmem:[#allocation2 + $0x148] sm:$0xff] }
 0x325   : > { %v2005_v37 = vmax.f32 %v1991_v28, 0.0  ;;  %7146 = vmatmul.mubr.msk.f32.gmra.mrb[46].mxu0 %vm2026_vm5, %v2003_v26  ;;  %v2597_v26 = vld [vmem:[#allocation2 + $0x128] sm:$0xff]  ;;  %v2600_v28 = vld [vmem:[#allocation2 + $0x140] sm:$0xff] }
 0x326   : > { %v2004_v38 = vmax.f32 %v1990_v33, 0.0  ;;  %v7055_v39 = vpop.f32.mrb[36].mxu0  ;;  %8265 = vmatprep.subr.bf16.mxu1 %v10261_v32  ;;  %8323 = vmatpush3.bf16.msra.mxu0 %v8320_v21  ;;  %v2592_v21 = vld [vmem:[#allocation2 + $0x100] sm:$0xff] }
 0x327   : > { %v1993_v40 = vadd.f32 %v7055_v39, %v10222_v36  ;;  %v1934_v41 = vpop.f32.mrb[37].mxu0  ;;  %8267 = vmatpush3.bf16.msra.mxu1 %v10261_v32  ;;  %8325 = vmatprep.subr.bf16.mxu0 %v8324_v31  ;;  %v8372_v39 = vpack.c.bf16 %v6247_v35, %v6246_v34 }
 0x328   : > { %v10275_v44 = vpack.c.bf16 %v2005_v37, %v2004_v38  ;;  %v1992_v45 = vadd.f32 %v10222_v36, %v1934_v41  ;;  %7148 = vmatprep.mubr.msk.f32.mxu0 %vm2026_vm5, %v2004_v38  ;;  %v6249_v41 = vld [vmem:[%s11079_s4 + $0x108] sm:$0xff] }
 0x329   : > { %v2007_v48 = vmax.f32 %v1993_v40, 0.0  ;;  %7149 = vmatmul.mubr.msk.f32.gmra.mrb[48].mxu0 %vm2026_vm5, %v2005_v37  ;;  %v6248_v40 = vld [vmem:[%s11079_s4 + $0x100] sm:$0xff] }
 0x32a   : > { %v2006_v49 = vmax.f32 %v1992_v45, 0.0  ;;  %v7058_v50 = vpop.f32.mrb[38].mxu0  ;;  %8269 = vmatprep.subr.bf16.mxu1 %v10275_v44  ;;  %8327 = vmatpush3.bf16.msra.mxu0 %v8324_v31  ;;  %v6244_v31 = vld [vmem:[%s11079_s4 + $0xe0] sm:$0xff]  ;;  %v8376_v45 = vpack.c.bf16 %v6249_v41, %v6248_v40 }
 0x32b   : > { %v1995_v52 = vadd.f32 %v7058_v50, %v10222_v36  ;;  %v1944_v53 = vpop.f32.mrb[39].mxu0  ;;  %8271 = vmatpush3.bf16.msra.mxu1 %v10275_v44  ;;  %8329 = vmatprep.subr.bf16.mxu0 %v8328_v42  ;;  %v8380_v50 = vpack.c.bf16 %v6251_v47, %v6250_v46 }
 0x32c   : > { %v8272_v54 = vpack.c.bf16 %v2007_v48, %v2006_v49  ;;  %v1994_v55 = vadd.f32 %v10222_v36, %v1944_v53  ;;  %7151 = vmatprep.mubr.msk.f32.mxu0 %vm2026_vm5, %v2006_v49  ;;  %v6253_v53 = vld [vmem:[%s11079_s4 + $0x128] sm:$0xff] }
 0x32d   : > { %v2009_v59 = vmax.f32 %v1995_v52, 0.0  ;;  %7152 = vmatmul.mubr.msk.f32.gmra.mrb[50].mxu0 %vm2026_vm5, %v2007_v48  ;;  %v6252_v52 = vld [vmem:[%s11079_s4 + $0x120] sm:$0xff] }
 0x32e   : > { %v2008_v60 = vmax.f32 %v1994_v55, 0.0  ;;  %v7061_v29 = vpop.f32.mrb[40].mxu0  ;;  %8273 = vmatprep.subr.bf16.mxu1 %v8272_v54  ;;  %8331 = vmatpush3.bf16.msra.mxu0 %v8328_v42  ;;  %v8384_v55 = vpack.c.bf16 %v6253_v53, %v6252_v52 }
 0x32f   : > { %v1997_v61 = vadd.f32 %v7061_v29, %v10222_v36  ;;  %v1954_v62 = vpop.f32.mrb[41].mxu0  ;;  %8275 = vmatpush3.bf16.msra.mxu1 %v8272_v54  ;;  %8333 = vmatprep.subr.bf16.mxu0 %v8332_v20  ;;  %v8388_v29 = vpack.c.bf16 %v6255_v57, %v6254_v56 }
 0x330   : > { %v8276_v1 = vpack.c.bf16 %v2009_v59, %v2008_v60  ;;  %v1996_v3 = vadd.f32 %v10222_v36, %v1954_v62  ;;  %7154 = vmatprep.mubr.msk.f32.mxu0 %vm2026_vm5, %v2008_v60  ;;  %v2014_v36 = vld [vmem:[#allocation2 + $0x10] sm:$0xff]  ;;  %v6257_v62 = vld [vmem:[%s11079_s4 + $0x148] sm:$0xff] }
 0x331   : > { %v2011_v4 = vmax.f32 %v1997_v61, 0.0  ;;  %7155 = vmatmul.mubr.msk.f32.gmra.mrb[52].mxu0 %vm2026_vm5, %v2009_v59  ;;  %v6256_v61 = vld [vmem:[%s11079_s4 + $0x140] sm:$0xff] }
 0x332   : > { %v2010_v43 = vmax.f32 %v1996_v3, 0.0  ;;  %8277 = vmatprep.subr.bf16.mxu1 %v8276_v1  ;;  %8335 = vmatpush3.bf16.msra.mxu0 %v8332_v20  ;;  %v8392_v3 = vpack.c.bf16 %v6257_v62, %v6256_v61 }
 0x333   : > { %8279 = vmatpush3.bf16.msra.mxu1 %v8276_v1  ;;  %8337 = vmatprep.subr.bf16.mxu0 %v8336_v63 }
 0x334   : > { %v8280_v5 = vpack.c.bf16 %v2011_v4, %v2010_v43  ;;  %7157 = vmatprep.mubr.msk.f32.mxu0 %vm2026_vm5, %v2010_v43 }
 0x335   : > { %7158 = vmatmul.mubr.msk.f32.gmra.mrb[54].mxu0 %vm2026_vm5, %v2011_v4 }
 0x336   : > { %8281 = vmatprep.subr.bf16.mxu1 %v8280_v5  ;;  %8339 = vmatpush3.bf16.msra.mxu0 %v8336_v63 }
 0x337   : > { %8283 = vmatpush3.bf16.msra.mxu1 %v8280_v5 }
 0x338   : > { %8341 = vmatprep.subr.bf16.mxu1 %v10233_v13 }
 0x33a   : > { %7091 = vmatmul.mubr.msk.f32.vlgmr.msra.gmra.mrb[56].mxu1 %vm2026_vm5, %v2013_v6 }
 0x33b   : > { %8343 = vmatpush3.bf16.msra.mxu1 %v10233_v13  ;;  %7093 = vmatprep.mubr.msk.f32.mxu1 %vm2026_vm5, %v2014_v36  ;;  %v2021_v13 = vld [vmem:[#allocation2 + $0x48] sm:$0xff] }
 0x33c   : > { %8345 = vmatprep.subr.bf16.mxu1 %v10247_v22 }
 0x33e   : > { %7094 = vmatmul.mubr.msk.f32.gmra.mrb[58].mxu1 %vm2026_vm5, %v2015_v7 }
 0x33f   : > { %8347 = vmatpush3.bf16.msra.mxu1 %v10247_v22  ;;  %7096 = vmatprep.mubr.msk.f32.mxu1 %vm2026_vm5, %v2016_v8  ;;  %v2593_v22 = vld [vmem:[#allocation2 + $0x108] sm:$0xff] }
 0x340   : > { %8349 = vmatprep.subr.bf16.mxu1 %v10261_v32 }
 0x342   : > { %7097 = vmatmul.mubr.msk.f32.gmra.mrb[60].mxu1 %vm2026_vm5, %v2017_v10 }
 0x343   : > { %8351 = vmatpush3.bf16.msra.mxu1 %v10261_v32  ;;  %7099 = vmatprep.mubr.msk.f32.mxu1 %vm2026_vm5, %v2018_v11  ;;  %v6245_v32 = vld [vmem:[%s11079_s4 + $0xe8] sm:$0xff] }
 0x344   : > { %8353 = vmatprep.subr.bf16.mxu1 %v10275_v44  ;;  %v8368_v33 = vpack.c.bf16 %v6245_v32, %v6244_v31 }
 0x346   : > { %7100 = vmatmul.mubr.msk.f32.gmra.mrb[62].mxu1 %vm2026_vm5, %v2019_v58  ;;  %8369 = vmatprep.subr.bf16.mxu0 %v8368_v33 }
 0x347   : > { %8355 = vmatpush3.bf16.msra.mxu1 %v10275_v44  ;;  %7102 = vmatprep.mubr.msk.f32.mxu1 %vm2026_vm5, %v2020_v12 }
 0x348   : > { %8357 = vmatprep.subr.bf16.mxu1 %v8272_v54 }
 0x34a   : > { %7103 = vmatmul.mubr.msk.f32.gmra.mrb[64].mxu1 %vm2026_vm5, %v2021_v13 }
 0x34b   : > { %8359 = vmatpush3.bf16.msra.mxu1 %v8272_v54  ;;  %7105 = vmatprep.mubr.msk.f32.mxu1 %vm2026_vm5, %v2022_v51 }
 0x34c   : > { %8361 = vmatprep.subr.bf16.mxu1 %v8276_v1 }
 0x34e   : > { %7106 = vmatmul.mubr.msk.f32.gmra.mrb[66].mxu1 %vm2026_vm5, %v2023_v2 }
 0x34f   : > { %8363 = vmatpush3.bf16.msra.mxu1 %v8276_v1  ;;  %7108 = vmatprep.mubr.msk.f32.mxu1 %vm2026_vm5, %v2024_v15 }
 0x350   : > { %8365 = vmatprep.subr.bf16.mxu1 %v8280_v5 }
 0x352   : > { %7109 = vmatmul.mubr.msk.f32.gmra.mrb[68].mxu1 %vm2026_vm5, %v2025_v14 }
 0x353   : > { %8367 = vmatpush3.bf16.msra.mxu1 %v8280_v5  ;;  %7237 = vmatprep.mubr.msk.f32.mxu1 %vm2026_vm5, %v2588_v17  ;;  %v9263_v17 = vmov 0.0  }
 0x354   : > { %8396 = vmatprep.subr.bf16.mxu1 %v9260_v0 }
 0x356   : > { %7238 = vmatmul.mubr.msk.f32.vlgmr.msra.gmra.mrb[70].mxu1 %vm2026_vm5, %v2589_v18  ;;  %v3292_v18 = vld [vmem:[#allocation5 + $0x70] sm:$0xff] }
 0x357   : > { %7240 = vmatprep.mubr.msk.f32.mxu1 %vm2026_vm5, %v2590_v9  ;;  %v3293_v9 = vld [vmem:[#allocation5 + $0x78] sm:$0xff] }
 0x35a   : > { %7241 = vmatmul.mubr.msk.f32.gmra.mrb[72].mxu1 %vm2026_vm5, %v2591_v19  ;;  %v8439_v19 = vpack.c.bf16 %v3293_v9, %v3292_v18  ;;  %v3020_v18 = vld [vmem:[#allocation7] sm:$0xff]  ;;  %v3021_v9 = vld [vmem:[#allocation7 + $0x8] sm:$0xff] }
 0x35b   : > { %7243 = vmatprep.mubr.msk.f32.mxu1 %vm2026_vm5, %v2592_v21  ;;  %v3294_v21 = vld [vmem:[#allocation5 + $0x80] sm:$0xff] }
 0x35e   : > { %7244 = vmatmul.mubr.msk.f32.gmra.mrb[74].mxu1 %vm2026_vm5, %v2593_v22  ;;  %v3295_v22 = vld [vmem:[#allocation5 + $0x88] sm:$0xff] }
 0x35f   : > { %7246 = vmatprep.mubr.msk.f32.mxu1 %vm2026_vm5, %v2594_v23  ;;  %v8442_v23 = vpack.c.bf16 %v3295_v22, %v3294_v21  ;;  %v3023_v21 = vld [vmem:[#allocation7 + $0x18] sm:$0xff]  ;;  %v3024_v22 = vld [vmem:[#allocation7 + $0x20] sm:$0xff] }
 0x362   : > { %7247 = vmatmul.mubr.msk.f32.gmra.mrb[76].mxu1 %vm2026_vm5, %v2595_v16  ;;  %v3296_v16 = vld [vmem:[#allocation5 + $0x90] sm:$0xff] }
 0x363   : > { %7249 = vmatprep.mubr.msk.f32.mxu1 %vm2026_vm5, %v2596_v24  ;;  %v3297_v24 = vld [vmem:[#allocation5 + $0x98] sm:$0xff] }
 0x366   : > { %7250 = vmatmul.mubr.msk.f32.gmra.mrb[78].mxu1 %vm2026_vm5, %v2597_v26  ;;  %v8445_v26 = vpack.c.bf16 %v3297_v24, %v3296_v16  ;;  %v3026_v16 = vld [vmem:[#allocation7 + $0x30] sm:$0xff] }
 0x367   : > { %7252 = vmatprep.mubr.msk.f32.mxu1 %vm2026_vm5, %v2598_v27  ;;  %v3298_v27 = vld [vmem:[#allocation5 + $0xa0] sm:$0xff] }
 0x368   : > { %v3148_v24 = vld [vmem:[#allocation5] sm:$0xff] }
 0x36a   : > { %7253 = vmatmul.mubr.msk.f32.gmra.mrb[80].mxu1 %vm2026_vm5, %v2599_v25  ;;  %v3299_v25 = vld [vmem:[#allocation5 + $0xa8] sm:$0xff] }
 0x36b   : > { %7255 = vmatprep.mubr.msk.f32.mxu1 %vm2026_vm5, %v2600_v28  ;;  %v8448_v28 = vpack.c.bf16 %v3299_v25, %v3298_v27  ;;  %v3163_v27 = vld [vmem:[#allocation7 + $0x38] sm:$0xff] }
 0x36e   : > { %7256 = vmatmul.mubr.msk.f32.gmra.mrb[82].mxu1 %vm2026_vm5, %v2601_v30  ;;  %v6272_v30 = vld [vmem:[%s11081_s6] ss:$0 sm:$0xff] }
 0x36f   : > { %7335 = vmatprep.mubr.msk.f32.mxu1 %vm9262_vm6, %v9263_v17 }
 0x40d   : > { %v7092_v37 = vpop.f32.mrb[56].mxu1 }
 0x40e   : > { %v2135_v38 = vpop.f32.mrb[57].mxu1 }
 0x40f   : > { %7188 = vmatprep.mubr.msk.f32.mxu0 %vm2026_vm5, %v2135_v38 }
 0x410   : > { %7189 = vmatmul.mubr.msk.f32.vlgmr.msra.gmra.mrb[42].mxu0 %vm2026_vm5, %v7092_v37 }
 0x411   : > { %v7095_v42 = vpop.f32.mrb[58].mxu1  ;;  %8371 = vmatpush3.bf16.msra.mxu0 %v8368_v33 }
 0x412   : > { %v2145_v44 = vpop.f32.mrb[59].mxu1  ;;  %8373 = vmatprep.subr.bf16.mxu0 %v8372_v39 }
 0x413   : > { %7191 = vmatprep.mubr.msk.f32.mxu0 %vm2026_vm5, %v2145_v44 }
 0x414   : > { %7192 = vmatmul.mubr.msk.f32.gmra.mrb[44].mxu0 %vm2026_vm5, %v7095_v42 }
 0x415   : > { %v7098_v48 = vpop.f32.mrb[60].mxu1  ;;  %8375 = vmatpush3.bf16.msra.mxu0 %v8372_v39 }
 0x416   : > { %v2155_v49 = vpop.f32.mrb[61].mxu1  ;;  %8377 = vmatprep.subr.bf16.mxu0 %v8376_v45 }
 0x417   : > { %7194 = vmatprep.mubr.msk.f32.mxu0 %vm2026_vm5, %v2155_v49 }
 0x418   : > { %7195 = vmatmul.mubr.msk.f32.gmra.mrb[46].mxu0 %vm2026_vm5, %v7098_v48 }
 0x419   : > { %v7101_v20 = vpop.f32.mrb[62].mxu1  ;;  %8379 = vmatpush3.bf16.msra.mxu0 %v8376_v45 }
 0x41a   : > { %v2165_v54 = vpop.f32.mrb[63].mxu1  ;;  %8381 = vmatprep.subr.bf16.mxu0 %v8380_v50 }
 0x41b   : > { %7197 = vmatprep.mubr.msk.f32.mxu0 %vm2026_vm5, %v2165_v54 }
 0x41c   : > { %7198 = vmatmul.mubr.msk.f32.gmra.mrb[48].mxu0 %vm2026_vm5, %v7101_v20 }
 0x41d   : > { %v7104_v59 = vpop.f32.mrb[64].mxu1  ;;  %8383 = vmatpush3.bf16.msra.mxu0 %v8380_v50 }
 0x41e   : > { %v2175_v60 = vpop.f32.mrb[65].mxu1  ;;  %8385 = vmatprep.subr.bf16.mxu0 %v8384_v55 }
 0x41f   : > { %7200 = vmatprep.mubr.msk.f32.mxu0 %vm2026_vm5, %v2175_v60 }
 0x420   : > { %7201 = vmatmul.mubr.msk.f32.gmra.mrb[50].mxu0 %vm2026_vm5, %v7104_v59 }
 0x421   : > { %v7107_v63 = vpop.f32.mrb[66].mxu1  ;;  %8387 = vmatpush3.bf16.msra.mxu0 %v8384_v55 }
 0x422   : > { %v2185_v1 = vpop.f32.mrb[67].mxu1  ;;  %8389 = vmatprep.subr.bf16.mxu0 %v8388_v29 }
 0x423   : > { %7203 = vmatprep.mubr.msk.f32.mxu0 %vm2026_vm5, %v2185_v1 }
 0x424   : > { %7204 = vmatmul.mubr.msk.f32.gmra.mrb[52].mxu0 %vm2026_vm5, %v7107_v63 }
 0x425   : > { %v7110_v4 = vpop.f32.mrb[68].mxu1  ;;  %8391 = vmatpush3.bf16.msra.mxu0 %v8388_v29 }
 0x426   : > { %v2195_v43 = vpop.f32.mrb[69].mxu1  ;;  %8393 = vmatprep.subr.bf16.mxu0 %v8392_v3 }
 0x427   : > { %7206 = vmatprep.mubr.msk.f32.mxu0 %vm2026_vm5, %v2195_v43 }
 0x428   : > { %7207 = vmatmul.mubr.msk.f32.gmra.mrb[54].mxu0 %vm2026_vm5, %v7110_v4 }
 0x429   : > { %v7239_v5 = vpop.f32.mrb[70].mxu1  ;;  %8395 = vmatpush3.bf16.msra.mxu0 %v8392_v3 }
 0x42a   : > { %v2710_v6 = vpop.f32.mrb[71].mxu1  ;;  %8438 = vmatprep.subr.bf16.mxu0 %v9260_v0 }
 0x42b   : > { %7286 = vmatprep.mubr.msk.f32.mxu0 %vm2026_vm5, %v2710_v6 }
 0x42c   : > { %7287 = vmatmul.mubr.msk.f32.vlgmr.msra.gmra.mrb[42].mxu0 %vm2026_vm5, %v7239_v5 }
 0x42d   : > { %v7242_v36 = vpop.f32.mrb[72].mxu1  ;;  %8440 = vmatpush3.bf16.msra.mxu0 %v8439_v19  ;;  %v3022_v19 = vld [vmem:[#allocation7 + $0x10] sm:$0xff] }
 0x42e   : > { %v2720_v7 = vpop.f32.mrb[73].mxu1  ;;  %8441 = vmatprep.subr.bf16.mxu0 %v9260_v0 }
 0x42f   : > { %7289 = vmatprep.mubr.msk.f32.mxu0 %vm2026_vm5, %v2720_v7 }
 0x430   : > { %7290 = vmatmul.mubr.msk.f32.gmra.mrb[44].mxu0 %vm2026_vm5, %v7242_v36 }
 0x431   : > { %v7245_v8 = vpop.f32.mrb[74].mxu1  ;;  %8443 = vmatpush3.bf16.msra.mxu0 %v8442_v23  ;;  %v3025_v23 = vld [vmem:[#allocation7 + $0x28] sm:$0xff] }
 0x432   : > { %v2730_v10 = vpop.f32.mrb[75].mxu1  ;;  %8444 = vmatprep.subr.bf16.mxu0 %v9260_v0 }
 0x433   : > { %7292 = vmatprep.mubr.msk.f32.mxu0 %vm2026_vm5, %v2730_v10 }
 0x434   : > { %7293 = vmatmul.mubr.msk.f32.gmra.mrb[46].mxu0 %vm2026_vm5, %v7245_v8 }
 0x435   : > { %v7248_v11 = vpop.f32.mrb[76].mxu1  ;;  %8446 = vmatpush3.bf16.msra.mxu0 %v8445_v26  ;;  %v3149_v26 = vld [vmem:[#allocation5 + $0x8] sm:$0xff] }
 0x436   : > { %v2740_v58 = vpop.f32.mrb[77].mxu1  ;;  %8447 = vmatprep.subr.bf16.mxu0 %v9260_v0  ;;  %v8460_v25 = vpack.c.bf16 %v3149_v26, %v3148_v24 }
 0x437   : > { %7295 = vmatprep.mubr.msk.f32.mxu0 %vm2026_vm5, %v2740_v58 }
 0x438   : > { %7296 = vmatmul.mubr.msk.f32.gmra.mrb[48].mxu0 %vm2026_vm5, %v7248_v11 }
 0x439   : > { %v7251_v12 = vpop.f32.mrb[78].mxu1  ;;  %8449 = vmatpush3.bf16.msra.mxu0 %v8448_v28  ;;  %v3150_v28 = vld [vmem:[#allocation5 + $0x10] sm:$0xff] }
 0x43a   : > { %v2750_v13 = vpop.f32.mrb[79].mxu1  ;;  %8450 = vmatprep.subr.bf16.mxu0 %v9260_v0 }
 0x43b   : > { %7298 = vmatprep.mubr.msk.f32.mxu0 %vm2026_vm5, %v2750_v13 }
 0x43c   : > { %7299 = vmatmul.mubr.msk.f32.gmra.mrb[50].mxu0 %vm2026_vm5, %v7251_v12 }
 0x43d   : > { %v7254_v51 = vpop.f32.mrb[80].mxu1 }
 0x43e   : > { %v2760_v2 = vpop.f32.mrb[81].mxu1 }
 0x43f   : > { %7301 = vmatprep.mubr.msk.f32.mxu0 %vm2026_vm5, %v2760_v2 }
 0x440   : > { %7302 = vmatmul.mubr.msk.f32.gmra.mrb[52].mxu0 %vm2026_vm5, %v7254_v51 }
 0x441   : > { %v7257_v15 = vpop.f32.mrb[82].mxu1 }
 0x442   : > { %v2770_v14 = vpop.f32.mrb[83].mxu1 }
 0x443   : > { %7304 = vmatprep.mubr.msk.f32.mxu0 %vm2026_vm5, %v2770_v14 }
 0x444   : > { %7305 = vmatmul.mubr.msk.f32.gmra.mrb[54].mxu0 %vm2026_vm5, %v7257_v15 }
 0x445   : > { %7433 = vmatprep.mubr.msk.f32.mxu0 %vm9262_vm6, %v9263_v17 }
 0x4ff   : > { %v7288_v31 = vpop.f32.mrb[42].mxu0 }
 0x500   : > { %v2993_v32 = vadd.f32 %v7288_v31, %v6272_v30  ;;  %v2902_v33 = vpop.f32.mrb[43].mxu0  ;;  %v3164_v31 = vld [vmem:[#allocation7 + $0x40] sm:$0xff] }
 0x501   : > { %v2992_v34 = vadd.f32 %v6272_v30, %v2902_v33  ;;  %v3152_v33 = vld [vmem:[#allocation5 + $0x20] sm:$0xff] }
 0x502   : > { %v3007_v35 = vmax.f32 %v2993_v32, 0.0 }
 0x503   : > { %v3006_v37 = vmax.f32 %v2992_v34, 0.0  ;;  %v7291_v38 = vpop.f32.mrb[44].mxu0  ;;  %v3153_v34 = vld [vmem:[#allocation5 + $0x28] sm:$0xff] }
 0x504   : > { %v2995_v39 = vadd.f32 %v7291_v38, %v6272_v30  ;;  %v2912_v40 = vpop.f32.mrb[45].mxu0  ;;  %v3154_v38 = vld [vmem:[#allocation5 + $0x30] sm:$0xff] }
 0x505   : > { %v10422_v41 = vpack.c.bf16 %v3007_v35, %v3006_v37  ;;  %v2994_v42 = vadd.f32 %v6272_v30, %v2912_v40  ;;  %v3165_v35 = vld [vmem:[#allocation7 + $0x48] sm:$0xff]  ;;  %v8466_v37 = vpack.c.bf16 %v3153_v34, %v3152_v33  ;;  %v3166_v40 = vld [vmem:[#allocation7 + $0x50] sm:$0xff]  ;;  %v3554_v33 = vld [vmem:[#allocation7 + $0x98] sm:$0xff] }
 0x506   : > { %v3009_v44 = vmax.f32 %v2995_v39, 0.0  ;;  %v3155_v39 = vld [vmem:[#allocation5 + $0x38] sm:$0xff]  ;;  %v3555_v34 = vld [vmem:[#allocation7 + $0xa0] sm:$0xff] }
 0x507   : > { %v3008_v45 = vmax.f32 %v2994_v42, 0.0  ;;  %v7294_v46 = vpop.f32.mrb[46].mxu0  ;;  %8398 = vmatpush3.bf16.msra.mxu1 %v10422_v41  ;;  %v8469_v42 = vpack.c.bf16 %v3155_v39, %v3154_v38  ;;  %v3680_v39 = vld [vmem:[#allocation5 + $0xf0] sm:$0xff] }
 0x508   : > { %v2997_v47 = vadd.f32 %v7294_v46, %v6272_v30  ;;  %v2922_v48 = vpop.f32.mrb[47].mxu0  ;;  %8399 = vmatprep.subr.bf16.mxu1 %v9260_v0  ;;  %v3167_v46 = vld [vmem:[#allocation7 + $0x58] sm:$0xff] }
 0x509   : > { %v10426_v49 = vpack.c.bf16 %v3009_v44, %v3008_v45  ;;  %v2996_v50 = vadd.f32 %v6272_v30, %v2922_v48  ;;  %v3156_v44 = vld [vmem:[#allocation5 + $0x40] sm:$0xff]  ;;  %v3157_v45 = vld [vmem:[#allocation5 + $0x48] sm:$0xff]  ;;  %v3158_v48 = vld [vmem:[#allocation5 + $0x50] sm:$0xff] }
 0x50a   : > { %v3011_v52 = vmax.f32 %v2997_v47, 0.0  ;;  %v8472_v47 = vpack.c.bf16 %v3157_v45, %v3156_v44  ;;  %v3682_v44 = vld [vmem:[#allocation5 + $0x100] sm:$0xff]  ;;  %v3683_v45 = vld [vmem:[#allocation5 + $0x108] sm:$0xff] }
 0x50b   : > { %v3010_v53 = vmax.f32 %v2996_v50, 0.0  ;;  %v7297_v20 = vpop.f32.mrb[48].mxu0  ;;  %8401 = vmatpush3.bf16.msra.mxu1 %v10426_v49  ;;  %v3159_v50 = vld [vmem:[#allocation5 + $0x58] sm:$0xff] }
 0x50c   : > { %v2999_v54 = vadd.f32 %v7297_v20, %v6272_v30  ;;  %v2932_v55 = vpop.f32.mrb[49].mxu0  ;;  %8402 = vmatprep.subr.bf16.mxu1 %v9260_v0  ;;  %v3169_v20 = vld [vmem:[#allocation7 + $0x68] sm:$0xff] }
 0x50d   : > { %v10430_v56 = vpack.c.bf16 %v3011_v52, %v3010_v53  ;;  %v2998_v57 = vadd.f32 %v6272_v30, %v2932_v55  ;;  %v3168_v52 = vld [vmem:[#allocation7 + $0x60] sm:$0xff]  ;;  %v8475_v53 = vpack.c.bf16 %v3159_v50, %v3158_v48  ;;  %v3161_v55 = vld [vmem:[#allocation5 + $0x68] sm:$0xff]  ;;  %v3685_v48 = vld [vmem:[#allocation5 + $0x118] sm:$0xff] }
 0x50e   : > { %v3013_v59 = vmax.f32 %v2999_v54, 0.0  ;;  %v3160_v54 = vld [vmem:[#allocation5 + $0x60] sm:$0xff] }
 0x50f   : > { %v3012_v60 = vmax.f32 %v2998_v57, 0.0  ;;  %v7300_v29 = vpop.f32.mrb[50].mxu0  ;;  %8404 = vmatpush3.bf16.msra.mxu1 %v10430_v56  ;;  %v8478_v57 = vpack.c.bf16 %v3161_v55, %v3160_v54  ;;  %v3688_v54 = vld [vmem:[#allocation5 + $0x130] sm:$0xff]  ;;  %v3689_v55 = vld [vmem:[#allocation5 + $0x138] sm:$0xff] }
 0x510   : > { %v3001_v61 = vadd.f32 %v7300_v29, %v6272_v30  ;;  %v2942_v62 = vpop.f32.mrb[51].mxu0  ;;  %8405 = vmatprep.subr.bf16.mxu1 %v9260_v0 }
 0x511   : > { %v10434_v63 = vpack.c.bf16 %v3013_v59, %v3012_v60  ;;  %v3000_v1 = vadd.f32 %v6272_v30, %v2942_v62  ;;  %v3300_v59 = vld [vmem:[#allocation5 + $0xb0] sm:$0xff]  ;;  %v3301_v60 = vld [vmem:[#allocation5 + $0xb8] sm:$0xff]  ;;  %v3303_v62 = vld [vmem:[#allocation5 + $0xc8] sm:$0xff] }
 0x512   : > { %v3015_v3 = vmax.f32 %v3001_v61, 0.0  ;;  %v8451_v29 = vpack.c.bf16 %v3301_v60, %v3300_v59  ;;  %v3302_v61 = vld [vmem:[#allocation5 + $0xc0] sm:$0xff]  ;;  %v3691_v60 = vld [vmem:[#allocation5 + $0x148] sm:$0xff] }
 0x513   : > { %v3014_v4 = vmax.f32 %v3000_v1, 0.0  ;;  %v7303_v43 = vpop.f32.mrb[52].mxu0  ;;  %8407 = vmatpush3.bf16.msra.mxu1 %v10434_v63  ;;  %v8454_v1 = vpack.c.bf16 %v3303_v62, %v3302_v61  ;;  %v3690_v59 = vld [vmem:[#allocation5 + $0x140] sm:$0xff] }
 0x514   : > { %v3003_v5 = vadd.f32 %v7303_v43, %v6272_v30  ;;  %v2952_v6 = vpop.f32.mrb[53].mxu0  ;;  %8408 = vmatprep.subr.bf16.mxu1 %v9260_v0  ;;  %8452 = vmatpush3.bf16.msra.mxu0 %v8451_v29  ;;  %v8520_v29 = vpack.c.bf16 %v3691_v60, %v3690_v59 }
 0x515   : > { %v10438_v36 = vpack.c.bf16 %v3015_v3, %v3014_v4  ;;  %v3002_v7 = vadd.f32 %v6272_v30, %v2952_v6  ;;  %8453 = vmatprep.subr.bf16.mxu0 %v9260_v0  ;;  %v3304_v3 = vld [vmem:[#allocation5 + $0xd0] sm:$0xff]  ;;  %v3305_v4 = vld [vmem:[#allocation5 + $0xd8] sm:$0xff] }
 0x516   : > { %v3017_v8 = vmax.f32 %v3003_v5, 0.0  ;;  %v8457_v43 = vpack.c.bf16 %v3305_v4, %v3304_v3 }
 0x517   : > { %v3016_v10 = vmax.f32 %v3002_v7, 0.0  ;;  %v7306_v11 = vpop.f32.mrb[54].mxu0  ;;  %8410 = vmatpush3.bf16.msra.mxu1 %v10438_v36 }
 0x518   : > { %v3005_v58 = vadd.f32 %v7306_v11, %v6272_v30  ;;  %v2962_v12 = vpop.f32.mrb[55].mxu0  ;;  %8411 = vmatprep.subr.bf16.mxu1 %v9260_v0  ;;  %8455 = vmatpush3.bf16.msra.mxu0 %v8454_v1 }
 0x519   : > { %v10442_v13 = vpack.c.bf16 %v3017_v8, %v3016_v10  ;;  %v3004_v51 = vadd.f32 %v6272_v30, %v2962_v12  ;;  %v3151_v30 = vld [vmem:[#allocation5 + $0x18] sm:$0xff]  ;;  %8456 = vmatprep.subr.bf16.mxu0 %v9260_v0 }
 0x51a   : > { %v3019_v2 = vmax.f32 %v3005_v58, 0.0  ;;  %v8463_v32 = vpack.c.bf16 %v3151_v30, %v3150_v28  ;;  %v3549_v30 = vld [vmem:[#allocation7 + $0x70] sm:$0xff] }
 0x51b   : > { %v3018_v15 = vmax.f32 %v3004_v51, 0.0  ;;  %8413 = vmatpush3.bf16.msra.mxu1 %v10442_v13 }
 0x51c   : > { %8414 = vmatprep.subr.bf16.mxu1 %v9260_v0  ;;  %8458 = vmatpush3.bf16.msra.mxu0 %v8457_v43 }
 0x51d   : > { %v10446_v14 = vpack.c.bf16 %v3019_v2, %v3018_v15  ;;  %8480 = vmatprep.subr.bf16.mxu0 %v9260_v0 }
 0x51f   : > { %8416 = vmatpush3.bf16.msra.mxu1 %v10446_v14 }
 0x520   : > { %8417 = vmatprep.subr.bf16.mxu1 %v9260_v0 }
 0x522   : > { %7336 = vmatmul.mubr.msk.f32.vlgmr.msra.gmra.mrb[84].mxu1 %vm2026_vm5, %v3020_v18 }
 0x523   : > { %8419 = vmatpush3.bf16.msra.mxu1 %v10422_v41  ;;  %7338 = vmatprep.mubr.msk.f32.mxu1 %vm9262_vm6, %v9263_v17 }
 0x524   : > { %8420 = vmatprep.subr.bf16.mxu1 %v9260_v0 }
 0x526   : > { %7339 = vmatmul.mubr.msk.f32.gmra.mrb[86].mxu1 %vm2026_vm5, %v3021_v9 }
 0x527   : > { %8422 = vmatpush3.bf16.msra.mxu1 %v10426_v49  ;;  %7341 = vmatprep.mubr.msk.f32.mxu1 %vm9262_vm6, %v9263_v17 }
 0x528   : > { %8423 = vmatprep.subr.bf16.mxu1 %v9260_v0 }
 0x52a   : > { %7342 = vmatmul.mubr.msk.f32.gmra.mrb[88].mxu1 %vm2026_vm5, %v3022_v19 }
 0x52b   : > { %8425 = vmatpush3.bf16.msra.mxu1 %v10430_v56  ;;  %7344 = vmatprep.mubr.msk.f32.mxu1 %vm9262_vm6, %v9263_v17 }
 0x52c   : > { %8426 = vmatprep.subr.bf16.mxu1 %v9260_v0 }
 0x52e   : > { %7345 = vmatmul.mubr.msk.f32.gmra.mrb[90].mxu1 %vm2026_vm5, %v3023_v21 }
 0x52f   : > { %8428 = vmatpush3.bf16.msra.mxu1 %v10434_v63  ;;  %7347 = vmatprep.mubr.msk.f32.mxu1 %vm9262_vm6, %v9263_v17 }
 0x530   : > { %8429 = vmatprep.subr.bf16.mxu1 %v9260_v0 }
 0x532   : > { %7348 = vmatmul.mubr.msk.f32.gmra.mrb[92].mxu1 %vm2026_vm5, %v3024_v22 }
 0x533   : > { %8431 = vmatpush3.bf16.msra.mxu1 %v10438_v36  ;;  %7350 = vmatprep.mubr.msk.f32.mxu1 %vm9262_vm6, %v9263_v17 }
 0x534   : > { %8432 = vmatprep.subr.bf16.mxu1 %v9260_v0 }
 0x536   : > { %7351 = vmatmul.mubr.msk.f32.gmra.mrb[94].mxu1 %vm2026_vm5, %v3025_v23 }
 0x537   : > { %8434 = vmatpush3.bf16.msra.mxu1 %v10442_v13  ;;  %7353 = vmatprep.mubr.msk.f32.mxu1 %vm9262_vm6, %v9263_v17 }
 0x538   : > { %8435 = vmatprep.subr.bf16.mxu1 %v9260_v0 }
 0x53a   : > { %7354 = vmatmul.mubr.msk.f32.gmra.mrb[96].mxu1 %vm2026_vm5, %v3026_v16 }
 0x53b   : > { %8437 = vmatpush3.bf16.msra.mxu1 %v10446_v14  ;;  %7384 = vmatprep.mubr.msk.f32.mxu1 %vm9262_vm6, %v9263_v17 }
 0x53c   : > { %8459 = vmatprep.subr.bf16.mxu1 %v9260_v0 }
 0x53e   : > { %7385 = vmatmul.mubr.msk.f32.vlgmr.msra.gmra.mrb[98].mxu1 %vm2026_vm5, %v3163_v27 }
 0x53f   : > { %7387 = vmatprep.mubr.msk.f32.mxu1 %vm9262_vm6, %v9263_v17  ;;  %8461 = vmatpush3.bf16.msra.mxu1 %v8460_v25 }
 0x540   : > { %8462 = vmatprep.subr.bf16.mxu1 %v9260_v0 }
 0x542   : > { %7388 = vmatmul.mubr.msk.f32.gmra.mrb[100].mxu1 %vm2026_vm5, %v3164_v31  ;;  %v3551_v31 = vld [vmem:[#allocation7 + $0x80] sm:$0xff] }
 0x543   : > { %7390 = vmatprep.mubr.msk.f32.mxu1 %vm9262_vm6, %v9263_v17  ;;  %8464 = vmatpush3.bf16.msra.mxu1 %v8463_v32  ;;  %v3553_v32 = vld [vmem:[#allocation7 + $0x90] sm:$0xff] }
 0x544   : > { %8465 = vmatprep.subr.bf16.mxu1 %v9260_v0 }
 0x546   : > { %7391 = vmatmul.mubr.msk.f32.gmra.mrb[102].mxu1 %vm2026_vm5, %v3165_v35  ;;  %v3678_v35 = vld [vmem:[#allocation5 + $0xe0] sm:$0xff] }
 0x547   : > { %7393 = vmatprep.mubr.msk.f32.mxu1 %vm9262_vm6, %v9263_v17  ;;  %8467 = vmatpush3.bf16.msra.mxu1 %v8466_v37  ;;  %v3679_v37 = vld [vmem:[#allocation5 + $0xe8] sm:$0xff] }
 0x548   : > { %8468 = vmatprep.subr.bf16.mxu1 %v9260_v0  ;;  %v8502_v38 = vpack.c.bf16 %v3679_v37, %v3678_v35 }
 0x54a   : > { %7394 = vmatmul.mubr.msk.f32.gmra.mrb[104].mxu1 %vm2026_vm5, %v3166_v40  ;;  %v3681_v40 = vld [vmem:[#allocation5 + $0xf8] sm:$0xff] }
 0x54b   : > { %7396 = vmatprep.mubr.msk.f32.mxu1 %vm9262_vm6, %v9263_v17  ;;  %8470 = vmatpush3.bf16.msra.mxu1 %v8469_v42  ;;  %v8505_v42 = vpack.c.bf16 %v3681_v40, %v3680_v39  ;;  %v3990_v39 = vld [vmem:[#allocation8 + $0x98] sm:$0xff] }
 0x54c   : > { %8471 = vmatprep.subr.bf16.mxu1 %v9260_v0 }
 0x54e   : > { %7397 = vmatmul.mubr.msk.f32.gmra.mrb[106].mxu1 %vm2026_vm5, %v3167_v46  ;;  %v8508_v46 = vpack.c.bf16 %v3683_v45, %v3682_v44  ;;  %v3991_v45 = vld [vmem:[#allocation8 + $0xa0] sm:$0xff] }
 0x54f   : > { %7399 = vmatprep.mubr.msk.f32.mxu1 %vm9262_vm6, %v9263_v17  ;;  %8473 = vmatpush3.bf16.msra.mxu1 %v8472_v47  ;;  %v3684_v47 = vld [vmem:[#allocation5 + $0x110] sm:$0xff] }
 0x550   : > { %8474 = vmatprep.subr.bf16.mxu1 %v9260_v0  ;;  %v8511_v50 = vpack.c.bf16 %v3685_v48, %v3684_v47 }
 0x552   : > { %7400 = vmatmul.mubr.msk.f32.gmra.mrb[108].mxu1 %vm2026_vm5, %v3168_v52  ;;  %v3686_v52 = vld [vmem:[#allocation5 + $0x120] sm:$0xff] }
 0x553   : > { %7402 = vmatprep.mubr.msk.f32.mxu1 %vm9262_vm6, %v9263_v17  ;;  %8476 = vmatpush3.bf16.msra.mxu1 %v8475_v53  ;;  %v3687_v53 = vld [vmem:[#allocation5 + $0x128] sm:$0xff] }
 0x554   : > { %8477 = vmatprep.subr.bf16.mxu1 %v9260_v0 }
 0x556   : > { %7403 = vmatmul.mubr.msk.f32.gmra.mrb[110].mxu1 %vm2026_vm5, %v3169_v20  ;;  %v8514_v20 = vpack.c.bf16 %v3687_v53, %v3686_v52  ;;  %v3993_v52 = vld [vmem:[#allocation8 + $0xb0] sm:$0xff]  ;;  %v3994_v53 = vld [vmem:[#allocation8 + $0xb8] sm:$0xff] }
 0x557   : > { %7482 = vmatprep.mubr.msk.f32.mxu1 %vm9262_vm6, %v9263_v17  ;;  %8479 = vmatpush3.bf16.msra.mxu1 %v8478_v57  ;;  %v8517_v57 = vpack.c.bf16 %v3689_v55, %v3688_v54  ;;  %v8544_v55 = vpack.c.bf16 %v3994_v53, %v3993_v52  ;;  %v3844_v52 = vld [vmem:[#allocation10 + $0x18] sm:$0xff]  ;;  %v4245_v53 = vld [vmem:[#allocation10 + $0x88] sm:$0xff] }
 0x558   : > { %8501 = vmatprep.subr.bf16.mxu1 %v9260_v0 }
 0x5f5   : > { %v3114_v5 = vpop.f32.mrb[84].mxu1 }
 0x5f6   : > { %v7337_v6 = vpop.f32.mrb[85].mxu1  ;;  %7483 = vmatmul.mubr.msk.f32.vlgmr.msra.gmra.mrb[112].mxu1 %vm2026_vm5, %v3114_v5 }
 0x5f7   : > { %7485 = vmatprep.mubr.msk.f32.mxu1 %vm9262_vm6, %v9263_v17  ;;  %8503 = vmatpush3.bf16.msra.mxu1 %v8502_v38  ;;  %v3989_v38 = vld [vmem:[#allocation8 + $0x90] sm:$0xff] }
 0x5f8   : > { %8504 = vmatprep.subr.bf16.mxu1 %v9260_v0  ;;  %v8538_v44 = vpack.c.bf16 %v3990_v39, %v3989_v38 }
 0x5f9   : > { %v3119_v7 = vpop.f32.mrb[86].mxu1 }
 0x5fa   : > { %v7340_v8 = vpop.f32.mrb[87].mxu1  ;;  %7486 = vmatmul.mubr.msk.f32.gmra.mrb[114].mxu1 %vm2026_vm5, %v3119_v7 }
 0x5fb   : > { %7488 = vmatprep.mubr.msk.f32.mxu1 %vm9262_vm6, %v9263_v17  ;;  %8506 = vmatpush3.bf16.msra.mxu1 %v8505_v42 }
 0x5fc   : > { %8507 = vmatprep.subr.bf16.mxu1 %v9260_v0 }
 0x5fd   : > { %v3124_v10 = vpop.f32.mrb[88].mxu1 }
 0x5fe   : > { %v7343_v11 = vpop.f32.mrb[89].mxu1  ;;  %7489 = vmatmul.mubr.msk.f32.gmra.mrb[116].mxu1 %vm2026_vm5, %v3124_v10 }
 0x5ff   : > { %7491 = vmatprep.mubr.msk.f32.mxu1 %vm9262_vm6, %v9263_v17  ;;  %8509 = vmatpush3.bf16.msra.mxu1 %v8508_v46  ;;  %v3992_v46 = vld [vmem:[#allocation8 + $0xa8] sm:$0xff] }
 0x600   : > { %8510 = vmatprep.subr.bf16.mxu1 %v9260_v0 }
 0x601   : > { %v3129_v58 = vpop.f32.mrb[90].mxu1 }
 0x602   : > { %v7346_v12 = vpop.f32.mrb[91].mxu1  ;;  %7492 = vmatmul.mubr.msk.f32.gmra.mrb[118].mxu1 %vm2026_vm5, %v3129_v58 }
 0x603   : > { %7494 = vmatprep.mubr.msk.f32.mxu1 %vm9262_vm6, %v9263_v17  ;;  %8512 = vmatpush3.bf16.msra.mxu1 %v8511_v50  ;;  %v8541_v50 = vpack.c.bf16 %v3992_v46, %v3991_v45  ;;  %v3841_v45 = vld [vmem:[#allocation10] sm:$0xff]  ;;  %v3842_v46 = vld [vmem:[#allocation10 + $0x8] sm:$0xff] }
 0x604   : > { %8513 = vmatprep.subr.bf16.mxu1 %v9260_v0 }
 0x605   : > { %v3134_v51 = vpop.f32.mrb[92].mxu1 }
 0x606   : > { %v7349_v2 = vpop.f32.mrb[93].mxu1  ;;  %7495 = vmatmul.mubr.msk.f32.gmra.mrb[120].mxu1 %vm2026_vm5, %v3134_v51 }
 0x607   : > { %7497 = vmatprep.mubr.msk.f32.mxu1 %vm9262_vm6, %v9263_v17  ;;  %8515 = vmatpush3.bf16.msra.mxu1 %v8514_v20 }
 0x608   : > { %8516 = vmatprep.subr.bf16.mxu1 %v9260_v0 }
 0x609   : > { %v3139_v15 = vpop.f32.mrb[94].mxu1 }
 0x60a   : > { %v7352_v18 = vpop.f32.mrb[95].mxu1  ;;  %7498 = vmatmul.mubr.msk.f32.gmra.mrb[122].mxu1 %vm2026_vm5, %v3139_v15 }
 0x60b   : > { %7500 = vmatprep.mubr.msk.f32.mxu1 %vm9262_vm6, %v9263_v17  ;;  %8518 = vmatpush3.bf16.msra.mxu1 %v8517_v57 }
 0x60c   : > { %8519 = vmatprep.subr.bf16.mxu1 %v9260_v0 }
 0x60d   : > { %v3144_v9 = vpop.f32.mrb[96].mxu1 }
 0x60e   : > { %v7355_v19 = vpop.f32.mrb[97].mxu1  ;;  %7501 = vmatmul.mubr.msk.f32.gmra.mrb[124].mxu1 %vm2026_vm5, %v3144_v9 }
 0x60f   : > { %7580 = vmatprep.mubr.msk.f32.mxu1 %vm9262_vm6, %v9263_v17  ;;  %8521 = vmatpush3.bf16.msra.mxu1 %v8520_v29 }
 0x610   : > { %8531 = vmatprep.subr.bf16.mxu1 %v9260_v0 }
 0x611   : > { %v3257_v21 = vpop.f32.mrb[98].mxu1 }
 0x612   : > { %7434 = vmatmul.mubr.msk.f32.vlgmr.msra.gmra.mrb[56].mxu0 %vm2026_vm5, %v3257_v21  ;;  %v7386_v22 = vpop.f32.mrb[99].mxu1 }
 0x613   : > { %8482 = vmatpush3.bf16.msra.mxu0 %v10422_v41  ;;  %7436 = vmatprep.mubr.msk.f32.mxu0 %vm9262_vm6, %v9263_v17 }
 0x614   : > { %8483 = vmatprep.subr.bf16.mxu0 %v9260_v0 }
 0x615   : > { %v3262_v23 = vpop.f32.mrb[100].mxu1 }
 0x616   : > { %7437 = vmatmul.mubr.msk.f32.gmra.mrb[58].mxu0 %vm2026_vm5, %v3262_v23  ;;  %v7389_v16 = vpop.f32.mrb[101].mxu1 }
 0x617   : > { %8485 = vmatpush3.bf16.msra.mxu0 %v10426_v49  ;;  %7439 = vmatprep.mubr.msk.f32.mxu0 %vm9262_vm6, %v9263_v17 }
 0x618   : > { %8486 = vmatprep.subr.bf16.mxu0 %v9260_v0 }
 0x619   : > { %v3267_v24 = vpop.f32.mrb[102].mxu1 }
 0x61a   : > { %7440 = vmatmul.mubr.msk.f32.gmra.mrb[60].mxu0 %vm2026_vm5, %v3267_v24  ;;  %v7392_v41 = vpop.f32.mrb[103].mxu1 }
 0x61b   : > { %8488 = vmatpush3.bf16.msra.mxu0 %v10430_v56  ;;  %7442 = vmatprep.mubr.msk.f32.mxu0 %vm9262_vm6, %v9263_v17 }
 0x61c   : > { %8489 = vmatprep.subr.bf16.mxu0 %v9260_v0 }
 0x61d   : > { %v3272_v26 = vpop.f32.mrb[104].mxu1 }
 0x61e   : > { %7443 = vmatmul.mubr.msk.f32.gmra.mrb[62].mxu0 %vm2026_vm5, %v3272_v26  ;;  %v7395_v49 = vpop.f32.mrb[105].mxu1 }
 0x61f   : > { %8491 = vmatpush3.bf16.msra.mxu0 %v10434_v63  ;;  %7445 = vmatprep.mubr.msk.f32.mxu0 %vm9262_vm6, %v9263_v17 }
 0x620   : > { %8492 = vmatprep.subr.bf16.mxu0 %v9260_v0 }
 0x621   : > { %v3277_v27 = vpop.f32.mrb[106].mxu1 }
 0x622   : > { %7446 = vmatmul.mubr.msk.f32.gmra.mrb[64].mxu0 %vm2026_vm5, %v3277_v27  ;;  %v7398_v56 = vpop.f32.mrb[107].mxu1 }
 0x623   : > { %8494 = vmatpush3.bf16.msra.mxu0 %v10438_v36  ;;  %7448 = vmatprep.mubr.msk.f32.mxu0 %vm9262_vm6, %v9263_v17 }
 0x624   : > { %8495 = vmatprep.subr.bf16.mxu0 %v9260_v0 }
 0x625   : > { %v3282_v25 = vpop.f32.mrb[108].mxu1 }
 0x626   : > { %7449 = vmatmul.mubr.msk.f32.gmra.mrb[66].mxu0 %vm2026_vm5, %v3282_v25  ;;  %v7401_v63 = vpop.f32.mrb[109].mxu1 }
 0x627   : > { %8497 = vmatpush3.bf16.msra.mxu0 %v10442_v13  ;;  %7451 = vmatprep.mubr.msk.f32.mxu0 %vm9262_vm6, %v9263_v17  ;;  %v3550_v13 = vld [vmem:[#allocation7 + $0x78] sm:$0xff] }
 0x628   : > { %8498 = vmatprep.subr.bf16.mxu0 %v9260_v0 }
 0x629   : > { %v3287_v28 = vpop.f32.mrb[110].mxu1 }
 0x62a   : > { %7452 = vmatmul.mubr.msk.f32.gmra.mrb[68].mxu0 %vm2026_vm5, %v3287_v28  ;;  %v7404_v36 = vpop.f32.mrb[111].mxu1  ;;  %v3985_v28 = vld [vmem:[#allocation8 + $0x70] sm:$0xff] }
 0x62b   : > { %8500 = vmatpush3.bf16.msra.mxu0 %v10446_v14  ;;  %7531 = vmatprep.mubr.msk.f32.mxu0 %vm9262_vm6, %v9263_v17  ;;  %v3552_v14 = vld [vmem:[#allocation7 + $0x88] sm:$0xff]  ;;  %v3986_v36 = vld [vmem:[#allocation8 + $0x78] sm:$0xff] }
 0x62c   : > { %8522 = vmatprep.subr.bf16.mxu0 %v9260_v0 }
 0x62e   : > { %7532 = vmatmul.mubr.msk.f32.vlgmr.msra.gmra.mrb[70].mxu0 %vm2026_vm5, %v3549_v30 }
 0x62f   : > { %7534 = vmatprep.mubr.msk.f32.mxu0 %vm9262_vm6, %v9263_v17 }
 0x632   : > { %7535 = vmatmul.mubr.msk.f32.gmra.mrb[72].mxu0 %vm2026_vm5, %v3550_v13 }
 0x633   : > { %7537 = vmatprep.mubr.msk.f32.mxu0 %vm9262_vm6, %v9263_v17 }
 0x636   : > { %7538 = vmatmul.mubr.msk.f32.gmra.mrb[74].mxu0 %vm2026_vm5, %v3551_v31 }
 0x637   : > { %7540 = vmatprep.mubr.msk.f32.mxu0 %vm9262_vm6, %v9263_v17 }
 0x63a   : > { %7541 = vmatmul.mubr.msk.f32.gmra.mrb[76].mxu0 %vm2026_vm5, %v3552_v14  ;;  %v8532_v14 = vpack.c.bf16 %v3986_v36, %v3985_v28 }
 0x63b   : > { %7543 = vmatprep.mubr.msk.f32.mxu0 %vm9262_vm6, %v9263_v17 }
 0x63e   : > { %7544 = vmatmul.mubr.msk.f32.gmra.mrb[78].mxu0 %vm2026_vm5, %v3553_v32  ;;  %v3987_v32 = vld [vmem:[#allocation8 + $0x80] sm:$0xff] }
 0x63f   : > { %7546 = vmatprep.mubr.msk.f32.mxu0 %vm9262_vm6, %v9263_v17 }
 0x642   : > { %7547 = vmatmul.mubr.msk.f32.gmra.mrb[80].mxu0 %vm2026_vm5, %v3554_v33  ;;  %v3988_v33 = vld [vmem:[#allocation8 + $0x88] sm:$0xff] }
 0x643   : > { %7549 = vmatprep.mubr.msk.f32.mxu0 %vm9262_vm6, %v9263_v17  ;;  %v8535_v37 = vpack.c.bf16 %v3988_v33, %v3987_v32 }
 0x646   : > { %7550 = vmatmul.mubr.msk.f32.gmra.mrb[82].mxu0 %vm2026_vm5, %v3555_v34 }
 0x647   : > { %7615 = vmatprep.mubr.msk.f32.mxu0 %vm9262_vm6, %v9263_v17 }
 0x6c9   : > { %v3514_v61 = vpop.f32.mrb[112].mxu1 }
 0x6ca   : > { %v7484_v62 = vpop.f32.mrb[113].mxu1 }
 0x6cd   : > { %v3519_v1 = vpop.f32.mrb[114].mxu1 }
 0x6ce   : > { %v7487_v3 = vpop.f32.mrb[115].mxu1 }
 0x6cf   : > { %v3996_v3 = vld [vmem:[#allocation8 + $0xc8] sm:$0xff] }
 0x6d1   : > { %v3524_v4 = vpop.f32.mrb[116].mxu1 }
 0x6d2   : > { %v7490_v43 = vpop.f32.mrb[117].mxu1 }
 0x6d3   : > { %v3997_v43 = vld [vmem:[#allocation8 + $0xd0] sm:$0xff] }
 0x6d5   : > { %v3529_v5 = vpop.f32.mrb[118].mxu1 }
 0x6d6   : > { %v7493_v6 = vpop.f32.mrb[119].mxu1 }
 0x6d9   : > { %v3534_v7 = vpop.f32.mrb[120].mxu1 }
 0x6da   : > { %v7496_v8 = vpop.f32.mrb[121].mxu1 }
 0x6db   : > { %v6315_v8 = vld [vmem:[%s11084_s9] ss:$0 sm:$0xff] }
 0x6dd   : > { %v3539_v10 = vpop.f32.mrb[122].mxu1 }
 0x6de   : > { %v7499_v11 = vpop.f32.mrb[123].mxu1 }
 0x6e1   : > { %v3544_v58 = vpop.f32.mrb[124].mxu1 }
 0x6e2   : > { %v7502_v12 = vpop.f32.mrb[125].mxu1 }
 0x6e5   : > { %v3393_v51 = vpop.f32.mrb[56].mxu0 }
 0x6e6   : > { %v10600_v2 = vadd.f32 %v3514_v61, %v3393_v51  ;;  %v7435_v15 = vpop.f32.mrb[57].mxu0 }
 0x6e9   : > { %v3398_v18 = vpop.f32.mrb[58].mxu0 }
 0x6ea   : > { %v10602_v9 = vadd.f32 %v3519_v1, %v3398_v18  ;;  %v7438_v19 = vpop.f32.mrb[59].mxu0  ;;  %v3995_v1 = vld [vmem:[#allocation8 + $0xc0] sm:$0xff] }
 0x6ed   : > { %v3403_v21 = vpop.f32.mrb[60].mxu0 }
 0x6ee   : > { %v10604_v22 = vadd.f32 %v3524_v4, %v3403_v21  ;;  %v7441_v23 = vpop.f32.mrb[61].mxu0  ;;  %v8547_v4 = vpack.c.bf16 %v3996_v3, %v3995_v1  ;;  %v3972_v1 = vld [vmem:[#allocation8 + $0x10] sm:$0xff]  ;;  %v3973_v3 = vld [vmem:[#allocation8 + $0x18] sm:$0xff] }
 0x6f1   : > { %v3408_v16 = vpop.f32.mrb[62].mxu0 }
 0x6f2   : > { %v10606_v24 = vadd.f32 %v3529_v5, %v3408_v16  ;;  %v7444_v41 = vpop.f32.mrb[63].mxu0  ;;  %v3998_v5 = vld [vmem:[#allocation8 + $0xd8] sm:$0xff] }
 0x6f3   : > { %v8550_v6 = vpack.c.bf16 %v3998_v5, %v3997_v43  ;;  %v3974_v43 = vld [vmem:[#allocation8 + $0x20] sm:$0xff]  ;;  %v3975_v5 = vld [vmem:[#allocation8 + $0x28] sm:$0xff] }
 0x6f5   : > { %v3413_v26 = vpop.f32.mrb[64].mxu0 }
 0x6f6   : > { %v10608_v49 = vadd.f32 %v3534_v7, %v3413_v26  ;;  %v7447_v27 = vpop.f32.mrb[65].mxu0 }
 0x6f9   : > { %v3418_v56 = vpop.f32.mrb[66].mxu0 }
 0x6fa   : > { %v10610_v25 = vadd.f32 %v3539_v10, %v3418_v56  ;;  %v7450_v63 = vpop.f32.mrb[67].mxu0 }
 0x6fd   : > { %v3423_v30 = vpop.f32.mrb[68].mxu0 }
 0x6fe   : > { %v10612_v13 = vadd.f32 %v3544_v58, %v3423_v30  ;;  %v7453_v31 = vpop.f32.mrb[69].mxu0 }
 0x701   : > { %v3643_v34 = vpop.f32.mrb[70].mxu0 }
 0x702   : > { %7581 = vmatmul.mubr.msk.f32.vlgmr.msra.gmra.mrb[126].mxu1 %vm2026_vm5, %v3643_v34  ;;  %v7533_v35 = vpop.f32.mrb[71].mxu0 }
 0x703   : > { %7583 = vmatprep.mubr.msk.f32.mxu1 %vm9262_vm6, %v9263_v17  ;;  %8533 = vmatpush3.bf16.msra.mxu1 %v8532_v14 }
 0x704   : > { %8534 = vmatprep.subr.bf16.mxu1 %v9260_v0 }
 0x705   : > { %v3648_v40 = vpop.f32.mrb[72].mxu0 }
 0x706   : > { %7584 = vmatmul.mubr.msk.f32.gmra.mrb[128].mxu1 %vm2026_vm5, %v3648_v40  ;;  %v7536_v42 = vpop.f32.mrb[73].mxu0 }
 0x707   : > { %7586 = vmatprep.mubr.msk.f32.mxu1 %vm9262_vm6, %v9263_v17  ;;  %8536 = vmatpush3.bf16.msra.mxu1 %v8535_v37 }
 0x708   : > { %8537 = vmatprep.subr.bf16.mxu1 %v9260_v0 }
 0x709   : > { %v3653_v47 = vpop.f32.mrb[74].mxu0 }
 0x70a   : > { %7587 = vmatmul.mubr.msk.f32.gmra.mrb[130].mxu1 %vm2026_vm5, %v3653_v47  ;;  %v7539_v48 = vpop.f32.mrb[75].mxu0  ;;  %v4243_v47 = vld [vmem:[#allocation10 + $0x78] sm:$0xff] }
 0x70b   : > { %7589 = vmatprep.mubr.msk.f32.mxu1 %vm9262_vm6, %v9263_v17  ;;  %8539 = vmatpush3.bf16.msra.mxu1 %v8538_v44  ;;  %v3843_v48 = vld [vmem:[#allocation10 + $0x10] sm:$0xff] }
 0x70c   : > { %8540 = vmatprep.subr.bf16.mxu1 %v9260_v0 }
 0x70d   : > { %v3658_v20 = vpop.f32.mrb[76].mxu0 }
 0x70e   : > { %7590 = vmatmul.mubr.msk.f32.gmra.mrb[132].mxu1 %vm2026_vm5, %v3658_v20  ;;  %v7542_v54 = vpop.f32.mrb[77].mxu0  ;;  %v3845_v20 = vld [vmem:[#allocation10 + $0x20] sm:$0xff] }
 0x70f   : > { %7592 = vmatprep.mubr.msk.f32.mxu1 %vm9262_vm6, %v9263_v17  ;;  %8542 = vmatpush3.bf16.msra.mxu1 %v8541_v50  ;;  %v4244_v50 = vld [vmem:[#allocation10 + $0x80] sm:$0xff]  ;;  %v4246_v54 = vld [vmem:[#allocation10 + $0x90] sm:$0xff] }
 0x710   : > { %8543 = vmatprep.subr.bf16.mxu1 %v9260_v0 }
 0x711   : > { %v3663_v57 = vpop.f32.mrb[78].mxu0 }
 0x712   : > { %7593 = vmatmul.mubr.msk.f32.gmra.mrb[134].mxu1 %vm2026_vm5, %v3663_v57  ;;  %v7545_v59 = vpop.f32.mrb[79].mxu0  ;;  %v4247_v57 = vld [vmem:[#allocation10 + $0x98] sm:$0xff] }
 0x713   : > { %7595 = vmatprep.mubr.msk.f32.mxu1 %vm9262_vm6, %v9263_v17  ;;  %8545 = vmatpush3.bf16.msra.mxu1 %v8544_v55  ;;  %v3846_v55 = vld [vmem:[#allocation10 + $0x28] sm:$0xff]  ;;  %v3847_v59 = vld [vmem:[#allocation10 + $0x30] sm:$0xff] }
 0x714   : > { %8546 = vmatprep.subr.bf16.mxu1 %v9260_v0 }
 0x715   : > { %v3668_v60 = vpop.f32.mrb[80].mxu0 }
 0x716   : > { %7596 = vmatmul.mubr.msk.f32.gmra.mrb[136].mxu1 %vm2026_vm5, %v3668_v60  ;;  %v7548_v29 = vpop.f32.mrb[81].mxu0  ;;  %v4248_v60 = vld [vmem:[#allocation10 + $0xa0] sm:$0xff] }
 0x717   : > { %7598 = vmatprep.mubr.msk.f32.mxu1 %vm9262_vm6, %v9263_v17  ;;  %8548 = vmatpush3.bf16.msra.mxu1 %v8547_v4  ;;  %v3970_v29 = vld [vmem:[#allocation8] sm:$0xff]  ;;  %v8556_v4 = vpack.c.bf16 %v3973_v3, %v3972_v1  ;;  %v4381_v3 = vld [vmem:[#allocation8 + $0x130] sm:$0xff] }
 0x718   : > { %8549 = vmatprep.subr.bf16.mxu1 %v9260_v0 }
 0x719   : > { %v3673_v61 = vpop.f32.mrb[82].mxu0 }
 0x71a   : > { %7599 = vmatmul.mubr.msk.f32.gmra.mrb[138].mxu1 %vm2026_vm5, %v3673_v61  ;;  %v7551_v62 = vpop.f32.mrb[83].mxu0  ;;  %v3971_v61 = vld [vmem:[#allocation8 + $0x8] sm:$0xff] }
 0x71b   : > { %7664 = vmatprep.mubr.msk.f32.mxu1 %vm9262_vm6, %v9263_v17  ;;  %8551 = vmatpush3.bf16.msra.mxu1 %v8550_v6  ;;  %v8553_v62 = vpack.c.bf16 %v3971_v61, %v3970_v29  ;;  %v8559_v6 = vpack.c.bf16 %v3975_v5, %v3974_v43 }
 0x71c   : > { %8573 = vmatprep.subr.bf16.mxu1 %v9260_v0 }
 0x7d5   : > { %v3779_v7 = vpop.f32.mrb[126].mxu1 }
 0x7d6   : > { %v3813_v10 = vadd.f32 %v3779_v7, %v10600_v2  ;;  %v7582_v11 = vpop.f32.mrb[127].mxu1  ;;  %v3976_v7 = vld [vmem:[#allocation8 + $0x30] sm:$0xff] }
 0x7d7   : > { %v3978_v11 = vld [vmem:[#allocation8 + $0x40] sm:$0xff] }
 0x7d8   : > { %v3827_v58 = vadd.f32 %v6315_v8, %v3813_v10 }
 0x7d9   : > { %v3784_v12 = vpop.f32.mrb[128].mxu1 }
 0x7da   : > { %v3834_v51 = vmax.f32 %v3827_v58, 0.0  ;;  %v3814_v15 = vadd.f32 %v3784_v12, %v10602_v9  ;;  %v7585_v18 = vpop.f32.mrb[129].mxu1  ;;  %v3979_v58 = vld [vmem:[#allocation8 + $0x48] sm:$0xff] }
 0x7db   : > { %v8565_v12 = vpack.c.bf16 %v3979_v58, %v3978_v11  ;;  %v4384_v11 = vld [vmem:[#allocation8 + $0x148] sm:$0xff] }
 0x7dc   : > { %v3828_v19 = vadd.f32 %v6315_v8, %v3814_v15  ;;  %7665 = vmatmul.mubr.msk.f32.vlgmr.msra.gmra.mrb[140].mxu1 %vm2026_vm5, %v3834_v51  ;;  %v3981_v15 = vld [vmem:[#allocation8 + $0x58] sm:$0xff] }
 0x7dd   : > { %v3789_v21 = vpop.f32.mrb[130].mxu1  ;;  %7667 = vmatprep.mubr.msk.f32.mxu1 %vm9262_vm6, %v9263_v17 }
 0x7de   : > { %v3835_v23 = vmax.f32 %v3828_v19, 0.0  ;;  %v3815_v16 = vadd.f32 %v3789_v21, %v10604_v22  ;;  %v7588_v41 = vpop.f32.mrb[131].mxu1  ;;  %v3982_v19 = vld [vmem:[#allocation8 + $0x60] sm:$0xff]  ;;  %v3983_v21 = vld [vmem:[#allocation8 + $0x68] sm:$0xff] }
 0x7e0   : > { %v8523_v26 = vpack.c.bf16 %v3835_v23, %v3834_v51  ;;  %v3829_v2 = vadd.f32 %v6315_v8, %v3815_v16  ;;  %7668 = vmatmul.mubr.msk.f32.gmra.mrb[142].mxu1 %vm2026_vm5, %v3835_v23  ;;  %v3980_v51 = vld [vmem:[#allocation8 + $0x50] sm:$0xff]  ;;  %v8571_v23 = vpack.c.bf16 %v3983_v21, %v3982_v19 }
 0x7e1   : > { %v3794_v27 = vpop.f32.mrb[132].mxu1  ;;  %7670 = vmatprep.mubr.msk.f32.mxu1 %vm9262_vm6, %v9263_v17  ;;  %v8568_v18 = vpack.c.bf16 %v3981_v15, %v3980_v51 }
 0x7e2   : > { %v3836_v9 = vmax.f32 %v3829_v2, 0.0  ;;  %v3816_v56 = vadd.f32 %v3794_v27, %v10606_v24  ;;  %8524 = vmatpush3.bf16.msra.mxu0 %v8523_v26  ;;  %8575 = vmatpush3.bf16.msra.mxu1 %v8523_v26  ;;  %v7591_v63 = vpop.f32.mrb[133].mxu1 }
 0x7e3   : > { %8525 = vmatprep.subr.bf16.mxu0 %v9260_v0  ;;  %8576 = vmatprep.subr.bf16.mxu1 %v9260_v0 }
 0x7e4   : > { %v3830_v22 = vadd.f32 %v6315_v8, %v3816_v56  ;;  %7671 = vmatmul.mubr.msk.f32.gmra.mrb[144].mxu1 %vm2026_vm5, %v3836_v9 }
 0x7e5   : > { %v3799_v28 = vpop.f32.mrb[134].mxu1  ;;  %7673 = vmatprep.mubr.msk.f32.mxu1 %vm9262_vm6, %v9263_v17 }
 0x7e6   : > { %v3837_v36 = vmax.f32 %v3830_v22, 0.0  ;;  %v3817_v30 = vadd.f32 %v3799_v28, %v10608_v49  ;;  %v7594_v31 = vpop.f32.mrb[135].mxu1 }
 0x7e7   : > { %v4371_v31 = vld [vmem:[#allocation8 + $0xe0] sm:$0xff] }
 0x7e8   : > { %v8526_v14 = vpack.c.bf16 %v3837_v36, %v3836_v9  ;;  %v3831_v24 = vadd.f32 %v6315_v8, %v3817_v30  ;;  %7674 = vmatmul.mubr.msk.f32.gmra.mrb[146].mxu1 %vm2026_vm5, %v3837_v36 }
 0x7e9   : > { %v3804_v32 = vpop.f32.mrb[136].mxu1  ;;  %7676 = vmatprep.mubr.msk.f32.mxu1 %vm9262_vm6, %v9263_v17 }
 0x7ea   : > { %v3838_v33 = vmax.f32 %v3831_v24, 0.0  ;;  %v3818_v34 = vadd.f32 %v3804_v32, %v10610_v25  ;;  %8527 = vmatpush3.bf16.msra.mxu0 %v8526_v14  ;;  %8578 = vmatpush3.bf16.msra.mxu1 %v8526_v14  ;;  %v7597_v35 = vpop.f32.mrb[137].mxu1  ;;  %v4372_v14 = vld [vmem:[#allocation8 + $0xe8] sm:$0xff] }
 0x7eb   : > { %8528 = vmatprep.subr.bf16.mxu0 %v9260_v0  ;;  %8579 = vmatprep.subr.bf16.mxu1 %v9260_v0  ;;  %v4374_v35 = vld [vmem:[#allocation8 + $0xf8] sm:$0xff] }
 0x7ec   : > { %v3832_v49 = vadd.f32 %v6315_v8, %v3818_v34  ;;  %7677 = vmatmul.mubr.msk.f32.gmra.mrb[148].mxu1 %vm2026_vm5, %v3838_v33  ;;  %v4373_v34 = vld [vmem:[#allocation8 + $0xf0] sm:$0xff] }
 0x7ed   : > { %v3809_v37 = vpop.f32.mrb[138].mxu1  ;;  %7679 = vmatprep.mubr.msk.f32.mxu1 %vm9262_vm6, %v9263_v17 }
 0x7ee   : > { %v3839_v38 = vmax.f32 %v3832_v49, 0.0  ;;  %v3819_v39 = vadd.f32 %v3809_v37, %v10612_v13  ;;  %v7600_v40 = vpop.f32.mrb[139].mxu1  ;;  %v4242_v13 = vld [vmem:[#allocation10 + $0x70] sm:$0xff] }
 0x7f0   : > { %v8529_v42 = vpack.c.bf16 %v3839_v38, %v3838_v33  ;;  %v3833_v25 = vadd.f32 %v6315_v8, %v3819_v39  ;;  %7680 = vmatmul.mubr.msk.f32.gmra.mrb[150].mxu1 %vm2026_vm5, %v3839_v38  ;;  %v3977_v8 = vld [vmem:[#allocation8 + $0x38] sm:$0xff]  ;;  %v8583_v33 = vpack.c.bf16 %v4372_v14, %v4371_v31  ;;  %v8586_v39 = vpack.c.bf16 %v4374_v35, %v4373_v34  ;;  %v6363_v31 = vld [vmem:[%s11088_s13 + $0x88] sm:$0xff] }
 0x7f1   : > { %7682 = vmatprep.mubr.msk.f32.mxu1 %vm9262_vm6, %v9263_v17  ;;  %v8562_v10 = vpack.c.bf16 %v3977_v8, %v3976_v7  ;;  %v6366_v35 = vld [vmem:[%s11088_s13 + $0xa0] sm:$0xff] }
 0x7f2   : > { %v3840_v44 = vmax.f32 %v3833_v25, 0.0  ;;  %8530 = vmatpush3.bf16.msra.mxu0 %v8529_v42  ;;  %8581 = vmatpush3.bf16.msra.mxu1 %v8529_v42  ;;  %v4375_v42 = vld [vmem:[#allocation8 + $0x100] sm:$0xff]  ;;  %v4376_v25 = vld [vmem:[#allocation8 + $0x108] sm:$0xff] }
 0x7f3   : > { %7613 = vmatprep.subr.mxu0 %v9263_v17  ;;  %7746 = vmatprep.subr.mxu1 %v9263_v17 }
 0x7f4   : > { %7683 = vmatmul.mubr.msk.f32.gmra.mrb[152].mxu1 %vm2026_vm5, %v3840_v44 }
 0x7f5   : > { %7748 = vmatprep.mubr.msk.f32.mxu1 %vm9262_vm6, %v9263_v17 }
 0x7f6   : > { %7614 = vmatpush3.msra.mxu0 %v3840_v44  ;;  %7747 = vmatpush3.msra.mxu1 %v3840_v44 }
 0x7f7   : > { %7616 = vmatmul.mubr.msk.f32.vlgmr.msra.gmra.mrb[84].mxu0 %vm3848_vm7, %v3841_v45  ;;  %8552 = vmatprep.subr.bf16.mxu0 %v9260_v0 }
 0x7f8   : > { %7618 = vmatprep.mubr.msk.f32.mxu0 %vm9262_vm6, %v9263_v17  ;;  %7749 = vmatmul.mubr.msk.f32.vlgmr.msra.gmra.mrb[154].mxu1 %vm3848_vm7, %v4242_v13 }
 0x7f9   : > { %7751 = vmatprep.mubr.msk.f32.mxu1 %vm9262_vm6, %v9263_v17  ;;  %8554 = vmatpush3.bf16.msra.mxu0 %v8553_v62 }
 0x7fa   : > { %8555 = vmatprep.subr.bf16.mxu0 %v9260_v0 }
 0x7fb   : > { %7619 = vmatmul.mubr.msk.f32.gmra.mrb[86].mxu0 %vm3848_vm7, %v3842_v46  ;;  %v8589_v46 = vpack.c.bf16 %v4376_v25, %v4375_v42  ;;  %v6370_v42 = vld [vmem:[%s11088_s13 + $0xc0] sm:$0xff]  ;;  %v6371_v25 = vld [vmem:[%s11088_s13 + $0xc8] sm:$0xff] }
 0x7fc   : > { %7621 = vmatprep.mubr.msk.f32.mxu0 %vm9262_vm6, %v9263_v17  ;;  %7752 = vmatmul.mubr.msk.f32.gmra.mrb[156].mxu1 %vm3848_vm7, %v4243_v47 }
 0x7fd   : > { %7754 = vmatprep.mubr.msk.f32.mxu1 %vm9262_vm6, %v9263_v17  ;;  %8557 = vmatpush3.bf16.msra.mxu0 %v8556_v4  ;;  %v4382_v4 = vld [vmem:[#allocation8 + $0x138] sm:$0xff] }
 0x7fe   : > { %8558 = vmatprep.subr.bf16.mxu0 %v9260_v0  ;;  %v8598_v7 = vpack.c.bf16 %v4382_v4, %v4381_v3 }
 0x7ff   : > { %7622 = vmatmul.mubr.msk.f32.gmra.mrb[88].mxu0 %vm3848_vm7, %v3843_v48  ;;  %v4377_v48 = vld [vmem:[#allocation8 + $0x110] sm:$0xff] }
 0x800   : > { %7624 = vmatprep.mubr.msk.f32.mxu0 %vm9262_vm6, %v9263_v17  ;;  %7755 = vmatmul.mubr.msk.f32.gmra.mrb[158].mxu1 %vm3848_vm7, %v4244_v50  ;;  %v4378_v50 = vld [vmem:[#allocation8 + $0x118] sm:$0xff] }
 0x801   : > { %7757 = vmatprep.mubr.msk.f32.mxu1 %vm9262_vm6, %v9263_v17  ;;  %8560 = vmatpush3.bf16.msra.mxu0 %v8559_v6 }
 0x802   : > { %8561 = vmatprep.subr.bf16.mxu0 %v9260_v0 }
 0x803   : > { %7625 = vmatmul.mubr.msk.f32.gmra.mrb[90].mxu0 %vm3848_vm7, %v3844_v52 }
 0x804   : > { %7627 = vmatprep.mubr.msk.f32.mxu0 %vm9262_vm6, %v9263_v17  ;;  %7758 = vmatmul.mubr.msk.f32.gmra.mrb[160].mxu1 %vm3848_vm7, %v4245_v53 }
 0x805   : > { %7760 = vmatprep.mubr.msk.f32.mxu1 %vm9262_vm6, %v9263_v17  ;;  %8563 = vmatpush3.bf16.msra.mxu0 %v8562_v10  ;;  %v4383_v10 = vld [vmem:[#allocation8 + $0x140] sm:$0xff] }
 0x806   : > { %8564 = vmatprep.subr.bf16.mxu0 %v9260_v0  ;;  %v8601_v15 = vpack.c.bf16 %v4384_v11, %v4383_v10 }
 0x807   : > { %7628 = vmatmul.mubr.msk.f32.gmra.mrb[92].mxu0 %vm3848_vm7, %v3845_v20 }
 0x808   : > { %7630 = vmatprep.mubr.msk.f32.mxu0 %vm9262_vm6, %v9263_v17  ;;  %7761 = vmatmul.mubr.msk.f32.gmra.mrb[162].mxu1 %vm3848_vm7, %v4246_v54  ;;  %v8592_v54 = vpack.c.bf16 %v4378_v50, %v4377_v48 }
 0x809   : > { %7763 = vmatprep.mubr.msk.f32.mxu1 %vm9262_vm6, %v9263_v17  ;;  %8566 = vmatpush3.bf16.msra.mxu0 %v8565_v12 }
 0x80a   : > { %8567 = vmatprep.subr.bf16.mxu0 %v9260_v0 }
 0x80b   : > { %7631 = vmatmul.mubr.msk.f32.gmra.mrb[94].mxu0 %vm3848_vm7, %v3846_v55 }
 0x80c   : > { %7633 = vmatprep.mubr.msk.f32.mxu0 %vm9262_vm6, %v9263_v17  ;;  %7764 = vmatmul.mubr.msk.f32.gmra.mrb[164].mxu1 %vm3848_vm7, %v4247_v57  ;;  %v4379_v57 = vld [vmem:[#allocation8 + $0x120] sm:$0xff] }
 0x80d   : > { %7766 = vmatprep.mubr.msk.f32.mxu1 %vm9262_vm6, %v9263_v17  ;;  %8569 = vmatpush3.bf16.msra.mxu0 %v8568_v18 }
 0x80e   : > { %8570 = vmatprep.subr.bf16.mxu0 %v9260_v0 }
 0x80f   : > { %7634 = vmatmul.mubr.msk.f32.gmra.mrb[96].mxu0 %vm3848_vm7, %v3847_v59  ;;  %v4380_v59 = vld [vmem:[#allocation8 + $0x128] sm:$0xff] }
 0x810   : > { %7767 = vmatmul.mubr.msk.f32.gmra.mrb[166].mxu1 %vm3848_vm7, %v4248_v60  ;;  %7713 = vmatprep.mubr.msk.f32.mxu0 %vm9262_vm6, %v9263_v17  ;;  %v8595_v62 = vpack.c.bf16 %v4380_v59, %v4379_v57 }
 0x811   : > { %8572 = vmatpush3.bf16.msra.mxu0 %v8571_v23 }
 0x812   : > { %8582 = vmatprep.subr.bf16.mxu0 %v9260_v0 }
 0x8af   : > { %v10727_v16 = vpop.f32.mrb[140].mxu1 }
 0x8b0   : > { %v7666_v41 = vpop.f32.mrb[141].mxu1 }
 0x8b3   : > { %v10729_v26 = vpop.f32.mrb[142].mxu1 }
 0x8b4   : > { %v7669_v2 = vpop.f32.mrb[143].mxu1 }
 0x8b5   : > { %v4534_v2 = vld [vmem:[#allocation11] sm:$0xff] }
 0x8b6   : > { %7832 = vmatprep.mubr.msk.f32.mxu1 %vm3848_vm7, %v4534_v2 }
 0x8b7   : > { %v10731_v27 = vpop.f32.mrb[144].mxu1 }
 0x8b8   : > { %v7672_v9 = vpop.f32.mrb[145].mxu1 }
 0x8b9   : > { %v6360_v9 = vld [vmem:[%s11088_s13 + $0x70] sm:$0xff] }
 0x8bb   : > { %v10733_v56 = vpop.f32.mrb[146].mxu1 }
 0x8bc   : > { %v7675_v63 = vpop.f32.mrb[147].mxu1 }
 0x8bd   : > { %v6361_v63 = vld [vmem:[%s11088_s13 + $0x78] sm:$0xff] }
 0x8bf   : > { %v10735_v22 = vpop.f32.mrb[148].mxu1 }
 0x8c0   : > { %v7678_v28 = vpop.f32.mrb[149].mxu1 }
 0x8c1   : > { %v6362_v28 = vld [vmem:[%s11088_s13 + $0x80] sm:$0xff] }
 0x8c2   : > { %v8631_v14 = vpack.c.bf16 %v6363_v31, %v6362_v28 }
 0x8c3   : > { %v10737_v36 = vpop.f32.mrb[150].mxu1 }
 0x8c4   : > { %v7681_v30 = vpop.f32.mrb[151].mxu1 }
 0x8c5   : > { %v8627_v30 = vpack.c.bf16 %v6361_v63, %v6360_v9 }
 0x8c7   : > { %v10739_v24 = vpop.f32.mrb[152].mxu1 }
 0x8c8   : > { %v7684_v32 = vpop.f32.mrb[153].mxu1 }
 0x8c9   : > { %v6364_v32 = vld [vmem:[%s11088_s13 + $0x90] sm:$0xff] }
 0x8ca   : > { %v3936_v49 = vpop.f32.mrb[84].mxu0 }
 0x8cb   : > { %7714 = vmatmul.mubr.msk.f32.vlgmr.msra.gmra.mrb[98].mxu0 %vm2026_vm5, %v3936_v49  ;;  %v7617_v37 = vpop.f32.mrb[85].mxu0  ;;  %v10742_v38 = vpop.f32.mrb[154].mxu1  ;;  %v6367_v49 = vld [vmem:[%s11088_s13 + $0xa8] sm:$0xff] }
 0x8cc   : > { %8584 = vmatpush3.bf16.msra.mxu0 %v8583_v33  ;;  %7716 = vmatprep.mubr.msk.f32.mxu0 %vm9262_vm6, %v9263_v17  ;;  %v7750_v40 = vpop.f32.mrb[155].mxu1  ;;  %v6365_v33 = vld [vmem:[%s11088_s13 + $0x98] sm:$0xff]  ;;  %v8639_v37 = vpack.c.bf16 %v6367_v49, %v6366_v35 }
 0x8cd   : > { %8585 = vmatprep.subr.bf16.mxu0 %v9260_v0  ;;  %v8635_v34 = vpack.c.bf16 %v6365_v33, %v6364_v32 }
 0x8ce   : > { %v3941_v44 = vpop.f32.mrb[86].mxu0 }
 0x8cf   : > { %7717 = vmatmul.mubr.msk.f32.gmra.mrb[100].mxu0 %vm2026_vm5, %v3941_v44  ;;  %v7620_v45 = vpop.f32.mrb[87].mxu0  ;;  %v4341_v13 = vpop.f32.mrb[156].mxu1  ;;  %v8647_v44 = vpack.c.bf16 %v6371_v25, %v6370_v42  ;;  %v4535_v25 = vld [vmem:[#allocation11 + $0x8] sm:$0xff] }
 0x8d0   : > { %8587 = vmatpush3.bf16.msra.mxu0 %v8586_v39  ;;  %7719 = vmatprep.mubr.msk.f32.mxu0 %vm9262_vm6, %v9263_v17  ;;  %v7753_v47 = vpop.f32.mrb[157].mxu1  ;;  %v6369_v39 = vld [vmem:[%s11088_s13 + $0xb8] sm:$0xff] }
 0x8d1   : > { %8588 = vmatprep.subr.bf16.mxu0 %v9260_v0 }
 0x8d2   : > { %v3946_v52 = vpop.f32.mrb[88].mxu0 }
 0x8d3   : > { %7720 = vmatmul.mubr.msk.f32.gmra.mrb[102].mxu0 %vm2026_vm5, %v3946_v52  ;;  %v7623_v53 = vpop.f32.mrb[89].mxu0  ;;  %v4346_v20 = vpop.f32.mrb[158].mxu1 }
 0x8d4   : > { %8590 = vmatpush3.bf16.msra.mxu0 %v8589_v46  ;;  %7722 = vmatprep.mubr.msk.f32.mxu0 %vm9262_vm6, %v9263_v17  ;;  %v7756_v55 = vpop.f32.mrb[159].mxu1 }
 0x8d5   : > { %8591 = vmatprep.subr.bf16.mxu0 %v9260_v0 }
 0x8d6   : > { %v3951_v60 = vpop.f32.mrb[90].mxu0 }
 0x8d7   : > { %7723 = vmatmul.mubr.msk.f32.gmra.mrb[104].mxu0 %vm2026_vm5, %v3951_v60  ;;  %v7626_v29 = vpop.f32.mrb[91].mxu0  ;;  %v4351_v61 = vpop.f32.mrb[160].mxu1 }
 0x8d8   : > { %8593 = vmatpush3.bf16.msra.mxu0 %v8592_v54  ;;  %7725 = vmatprep.mubr.msk.f32.mxu0 %vm9262_vm6, %v9263_v17  ;;  %v7759_v1 = vpop.f32.mrb[161].mxu1 }
 0x8d9   : > { %8594 = vmatprep.subr.bf16.mxu0 %v9260_v0 }
 0x8da   : > { %v3956_v43 = vpop.f32.mrb[92].mxu0 }
 0x8db   : > { %7726 = vmatmul.mubr.msk.f32.gmra.mrb[106].mxu0 %vm2026_vm5, %v3956_v43  ;;  %v7629_v5 = vpop.f32.mrb[93].mxu0  ;;  %v4356_v6 = vpop.f32.mrb[162].mxu1 }
 0x8dc   : > { %8596 = vmatpush3.bf16.msra.mxu0 %v8595_v62  ;;  %7728 = vmatprep.mubr.msk.f32.mxu0 %vm9262_vm6, %v9263_v17  ;;  %v7762_v8 = vpop.f32.mrb[163].mxu1 }
 0x8dd   : > { %8597 = vmatprep.subr.bf16.mxu0 %v9260_v0 }
 0x8de   : > { %v3961_v58 = vpop.f32.mrb[94].mxu0 }
 0x8df   : > { %7729 = vmatmul.mubr.msk.f32.gmra.mrb[108].mxu0 %vm2026_vm5, %v3961_v58  ;;  %v7632_v12 = vpop.f32.mrb[95].mxu0  ;;  %v4361_v51 = vpop.f32.mrb[164].mxu1 }
 0x8e0   : > { %8599 = vmatpush3.bf16.msra.mxu0 %v8598_v7  ;;  %7731 = vmatprep.mubr.msk.f32.mxu0 %vm9262_vm6, %v9263_v17  ;;  %v7765_v18 = vpop.f32.mrb[165].mxu1 }
 0x8e1   : > { %8600 = vmatprep.subr.bf16.mxu0 %v9260_v0 }
 0x8e2   : > { %v3966_v19 = vpop.f32.mrb[96].mxu0 }
 0x8e3   : > { %7732 = vmatmul.mubr.msk.f32.gmra.mrb[110].mxu0 %vm2026_vm5, %v3966_v19  ;;  %v7635_v21 = vpop.f32.mrb[97].mxu0  ;;  %v4366_v23 = vpop.f32.mrb[166].mxu1 }
 0x8e4   : > { %8602 = vmatpush3.bf16.msra.mxu0 %v8601_v15  ;;  %7797 = vmatprep.mubr.msk.f32.mxu0 %vm9262_vm6, %v9263_v17  ;;  %v7768_v41 = vpop.f32.mrb[167].mxu1 }
 0x8e5   : > { %8628 = vmatprep.subr.bf16.mxu0 %v8627_v30 }
 0x8e7   : > { %7798 = vmatmul.mubr.msk.f32.vlgmr.msra.gmra.mrb[112].mxu0 %vm2026_vm5, %v10742_v38  ;;  %v6368_v38 = vld [vmem:[%s11088_s13 + $0xb0] sm:$0xff] }
 0x8e8   : > { %7800 = vmatprep.mubr.msk.f32.mxu0 %vm9262_vm6, %v9263_v17  ;;  %8630 = vmatpush3.bf16.msra.mxu0 %v8627_v30  ;;  %v8643_v40 = vpack.c.bf16 %v6369_v39, %v6368_v38 }
 0x8e9   : > { %8632 = vmatprep.subr.bf16.mxu0 %v8631_v14 }
 0x8eb   : > { %7801 = vmatmul.mubr.msk.f32.gmra.mrb[114].mxu0 %vm2026_vm5, %v4341_v13 }
 0x8ec   : > { %7803 = vmatprep.mubr.msk.f32.mxu0 %vm9262_vm6, %v9263_v17  ;;  %8634 = vmatpush3.bf16.msra.mxu0 %v8631_v14 }
 0x8ed   : > { %8636 = vmatprep.subr.bf16.mxu0 %v8635_v34 }
 0x8ef   : > { %7804 = vmatmul.mubr.msk.f32.gmra.mrb[116].mxu0 %vm2026_vm5, %v4346_v20 }
 0x8f0   : > { %7806 = vmatprep.mubr.msk.f32.mxu0 %vm9262_vm6, %v9263_v17  ;;  %8638 = vmatpush3.bf16.msra.mxu0 %v8635_v34 }
 0x8f1   : > { %8640 = vmatprep.subr.bf16.mxu0 %v8639_v37 }
 0x8f3   : > { %7807 = vmatmul.mubr.msk.f32.gmra.mrb[118].mxu0 %vm2026_vm5, %v4351_v61 }
 0x8f4   : > { %7809 = vmatprep.mubr.msk.f32.mxu0 %vm9262_vm6, %v9263_v17  ;;  %8642 = vmatpush3.bf16.msra.mxu0 %v8639_v37 }
 0x8f5   : > { %8644 = vmatprep.subr.bf16.mxu0 %v8643_v40 }
 0x8f7   : > { %7810 = vmatmul.mubr.msk.f32.gmra.mrb[120].mxu0 %vm2026_vm5, %v4356_v6 }
 0x8f8   : > { %7812 = vmatprep.mubr.msk.f32.mxu0 %vm9262_vm6, %v9263_v17  ;;  %8646 = vmatpush3.bf16.msra.mxu0 %v8643_v40 }
 0x8f9   : > { %8648 = vmatprep.subr.bf16.mxu0 %v8647_v44 }
 0x8fb   : > { %7813 = vmatmul.mubr.msk.f32.gmra.mrb[122].mxu0 %vm2026_vm5, %v4361_v51 }
 0x8fc   : > { %7815 = vmatprep.mubr.msk.f32.mxu0 %vm9262_vm6, %v9263_v17  ;;  %8650 = vmatpush3.bf16.msra.mxu0 %v8647_v44  ;;  %v4536_v44 = vld [vmem:[#allocation11 + $0x10] sm:$0xff] }
 0x8ff   : > { %7816 = vmatmul.mubr.msk.f32.gmra.mrb[124].mxu0 %vm2026_vm5, %v4366_v23 }
 0x99e   : > { %v4207_v45 = vpop.f32.mrb[98].mxu0 }
 0x99f   : > { %v4208_v13 = vadd.f32 %v4207_v45, %v10727_v16  ;;  %v7715_v46 = vpop.f32.mrb[99].mxu0  ;;  %v4537_v45 = vld [vmem:[#allocation11 + $0x18] sm:$0xff] }
 0x9a0   : > { %v4651_v46 = vld [vmem:[#allocation11 + $0x28] sm:$0xff] }
 0x9a2   : > { %v4212_v47 = vpop.f32.mrb[100].mxu0 }
 0x9a3   : > { %v4213_v48 = vadd.f32 %v4212_v47, %v10729_v26  ;;  %v7718_v50 = vpop.f32.mrb[101].mxu0  ;;  %v4652_v47 = vld [vmem:[#allocation11 + $0x30] sm:$0xff] }
 0x9a4   : > { %v4961_v50 = vld [vmem:[#allocation11 + $0x40] sm:$0xff] }
 0x9a6   : > { %v4217_v52 = vpop.f32.mrb[102].mxu0 }
 0x9a7   : > { %v4218_v53 = vadd.f32 %v4217_v52, %v10731_v27  ;;  %v7721_v20 = vpop.f32.mrb[103].mxu0  ;;  %v4962_v52 = vld [vmem:[#allocation11 + $0x48] sm:$0xff] }
 0x9a8   : > { %v4964_v20 = vld [vmem:[#allocation11 + $0x58] sm:$0xff] }
 0x9aa   : > { %v4222_v54 = vpop.f32.mrb[104].mxu0 }
 0x9ab   : > { %v4223_v55 = vadd.f32 %v4222_v54, %v10733_v56  ;;  %v7724_v57 = vpop.f32.mrb[105].mxu0  ;;  %v6351_v56 = vld [vmem:[%s11087_s12] ss:$0 sm:$0xff]  ;;  %v6372_v54 = vld [vmem:[%s11088_s13 + $0xd0] sm:$0xff] }
 0x9ae   : > { %v4227_v59 = vpop.f32.mrb[106].mxu0 }
 0x9af   : > { %v4228_v60 = vadd.f32 %v4227_v59, %v10735_v22  ;;  %v7727_v29 = vpop.f32.mrb[107].mxu0  ;;  %v4635_v59 = vld [vmem:[%s11088_s13] sm:$0xff] }
 0x9b2   : > { %v4232_v61 = vpop.f32.mrb[108].mxu0 }
 0x9b3   : > { %v4233_v16 = vadd.f32 %v4232_v61, %v10737_v36  ;;  %v7730_v62 = vpop.f32.mrb[109].mxu0 }
 0x9b6   : > { %v4237_v1 = vpop.f32.mrb[110].mxu0 }
 0x9b7   : > { %v4238_v26 = vadd.f32 %v4237_v1, %v10739_v24  ;;  %v7733_v3 = vpop.f32.mrb[111].mxu0 }
 0x9b8   : > { %v4638_v3 = vld [vmem:[%s11088_s13 + $0x18] sm:$0xff] }
 0x9ba   : > { %v4472_v4 = vpop.f32.mrb[112].mxu0 }
 0x9bb   : > { %v4506_v43 = vadd.f32 %v4472_v4, %v4208_v13  ;;  %v7799_v27 = vpop.f32.mrb[113].mxu0  ;;  %v4650_v13 = vld [vmem:[#allocation11 + $0x20] sm:$0xff] }
 0x9bd   : > { %v4520_v6 = vadd.f32 %v6351_v56, %v4506_v43 }
 0x9be   : > { %v4477_v5 = vpop.f32.mrb[114].mxu0 }
 0x9bf   : > { %v4507_v7 = vadd.f32 %v4477_v5, %v4213_v48  ;;  %v7802_v22 = vpop.f32.mrb[115].mxu0  ;;  %v4527_v11 = vmax.f32 %v4520_v6, 0.0  ;;  %v4653_v48 = vld [vmem:[#allocation11 + $0x38] sm:$0xff]  ;;  %v4640_v5 = vld [vmem:[%s11088_s13 + $0x28] sm:$0xff] }
 0x9c1   : > { %v4521_v8 = vadd.f32 %v6351_v56, %v4507_v7 }
 0x9c2   : > { %v4482_v10 = vpop.f32.mrb[116].mxu0 }
 0x9c3   : > { %v4528_v36 = vmax.f32 %v4521_v8, 0.0  ;;  %v4508_v58 = vadd.f32 %v4482_v10, %v4218_v53  ;;  %v7805_v12 = vpop.f32.mrb[117].mxu0  ;;  %v4963_v53 = vld [vmem:[#allocation11 + $0x50] sm:$0xff]  ;;  %v4642_v10 = vld [vmem:[%s11088_s13 + $0x38] sm:$0xff] }
 0x9c4   : > { %v4641_v8 = vld [vmem:[%s11088_s13 + $0x30] sm:$0xff] }
 0x9c5   : > { %v8603_v51 = vpack.c.bf16 %v4528_v36, %v4527_v11  ;;  %v4522_v15 = vadd.f32 %v6351_v56, %v4508_v58  ;;  %v8667_v11 = vpack.c.bf16 %v4642_v10, %v4641_v8  ;;  %v4643_v36 = vld [vmem:[%s11088_s13 + $0x40] sm:$0xff]  ;;  %v4644_v58 = vld [vmem:[%s11088_s13 + $0x48] sm:$0xff]  ;;  %v5358_v10 = vld [vmem:[#allocation13 + $0x70] sm:$0xff] }
 0x9c6   : > { %v4487_v24 = vpop.f32.mrb[118].mxu0  ;;  %v8671_v12 = vpack.c.bf16 %v4644_v58, %v4643_v36  ;;  %v5583_v58 = vld [vmem:[#allocation13 + $0x80] sm:$0xff] }
 0x9c7   : > { %v4509_v18 = vadd.f32 %v4487_v24, %v4223_v55  ;;  %8604 = vmatprep.subr.bf16.mxu1 %v8603_v51  ;;  %v7808_v19 = vpop.f32.mrb[119].mxu0  ;;  %v4529_v41 = vmax.f32 %v4522_v15, 0.0  ;;  %v6373_v55 = vld [vmem:[%s11088_s13 + $0xd8] sm:$0xff] }
 0x9c8   : > { %8606 = vmatpush3.bf16.msra.mxu1 %v8603_v51  ;;  %v8651_v57 = vpack.c.bf16 %v6373_v55, %v6372_v54  ;;  %v4646_v24 = vld [vmem:[%s11088_s13 + $0x58] sm:$0xff] }
 0x9c9   : > { %v4523_v21 = vadd.f32 %v6351_v56, %v4509_v18 }
 0x9ca   : > { %v4492_v23 = vpop.f32.mrb[120].mxu0  ;;  %8652 = vmatprep.subr.bf16.mxu0 %v8651_v57 }
 0x9cb   : > { %v4530_v2 = vmax.f32 %v4523_v21, 0.0  ;;  %v4510_v9 = vadd.f32 %v4492_v23, %v4228_v60  ;;  %v7811_v63 = vpop.f32.mrb[121].mxu0  ;;  %8654 = vmatpush3.bf16.msra.mxu0 %v8651_v57  ;;  %v4636_v60 = vld [vmem:[%s11088_s13 + $0x8] sm:$0xff]  ;;  %v4647_v21 = vld [vmem:[%s11088_s13 + $0x60] sm:$0xff] }
 0x9cc   : > { %v8655_v29 = vpack.c.bf16 %v4636_v60, %v4635_v59  ;;  %v4648_v23 = vld [vmem:[%s11088_s13 + $0x68] sm:$0xff]  ;;  %v6386_v63 = vld [vmem:[%s11088_s13 + $0xe0] sm:$0xff] }
 0x9cd   : > { %v8607_v28 = vpack.c.bf16 %v4530_v2, %v4529_v41  ;;  %v4524_v31 = vadd.f32 %v6351_v56, %v4510_v9  ;;  %v8679_v9 = vpack.c.bf16 %v4648_v23, %v4647_v21  ;;  %v5588_v21 = vld [vmem:[#allocation13 + $0xa8] sm:$0xff] }
 0x9ce   : > { %v4497_v30 = vpop.f32.mrb[122].mxu0  ;;  %8656 = vmatprep.subr.bf16.mxu0 %v8655_v29 }
 0x9cf   : > { %v4511_v14 = vadd.f32 %v4497_v30, %v4233_v16  ;;  %8608 = vmatprep.subr.bf16.mxu1 %v8607_v28  ;;  %v7814_v32 = vpop.f32.mrb[123].mxu0  ;;  %v4531_v35 = vmax.f32 %v4524_v31, 0.0  ;;  %v6388_v31 = vld [vmem:[%s11088_s13 + $0xf0] sm:$0xff] }
 0x9d0   : > { %8610 = vmatpush3.bf16.msra.mxu1 %v8607_v28 }
 0x9d1   : > { %v4525_v33 = vadd.f32 %v6351_v56, %v4511_v14  ;;  %v6389_v14 = vld [vmem:[%s11088_s13 + $0xf8] sm:$0xff] }
 0x9d2   : > { %v4502_v34 = vpop.f32.mrb[124].mxu0  ;;  %v8699_v32 = vpack.c.bf16 %v6389_v14, %v6388_v31  ;;  %v5271_v31 = vld [vmem:[#allocation13 + $0x18] sm:$0xff] }
 0x9d3   : > { %v4532_v49 = vmax.f32 %v4525_v33, 0.0  ;;  %v4512_v37 = vadd.f32 %v4502_v34, %v4238_v26  ;;  %v7817_v38 = vpop.f32.mrb[125].mxu0  ;;  %v4637_v26 = vld [vmem:[%s11088_s13 + $0x10] sm:$0xff]  ;;  %v6390_v33 = vld [vmem:[%s11088_s13 + $0x100] sm:$0xff]  ;;  %v6391_v34 = vld [vmem:[%s11088_s13 + $0x108] sm:$0xff] }
 0x9d4   : > { %v8659_v27 = vpack.c.bf16 %v4638_v3, %v4637_v26  ;;  %v5193_v26 = vld [vmem:[%s11148_s21] sm:$0xff]  ;;  %s698_s21 = scalar_lea.vmem [#allocation14], %s5992_s20  ;;  %s9175_s20 = sshll.u32 %s9264_s1, 4  ;;  %s9176_s20 = int_to_ptr.vmem [resolvable:$false] %s9175_s20 }
 0x9d5   : > { %v8611_v39 = vpack.c.bf16 %v4532_v49, %v4531_v35  ;;  %v4526_v40 = vadd.f32 %v6351_v56, %v4512_v37  ;;  %v4639_v56 = vld [vmem:[%s11088_s13 + $0x20] sm:$0xff]  ;;  %v8703_v35 = vpack.c.bf16 %v6391_v34, %v6390_v33  ;;  %v6392_v49 = vld [vmem:[%s11088_s13 + $0x110] sm:$0xff]  ;;  %v6393_v37 = vld [vmem:[%s11088_s13 + $0x118] sm:$0xff]  ;;  %s5846_s30 = sshll.u32 %s698_s21, 4  ;;  %s9177_s7 = scalar_lea.vmem %s9176_s20, 256  ;;  %s11035_s30 = int_to_ptr.vmem [resolvable:$true] %s5846_s30 }
 0x9d6   : > { %v8663_v7 = vpack.c.bf16 %v4640_v5, %v4639_v56  ;;  %v8707_v38 = vpack.c.bf16 %v6393_v37, %v6392_v49  ;;  %v5352_v3 = vld [vmem:[#allocation13 + $0x40] sm:$0xff]  ;;  %v5354_v56 = vld [vmem:[#allocation13 + $0x50] sm:$0xff]  ;;  %v5355_v5 = vld [vmem:[#allocation13 + $0x58] sm:$0xff]  ;;  %s9171_s2 = scalar_lea.vmem %s11035_s30, 128  ;;  %p9178_p5 = scmp.lt.s32.totalorder %s11035_s30, %s9176_s20 }
 0x9d7   : > { %v4533_v42 = vmax.f32 %v4526_v40, 0.0  ;;  %8612 = vmatprep.subr.bf16.mxu1 %v8611_v39  ;;  %v6395_v40 = vld [vmem:[%s11088_s13 + $0x128] sm:$0xff]  ;;  %v5272_v34 = vld [vmem:[#allocation13 + $0x20] sm:$0xff]  ;;  %v5274_v37 = vld [vmem:[#allocation13 + $0x30] sm:$0xff]  ;;  %p9172_p13 = scmp.ne.s32.totalorder %s11035_s30, %s9171_s2  ;;  %p9179_p0 = scmp.lt.s32.totalorder %s9177_s7, %s9171_s2 }
 0x9d8   : > { %8614 = vmatpush3.bf16.msra.mxu1 %v8611_v39 }
 0x9d9   : > { %7830 = vmatprep.subr.mxu1 %v4533_v42  ;;  %p9173_p6 = pnand %p9172_p13, %p11154_p1  ;;  %p9180_p10 = por %p9179_p0, %p9178_p5 }
 0x9db   : > { %p9174_p9 = pneg %p9173_p6 }
 0x9dc   : > { %7831 = vmatpush3.msra.mxu1 %v4533_v42 }
 0x9dd   : > { %8616 = vmatprep.subr.bf16.mxu1 %v8603_v51  ;;  %7833 = vmatmul.mubr.msk.f32.vlgmr.msra.gmra.mrb[168].mxu1 %vm3848_vm7, %v4535_v25  ;;  %v6396_v25 = vld [vmem:[%s11088_s13 + $0x130] sm:$0xff]  ;;  %p9181_p2 = pnand %p9180_p10, %p9174_p9 }
 0x9de   : > { %8618 = vmatpush3.bf16.msra.mxu1 %v8603_v51  ;;  %7835 = vmatprep.mubr.msk.f32.mxu1 %vm3848_vm7, %v4536_v44  ;;  %v6397_v44 = vld [vmem:[%s11088_s13 + $0x138] sm:$0xff] }
 0x9df   : > { %8620 = vmatprep.subr.bf16.mxu1 %v8607_v28 }
 0x9e1   : > { %7836 = vmatmul.mubr.msk.f32.gmra.mrb[170].mxu1 %vm3848_vm7, %v4537_v45  ;;  %v8715_v45 = vpack.c.bf16 %v6397_v44, %v6396_v25  ;;  %v5742_v25 = vld [vmem:[#allocation13 + $0xc8] sm:$0xff]  ;;  %v6413_v44 = vld [vmem:[%s11149_s24 + $0x18] sm:$0xff] }
 0x9e2   : > { %8622 = vmatpush3.bf16.msra.mxu1 %v8607_v28  ;;  %7852 = vmatprep.mubr.msk.f32.mxu1 %vm3848_vm7, %v4650_v13  ;;  %v6398_v13 = vld [vmem:[%s11088_s13 + $0x140] sm:$0xff] }
 0x9e3   : > { %8624 = vmatprep.subr.bf16.mxu1 %v8611_v39 }
 0x9e6   : > { %8626 = vmatpush3.bf16.msra.mxu1 %v8611_v39 }
 0x9e7   : > { %7850 = vmatprep.subr.mxu1 %v4533_v42 }
 0x9ea   : > { %7851 = vmatpush3.msra.mxu1 %v4533_v42 }
 0x9eb   : > { %7853 = vmatmul.mubr.msk.f32.vlgmr.msra.gmra.mrb[172].mxu1 %vm3848_vm7, %v4651_v46  ;;  %8684 = vmatprep.subr.bf16.mxu1 %v8603_v51  ;;  %v6399_v46 = vld [vmem:[%s11088_s13 + $0x148] sm:$0xff] }
 0x9ec   : > { %8686 = vmatpush3.bf16.msra.mxu1 %v8603_v51  ;;  %7855 = vmatprep.mubr.msk.f32.mxu1 %vm3848_vm7, %v4652_v47  ;;  %v4645_v51 = vld [vmem:[%s11088_s13 + $0x50] sm:$0xff]  ;;  %v8719_v47 = vpack.c.bf16 %v6399_v46, %v6398_v13  ;;  %v5590_v46 = vld [vmem:[#allocation13 + $0xb8] sm:$0xff] }
 0x9ed   : > { %8688 = vmatprep.subr.bf16.mxu1 %v8607_v28  ;;  %v8675_v19 = vpack.c.bf16 %v4646_v24, %v4645_v51  ;;  %v5585_v51 = vld [vmem:[#allocation13 + $0x90] sm:$0xff] }
 0x9ee   : > { %v5589_v13 = vld [vmem:[#allocation13 + $0xb0] sm:$0xff] }
 0x9ef   : > { %7856 = vmatmul.mubr.msk.f32.gmra.mrb[174].mxu1 %vm3848_vm7, %v4653_v48  ;;  %v6404_v48 = vld [vmem:[%s11090_s15] ss:$0 sm:$0xff] }
 0x9f0   : > { %8690 = vmatpush3.bf16.msra.mxu1 %v8607_v28  ;;  %7940 = vmatprep.mubr.msk.f32.mxu1 %vm3848_vm7, %v4961_v50  ;;  %v6387_v28 = vld [vmem:[%s11088_s13 + $0xe8] sm:$0xff] }
 0x9f1   : > { %8692 = vmatprep.subr.bf16.mxu1 %v8611_v39  ;;  %v8695_v30 = vpack.c.bf16 %v6387_v28, %v6386_v63  ;;  %v5269_v63 = vld [vmem:[#allocation13 + $0x8] sm:$0xff] }
 0x9f4   : > { %8694 = vmatpush3.bf16.msra.mxu1 %v8611_v39  ;;  %v6394_v39 = vld [vmem:[%s11088_s13 + $0x120] sm:$0xff] }
 0x9f5   : > { %7938 = vmatprep.subr.mxu1 %v4533_v42 }
 0x9f8   : > { %7939 = vmatpush3.msra.mxu1 %v4533_v42  ;;  %v8711_v42 = vpack.c.bf16 %v6395_v40, %v6394_v39  ;;  %v6410_v40 = vld [vmem:[%s11149_s24 + $0x10] sm:$0xff] }
 0x9f9   : > { %7941 = vmatmul.mubr.msk.f32.vlgmr.msra.gmra.mrb[176].mxu1 %vm3848_vm7, %v4962_v52  ;;  %8723 = vmatprep.subr.bf16.mxu1 %v9260_v0 }
 0x9fa   : > { %7943 = vmatprep.mubr.msk.f32.mxu1 %vm3848_vm7, %v4963_v53 }
 0x9fd   : > { %7944 = vmatmul.mubr.msk.f32.gmra.mrb[178].mxu1 %vm3848_vm7, %v4964_v20 }
 0x9fe   : > { %7988 = vmatprep.mubr.msk.f32.mxu1 %vm9262_vm6, %v9263_v17 }
 0xab0   : > { %v7834_v61 = vpop.f32.mrb[168].mxu1 }
 0xab1   : > { %v4616_v16 = vpop.f32.mrb[169].mxu1 }
 0xab4   : > { %v7837_v62 = vpop.f32.mrb[170].mxu1 }
 0xab5   : > { %v4626_v1 = vpop.f32.mrb[171].mxu1 }
 0xabe   : > { %v7854_v4 = vpop.f32.mrb[172].mxu1 }
 0xabf   : > { %v4732_v43 = vpop.f32.mrb[173].mxu1 }
 0xac0   : > { %7886 = vmatprep.mubr.msk.f32.mxu0 %vm2026_vm5, %v4732_v43  ;;  %v6406_v43 = vld [vmem:[%s11149_s24 + $0x8] sm:$0xff] }
 0xac1   : > { %7887 = vmatmul.mubr.msk.f32.vlgmr.msra.gmra.mrb[126].mxu0 %vm2026_vm5, %v7854_v4  ;;  %v5353_v4 = vld [vmem:[#allocation13 + $0x48] sm:$0xff] }
 0xac2   : > { %8658 = vmatpush3.bf16.msra.mxu0 %v8655_v29  ;;  %v7857_v6 = vpop.f32.mrb[174].mxu1 }
 0xac3   : > { %8660 = vmatprep.subr.bf16.mxu0 %v8659_v27  ;;  %v4742_v22 = vpop.f32.mrb[175].mxu1 }
 0xac4   : > { %7889 = vmatprep.mubr.msk.f32.mxu0 %vm2026_vm5, %v4742_v22  ;;  %v5357_v22 = vld [vmem:[#allocation13 + $0x68] sm:$0xff] }
 0xac5   : > { %7890 = vmatmul.mubr.msk.f32.gmra.mrb[128].mxu0 %vm2026_vm5, %v7857_v6  ;;  %v8739_v6 = vpack.c.bf16 %v5355_v5, %v5354_v56  ;;  %v6416_v56 = vld [vmem:[%s11152_s23] ss:$0 sm:$0xff] }
 0xac6   : > { %8662 = vmatpush3.bf16.msra.mxu0 %v8659_v27  ;;  %7920 = vmatprep.mubr.msk.f32.mxu0 %vm2026_vm5, %v4616_v16  ;;  %v8736_v27 = vpack.c.bf16 %v5353_v4, %v5352_v3 }
 0xac7   : > { %8664 = vmatprep.subr.bf16.mxu0 %v8663_v7 }
 0xaca   : > { %8666 = vmatpush3.bf16.msra.mxu0 %v8663_v7  ;;  %v5356_v7 = vld [vmem:[#allocation13 + $0x60] sm:$0xff] }
 0xacb   : > { %8668 = vmatprep.subr.bf16.mxu0 %v8667_v11  ;;  %v8742_v8 = vpack.c.bf16 %v5357_v22, %v5356_v7 }
 0xacc   : > { %v7942_v15 = vpop.f32.mrb[176].mxu1 }
 0xacd   : > { %v5043_v18 = vpop.f32.mrb[177].mxu1 }
 0xace   : > { %8670 = vmatpush3.bf16.msra.mxu0 %v8667_v11  ;;  %v5359_v11 = vld [vmem:[#allocation13 + $0x78] sm:$0xff] }
 0xacf   : > { %8672 = vmatprep.subr.bf16.mxu0 %v8671_v12  ;;  %v8745_v36 = vpack.c.bf16 %v5359_v11, %v5358_v10 }
 0xad0   : > { %v7945_v41 = vpop.f32.mrb[178].mxu1 }
 0xad1   : > { %v5053_v2 = vpop.f32.mrb[179].mxu1 }
 0xad2   : > { %8674 = vmatpush3.bf16.msra.mxu0 %v8671_v12  ;;  %v5584_v12 = vld [vmem:[#allocation13 + $0x88] sm:$0xff] }
 0xad3   : > { %8676 = vmatprep.subr.bf16.mxu0 %v8675_v19  ;;  %v8766_v24 = vpack.c.bf16 %v5584_v12, %v5583_v58 }
 0xad6   : > { %8678 = vmatpush3.bf16.msra.mxu0 %v8675_v19  ;;  %v5587_v19 = vld [vmem:[#allocation13 + $0xa0] sm:$0xff] }
 0xad7   : > { %8680 = vmatprep.subr.bf16.mxu0 %v8679_v9  ;;  %v8772_v23 = vpack.c.bf16 %v5588_v21, %v5587_v19 }
 0xada   : > { %8682 = vmatpush3.bf16.msra.mxu0 %v8679_v9  ;;  %v5268_v9 = vld [vmem:[#allocation13] sm:$0xff] }
 0xadb   : > { %8696 = vmatprep.subr.bf16.mxu0 %v8695_v30  ;;  %v8748_v28 = vpack.c.bf16 %v5269_v63, %v5268_v9 }
 0xadd   : > { %7921 = vmatmul.mubr.msk.f32.vlgmr.msra.gmra.mrb[126].mxu0 %vm2026_vm5, %v7834_v61 }
 0xade   : > { %7923 = vmatprep.mubr.msk.f32.mxu0 %vm2026_vm5, %v4626_v1  ;;  %8698 = vmatpush3.bf16.msra.mxu0 %v8695_v30  ;;  %v5270_v30 = vld [vmem:[#allocation13 + $0x10] sm:$0xff] }
 0xadf   : > { %8700 = vmatprep.subr.bf16.mxu0 %v8699_v32  ;;  %v8751_v33 = vpack.c.bf16 %v5271_v31, %v5270_v30 }
 0xae1   : > { %7924 = vmatmul.mubr.msk.f32.gmra.mrb[128].mxu0 %vm2026_vm5, %v7837_v62 }
 0xae2   : > { %8702 = vmatpush3.bf16.msra.mxu0 %v8699_v32  ;;  %7974 = vmatprep.mubr.msk.f32.mxu0 %vm2026_vm5, %v5043_v18 }
 0xae3   : > { %8704 = vmatprep.subr.bf16.mxu0 %v8703_v35 }
 0xae6   : > { %8706 = vmatpush3.bf16.msra.mxu0 %v8703_v35  ;;  %v5273_v35 = vld [vmem:[#allocation13 + $0x28] sm:$0xff] }
 0xae7   : > { %8708 = vmatprep.subr.bf16.mxu0 %v8707_v38  ;;  %v8754_v49 = vpack.c.bf16 %v5273_v35, %v5272_v34 }
 0xaea   : > { %8710 = vmatpush3.bf16.msra.mxu0 %v8707_v38  ;;  %v5275_v38 = vld [vmem:[#allocation13 + $0x38] sm:$0xff] }
 0xaeb   : > { %8712 = vmatprep.subr.bf16.mxu0 %v8711_v42  ;;  %v8757_v39 = vpack.c.bf16 %v5275_v38, %v5274_v37 }
 0xaee   : > { %8714 = vmatpush3.bf16.msra.mxu0 %v8711_v42  ;;  %v5741_v42 = vld [vmem:[#allocation13 + $0xc0] sm:$0xff] }
 0xaef   : > { %8716 = vmatprep.subr.bf16.mxu0 %v8715_v45 }
 0xaf2   : > { %8718 = vmatpush3.bf16.msra.mxu0 %v8715_v45  ;;  %v8784_v45 = vpack.c.bf16 %v5742_v25, %v5741_v42 }
 0xaf3   : > { %8720 = vmatprep.subr.bf16.mxu0 %v8719_v47 }
 0xaf6   : > { %8722 = vmatpush3.bf16.msra.mxu0 %v8719_v47  ;;  %v5743_v47 = vld [vmem:[#allocation13 + $0xd0] sm:$0xff] }
 0xaf7   : > { %8765 = vmatprep.subr.bf16.mxu0 %v9260_v0 }
 0xaf9   : > { %7975 = vmatmul.mubr.msk.f32.vlgmr.msra.gmra.mrb[126].mxu0 %vm2026_vm5, %v7942_v15  ;;  %v5586_v15 = vld [vmem:[#allocation13 + $0x98] sm:$0xff] }
 0xafa   : > { %7977 = vmatprep.mubr.msk.f32.mxu0 %vm2026_vm5, %v5053_v2  ;;  %8767 = vmatpush3.bf16.msra.mxu0 %v8766_v24  ;;  %v8769_v18 = vpack.c.bf16 %v5586_v15, %v5585_v51 }
 0xafb   : > { %8768 = vmatprep.subr.bf16.mxu0 %v9260_v0 }
 0xafd   : > { %7978 = vmatmul.mubr.msk.f32.gmra.mrb[128].mxu0 %vm2026_vm5, %v7945_v41 }
 0xafe   : > { %8067 = vmatprep.mubr.msk.f32.mxu0 %vm9262_vm6, %v9263_v17  ;;  %8770 = vmatpush3.bf16.msra.mxu0 %v8769_v18 }
 0xaff   : > { %8771 = vmatprep.subr.bf16.mxu0 %v9260_v0 }
 0xb02   : > { %8773 = vmatpush3.bf16.msra.mxu0 %v8772_v23 }
 0xb03   : > { %8774 = vmatprep.subr.bf16.mxu0 %v9260_v0 }
 0xbcc   : > { %v7976_v50 = vpop.f32.mrb[126].mxu0 }
 0xbcd   : > { %v5186_v52 = vadd.f32 %v7976_v50, %v6404_v48  ;;  %v5155_v53 = vpop.f32.mrb[127].mxu0  ;;  %v5744_v50 = vld [vmem:[#allocation13 + $0xd8] sm:$0xff] }
 0xbce   : > { %v5185_v20 = vadd.f32 %v6404_v48, %v5155_v53  ;;  %v5745_v53 = vld [vmem:[#allocation13 + $0xe0] sm:$0xff] }
 0xbcf   : > { %v5190_v54 = vmax.f32 %v5186_v52, 0.0  ;;  %v8787_v52 = vpack.c.bf16 %v5744_v50, %v5743_v47 }
 0xbd0   : > { %v5189_v55 = vmax.f32 %v5185_v20, 0.0  ;;  %v7979_v57 = vpop.f32.mrb[128].mxu0  ;;  %v5746_v20 = vld [vmem:[#allocation13 + $0xe8] sm:$0xff] }
 0xbd1   : > { %v5188_v59 = vadd.f32 %v7979_v57, %v6404_v48  ;;  %v5165_v60 = vpop.f32.mrb[129].mxu0  ;;  %v5748_v57 = vld [vmem:[#allocation13 + $0xf8] sm:$0xff] }
 0xbd2   : > { %v10959_v29 = vpack.c.bf16 %v5190_v54, %v5189_v55  ;;  %v5187_v61 = vadd.f32 %v6404_v48, %v5165_v60  ;;  %v8775_v48 = vpack.c.bf16 %v5590_v46, %v5589_v13  ;;  %v8790_v54 = vpack.c.bf16 %v5746_v20, %v5745_v53  ;;  %v5747_v55 = vld [vmem:[#allocation13 + $0xf0] sm:$0xff] }
 0xbd3   : > { %v5192_v16 = vmax.f32 %v5188_v59, 0.0 }
 0xbd4   : > { %v5191_v62 = vmax.f32 %v5187_v61, 0.0  ;;  %8725 = vmatpush3.bf16.msra.mxu1 %v10959_v29  ;;  %8776 = vmatpush3.bf16.msra.mxu0 %v8775_v48 }
 0xbd5   : > { %8726 = vmatprep.subr.bf16.mxu1 %v9260_v0 }
 0xbd6   : > { %v10963_v1 = vpack.c.bf16 %v5192_v16, %v5191_v62 }
 0xbd8   : > { %8728 = vmatpush3.bf16.msra.mxu1 %v10963_v1 }
 0xbd9   : > { %8729 = vmatprep.subr.bf16.mxu1 %v9260_v0 }
 0xbdb   : > { %7989 = vmatmul.mubr.msk.f32.vlgmr.msra.gmra.mrb[180].mxu1 %vm5194_vm8, %v5193_v26 }
 0xbdc   : > { %8731 = vmatpush3.bf16.msra.mxu1 %v10959_v29  ;;  %7999 = vmatprep.mubr.msk.f32.mxu1 %vm9262_vm6, %v9263_v17 }
 0xbdd   : > { %8732 = vmatprep.subr.bf16.mxu1 %v9260_v0 }
 0xbe0   : > { %8734 = vmatpush3.bf16.msra.mxu1 %v10963_v1 }
 0xbe1   : > { %8735 = vmatprep.subr.bf16.mxu1 %v9260_v0 }
 0xbe3   : > { %8000 = vmatmul.mubr.msk.f32.vlgmr.msra.gmra.mrb[182].mxu1 %vm5194_vm8, %v6406_v43 }
 0xbe4   : > { %8737 = vmatpush3.bf16.msra.mxu1 %v8736_v27  ;;  %8018 = vmatprep.mubr.msk.f32.mxu1 %vm9262_vm6, %v9263_v17 }
 0xbe5   : > { %8738 = vmatprep.subr.bf16.mxu1 %v9260_v0 }
 0xbe8   : > { %8740 = vmatpush3.bf16.msra.mxu1 %v8739_v6 }
 0xbe9   : > { %8741 = vmatprep.subr.bf16.mxu1 %v9260_v0 }
 0xbec   : > { %8743 = vmatpush3.bf16.msra.mxu1 %v8742_v8 }
 0xbed   : > { %8744 = vmatprep.subr.bf16.mxu1 %v9260_v0 }
 0xbf0   : > { %8746 = vmatpush3.bf16.msra.mxu1 %v8745_v36 }
 0xbf1   : > { %8747 = vmatprep.subr.bf16.mxu1 %v9260_v0 }
 0xcae   : > { %v5264_v41 = vpop.f32.mrb[180].mxu1 }
 0xcaf   : > { %v7990_v2 = vpop.f32.mrb[181].mxu1 }
 0xcb6   : > { %v5347_v14 = vpop.f32.mrb[182].mxu1 }
 0xcb7   : > { %8019 = vmatmul.mubr.msk.f32.vlgmr.msra.gmra.mrb[184].mxu1 %vm5360_vm9, %v5347_v14  ;;  %v8001_v32 = vpop.f32.mrb[183].mxu1 }
 0xcb8   : > { %8749 = vmatpush3.bf16.msra.mxu1 %v8748_v28  ;;  %8037 = vmatprep.mubr.msk.f32.mxu1 %vm9262_vm6, %v9263_v17 }
 0xcb9   : > { %8750 = vmatprep.subr.bf16.mxu1 %v9260_v0 }
 0xcbc   : > { %8752 = vmatpush3.bf16.msra.mxu1 %v8751_v33 }
 0xcbd   : > { %8753 = vmatprep.subr.bf16.mxu1 %v9260_v0 }
 0xcc0   : > { %8755 = vmatpush3.bf16.msra.mxu1 %v8754_v49 }
 0xcc1   : > { %8756 = vmatprep.subr.bf16.mxu1 %v9260_v0 }
 0xcc4   : > { %8758 = vmatpush3.bf16.msra.mxu1 %v8757_v39 }
 0xcc5   : > { %8759 = vmatprep.subr.bf16.mxu1 %v9260_v0 }
 0xcc7   : > { %8038 = vmatmul.mubr.msk.f32.vlgmr.msra.gmra.mrb[186].mxu1 %vm5360_vm9, %v5264_v41 }
 0xcc8   : > { %8761 = vmatpush3.bf16.msra.mxu1 %v10959_v29  ;;  %8048 = vmatprep.mubr.msk.f32.mxu1 %vm9262_vm6, %v9263_v17 }
 0xcc9   : > { %8762 = vmatprep.subr.bf16.mxu1 %v9260_v0 }
 0xccc   : > { %8764 = vmatpush3.bf16.msra.mxu1 %v10963_v1 }
 0xccd   : > { %8777 = vmatprep.subr.bf16.mxu1 %v9260_v0 }
 0xccf   : > { %8049 = vmatmul.mubr.msk.f32.vlgmr.msra.gmra.mrb[188].mxu1 %vm5194_vm8, %v6410_v40 }
 0xcd0   : > { %8779 = vmatpush3.bf16.msra.mxu1 %v10959_v29  ;;  %8078 = vmatprep.mubr.msk.f32.mxu1 %vm9262_vm6, %v9263_v17 }
 0xcd1   : > { %8780 = vmatprep.subr.bf16.mxu1 %v9260_v0 }
 0xcd4   : > { %8782 = vmatpush3.bf16.msra.mxu1 %v10963_v1 }
 0xcd5   : > { %8783 = vmatprep.subr.bf16.mxu1 %v9260_v0 }
 0xcd7   : > { %8079 = vmatmul.mubr.msk.f32.vlgmr.msra.gmra.mrb[190].mxu1 %vm5194_vm8, %v6413_v44 }
 0xcd8   : > { %8785 = vmatpush3.bf16.msra.mxu1 %v8784_v45  ;;  %8097 = vmatprep.mubr.msk.f32.mxu1 %vm9262_vm6, %v9263_v17  ;;  %v8793_v17 = vpack.c.bf16 %v5748_v57, %v5747_v55 }
 0xcd9   : > { %8786 = vmatprep.subr.bf16.mxu1 %v9260_v0 }
 0xcdc   : > { %8788 = vmatpush3.bf16.msra.mxu1 %v8787_v52 }
 0xcdd   : > { %8789 = vmatprep.subr.bf16.mxu1 %v9260_v0 }
 0xce0   : > { %8791 = vmatpush3.bf16.msra.mxu1 %v8790_v54 }
 0xce1   : > { %8792 = vmatprep.subr.bf16.mxu1 %v9260_v0 }
 0xce4   : > { %8794 = vmatpush3.bf16.msra.mxu1 %v8793_v17 }
 0xd8a   : > { %v5430_v59 = vpop.f32.mrb[184].mxu1 }
 0xd8b   : > { %v8020_v60 = vpop.f32.mrb[185].mxu1 }
 0xd9a   : > { %v5503_v29 = vpop.f32.mrb[186].mxu1 }
 0xd9b   : > { %v5504_v61 = vadd.f32 %v5503_v29, %v5430_v59  ;;  %v8039_v16 = vpop.f32.mrb[187].mxu1 }
 0xda2   : > { %v5578_v62 = vpop.f32.mrb[188].mxu1 }
 0xda3   : > { %8068 = vmatmul.mubr.msk.f32.vlgmr.msra.gmra.mrb[130].mxu0 %vm5360_vm9, %v5578_v62  ;;  %v8050_v1 = vpop.f32.mrb[189].mxu1 }
 0xdaa   : > { %v5736_v26 = vpop.f32.mrb[190].mxu1 }
 0xdab   : > { %8098 = vmatmul.mubr.msk.f32.vlgmr.msra.gmra.mrb[192].mxu1 %vm5360_vm9, %v5736_v26  ;;  %v8080_v3 = vpop.f32.mrb[191].mxu1 }
 0xe76   : > { %v5660_v4 = vpop.f32.mrb[130].mxu0 }
 0xe77   : > { %v5664_v43 = vadd.f32 %v5660_v4, %v5504_v61  ;;  %v8069_v27 = vpop.f32.mrb[131].mxu0 }
 0xe7e   : > { %v5818_v0 = vpop.f32.mrb[192].mxu1 }
 0xe7f   : > { %v5822_v5 = vadd.f32 %v5818_v0, %v5664_v43  ;;  %v8099_v6 = vpop.f32.mrb[193].mxu1 }
 0xe81   : > { %v5830_v7 = vadd.f32 %v6416_v56, %v5822_v5 }
 0xe83   : > { %5831 = vst [vmem:[%s698_s21] sm:$0xff] %v5830_v7 }
 0xe84   : > { %9184 = shalt.err (!%p9181_p2)
}
 0xe85   : > { %s9185_s0 = scalar_lea.hbm %s11033_s27, 128  ;;  %s9189_s25 = scalar_lea.hbm %s11153_s19, 256 }
 0xe86   : > { %p9186_p3 = scmp.ne.s32.totalorder %s11033_s27, %s9185_s0  ;;  %p9190_p7 = scmp.lt.u32.totalorder %s11033_s27, %s11153_s19 }
 0xe87   : > { %p9191_p8 = scmp.lt.u32.totalorder %s9189_s25, %s9185_s0  ;;  %p9193_p13 = scmp.lt.u32.totalorder %s9185_s0, %s11033_s27 }
 0xe88   : > { %p9187_p4 = pnand %p9186_p3, %p11154_p1 }
 0xe89   : > { %p9192_p11 = por %p9191_p8, %p9190_p7 }
 0xe8a   : > { %p9188_p12 = pneg %p9187_p4 }
 0xe8b   : > { %p9194_p6 = por %p9193_p13, %p9192_p11 }
 0xe8d   : > { %p9195_p9 = pnand %p9194_p6, %p9188_p12 }
 0xe8f   : > { %9198 = shalt.err (!%p9195_p9)
}
 0xe90   : > { %8887 = dma.vmem_to_hbm [thread:$0]  (%p11154_p1), %s11035_s30, 128, %s11033_s27, %s5833_s22  }
 0xe91 PF: > { %s11155_s26 = sld [smem:[#allocation23_spill]]  ;;  %s11156_s2 = sld [smem:[#allocation20_spill]] }
 0xe92   : > { %s11157_s1 = sld [smem:[#allocation27_spill]] }
 0xe97   : > { %p8929_p5 = scmp.ge.s32.totalorder %s11155_s26, 2  ;;  %s5858_s20 = sand.u32 1, %s11156_s2  }
 0xe98   : > { %p11158_p0 = scmp.ne.s32.totalorder %s11157_s1, 0  ;;  %s5859_s7 = scalar_lea.sflag [#allocation4], %s5858_s20 }
 0xe9a   : > { %p8912_p10 = pnand %p8929_p5, %p11158_p0 }
 0xe9c   : > { %9232 = dma.done.wait (!%p8912_p10), %s5859_s7, 128  }
 0xe9d   : > { %9234 = vsyncadd (!%p8912_p10), %s5859_s7, 4294967168  ;;  %s11159_s21 = sld [smem:[#allocation24_spill]]  ;;  %s11160_s0 = sld [smem:[#allocation21_spill]] }
 0xe9e   : > { %s11161_s30 = sld [smem:[#allocation22_spill]]  ;;  %s11162_s20 = sld [smem:[#allocation25_spill]] }
 0xea3   : > { %p33_p2 = scmp.ge.s32.totalorder %s11159_s21, 4  }
 0xea5   :  { %35 = sbr.rel (!%p33_p2) target bundleno = 16 (0x10), region = 184 }
 0xeac   :  { %5864 = vsyncpa [#allocation3], 1 }
 0xead   :  { %5866 = vsyncpa [#allocation3 + $0x1], 1 }
 0xeae   :  { %5867 = vsyncpa [#allocation6], 1 }
 0xeaf   :  { %5868 = vsyncpa [#allocation9], 1 }
 0xeb0   :  { %5869 = vsyncpa [#allocation12], 1 }
 0xeb1   :  { %5870 = vsyncpa [#allocation4], 1 }
 0xeb2   :  { %5872 = vsyncpa [#allocation4 + $0x1], 1 }

</bundles_post_ra>
